<compile_context>
chip_gen: v6e
topology: v6e:2x2x1
jax: 0.10.0
libtpu: 0.0.40
codegen_flags: <defaults>
</compile_context>

<pallas_src>
import functools
import math

import jax
import jax.numpy as jnp
import numpy as np
from jax.experimental import pallas as pl
from jax.experimental.pallas import tpu as pltpu


# --------------- small, self-consistent config (2*HIDDEN == INPUT_SIZE) -----------
INPUT_SIZE = 128     # embedding dim E
HIDDEN = 64          # GRU hidden per direction
NUM_LAYERS = 2
BATCH = 2
SEQ = 8

_H2 = 2 * HIDDEN     # fused [fwd|rev] state width          = 128
_G = 3 * _H2         # fused gate width [rF rR zF zR nF nR] = 384
_ROWS = 8            # per-step rows: batch padded to the f32 sublane tile

_VMEM = pl.BlockSpec(memory_space=pltpu.MemorySpace.VMEM)


# ----------------------------------- kernel ---------------------------------------
def _doc_gru_kernel(xrows_ref,
                    p0_ref, q0_ref, whh0_ref, bih0_ref, bhh0_ref,
                    p1_ref, q1_ref, whh1_ref, bih1_ref, bhh1_ref,
                    wv_ref, bv_ref, wo_ref, bo_ref,
                    out_ref,
                    gip_scr, giq_scr, h0_scr,
                    *, batch, seq):
    S, R, H2 = seq, _ROWS, _H2

    def project(inp, p_ref, q_ref, bih_ref):
        # Hoisted input projection for the whole sequence, both directions at once.
        # gip row-block t -> contribution used at fused step t
        # giq row-block t -> contribution used at fused step S-1-t
        gip_scr[...] = (jnp.dot(inp, p_ref[...], preferred_element_type=jnp.float32)
                        + bih_ref[...])
        giq_scr[...] = jnp.dot(inp, q_ref[...], preferred_element_type=jnp.float32)

    def recurrence(whh_ref, bhh_ref, out_scr):
        # Fused fwd+rev GRU: h = [h_fwd | h_rev] (R, 128); one block-diagonal
        # (R,128)@(128,384) matmul per step; 128-lane-aligned gate slices;
        # fully unrolled.
        whh = whh_ref[...]
        bhh = bhh_ref[...]
        h = jnp.zeros((R, H2), jnp.float32)
        acc = jnp.zeros((R, H2), jnp.float32)
        for t in range(S):
            g = (gip_scr[t * R:(t + 1) * R, :]
                 + giq_scr[(S - 1 - t) * R:(S - t) * R, :])
            gh = jnp.dot(h, whh, preferred_element_type=jnp.float32) + bhh
            r = jax.nn.sigmoid(g[:, 0:H2] + gh[:, 0:H2])
            z = jax.nn.sigmoid(g[:, H2:2 * H2] + gh[:, H2:2 * H2])
            n = jnp.tanh(g[:, 2 * H2:3 * H2] + r * gh[:, 2 * H2:3 * H2])
            h = (1.0 - z) * n + z * h
            if out_scr is not None:
                out_scr[t * R:(t + 1) * R, :] = h     # lane+sublane-dense store
            acc = acc + h
        return acc

    # ---- layer 0: input = zero-padded time-major x rows (S*R, E) ----
    project(xrows_ref[...], p0_ref, q0_ref, bih0_ref)
    recurrence(whh0_ref, bhh0_ref, h0_scr)

    # ---- layer 1: input = layer-0 step outputs; the reverse-direction time
    # un-flip and fwd/rev concat are folded into the packed P1/Q1 weights ----
    project(h0_scr[...], p1_ref, q1_ref, bih1_ref)
    acc1 = recurrence(whh1_ref, bhh1_ref, None)

    # ---- single-head attention + mean pooling ----
    # key == h broadcast over the sequence  =>  each score row is constant  =>
    # softmax is exactly uniform (1/S)      =>  attention output == mean_t V[t]
    # for every query, and the final mean pool over identical rows is identity.
    pooled = acc1 * (1.0 / S)                                    # mean_t gru_out
    ctx = jnp.dot(pooled, wv_ref[...], preferred_element_type=jnp.float32) + bv_ref[...]
    emb = jnp.dot(ctx, wo_ref[...], preferred_element_type=jnp.float32) + bo_ref[...]
    out_ref[...] = emb[0:batch, :]


# -------------------------- host-side weight packing -------------------------------
def _fcols(g):
    return slice(g * _H2, g * _H2 + HIDDEN)          # fwd gate columns


def _rcols(g):
    return slice(g * _H2 + HIDDEN, (g + 1) * _H2)    # rev gate columns


def _pack_bias(b_f, b_r):
    out = np.zeros((1, _G), np.float32)
    for g in range(3):
        out[0, _fcols(g)] = b_f[g * HIDDEN:(g + 1) * HIDDEN]
        out[0, _rcols(g)] = b_r[g * HIDDEN:(g + 1) * HIDDEN]
    return out


def _pack_whh(whh_f, whh_r):
    # block-diagonal recurrent weights for state layout [h_fwd | h_rev]
    w = np.zeros((_H2, _G), np.float32)
    for g in range(3):
        w[0:HIDDEN, _fcols(g)] = whh_f[g * HIDDEN:(g + 1) * HIDDEN, :].T
        w[HIDDEN:_H2, _rcols(g)] = whh_r[g * HIDDEN:(g + 1) * HIDDEN, :].T
    return w


def _pack_layer0_pq(wih_f, wih_r):
    # P applied to x(t) -> fwd gates; Q applied to x(S-1-t) -> rev gates
    p = np.zeros((INPUT_SIZE, _G), np.float32)
    q = np.zeros((INPUT_SIZE, _G), np.float32)
    for g in range(3):
        p[:, _fcols(g)] = wih_f[g * HIDDEN:(g + 1) * HIDDEN, :].T
        q[:, _rcols(g)] = wih_r[g * HIDDEN:(g + 1) * HIDDEN, :].T
    return p, q


def _pack_layer1_pq(wih_f, wih_r):
    # Layer-1 step input row t is the layer-0 fused state [hf(t) | hr_time(S-1-t)];
    # the weight rows are permuted so the kernel needs no per-step lane surgery.
    H = HIDDEN
    p = np.zeros((_H2, _G), np.float32)
    q = np.zeros((_H2, _G), np.float32)
    for g in range(3):
        wf = wih_f[g * H:(g + 1) * H, :]             # (H, 2H)
        wr = wih_r[g * H:(g + 1) * H, :]
        p[0:H, _fcols(g)] = wf[:, 0:H].T             # hf(t)            -> fwd gates
        p[H:_H2, _rcols(g)] = wr[:, H:_H2].T         # hr_time(S-1-t)   -> rev gates
        q[0:H, _rcols(g)] = wr[:, 0:H].T             # hf(S-1-t)        -> rev gates
        q[H:_H2, _fcols(g)] = wf[:, H:_H2].T         # hr_time(t)       -> fwd gates
    return p, q


def prepare_params(params):
    """One-time packing of PyTorch-layout weights into the kernel layout."""
    def npf(a):
        return np.asarray(a, np.float32)

    (l0f, l0r), (l1f, l1r) = params["gru"]
    p0, q0 = _pack_layer0_pq(npf(l0f["wih"]), npf(l0r["wih"]))
    p1, q1 = _pack_layer1_pq(npf(l1f["wih"]), npf(l1r["wih"]))
    a = params["attn"]
    E = INPUT_SIZE
    prep = dict(
        p0=p0, q0=q0,
        whh0=_pack_whh(npf(l0f["whh"]), npf(l0r["whh"])),
        bih0=_pack_bias(npf(l0f["bih"]), npf(l0r["bih"])),
        bhh0=_pack_bias(npf(l0f["bhh"]), npf(l0r["bhh"])),
        p1=p1, q1=q1,
        whh1=_pack_whh(npf(l1f["whh"]), npf(l1r["whh"])),
        bih1=_pack_bias(npf(l1f["bih"]), npf(l1r["bih"])),
        bhh1=_pack_bias(npf(l1f["bhh"]), npf(l1r["bhh"])),
        wv=npf(a["in_proj_w"])[2 * E:3 * E, :].T,
        bv=npf(a["in_proj_b"])[2 * E:3 * E][None, :],
        wo=npf(a["out_proj_w"]).T,
        bo=npf(a["out_proj_b"])[None, :],
    )
    return {k: jnp.asarray(v) for k, v in prep.items()}


# ------------------------------------ wrapper --------------------------------------
def _pad_time_major(x):
    # Tiny pure-layout prep (8 KiB): time-major, batch padded to the 8-row sublane
    # tile, flattened to (S*8, E) so every in-kernel access is full-tile aligned.
    B, S, E = x.shape
    xt = jnp.transpose(x, (1, 0, 2))                           # (S, B, E)
    pad = jnp.zeros((S, _ROWS - B, E), x.dtype)
    return jnp.concatenate([xt, pad], axis=1).reshape(S * _ROWS, E)


@jax.jit
def document_embedding_gru_forward(prep, x):
    B, S, E = x.shape
    assert B <= _ROWS and E == INPUT_SIZE
    x_rows = _pad_time_major(x)
    kern = functools.partial(_doc_gru_kernel, batch=B, seq=S)
    out = pl.pallas_call(
        kern,
        out_shape=jax.ShapeDtypeStruct((B, E), jnp.float32),
        in_specs=[_VMEM] * 15,
        out_specs=_VMEM,
        scratch_shapes=[
            pltpu.VMEM((S * _ROWS, _G), jnp.float32),    # gi (P side)
            pltpu.VMEM((S * _ROWS, _G), jnp.float32),    # gi (Q side)
            pltpu.VMEM((S * _ROWS, _H2), jnp.float32),   # layer-0 step outputs
        ],
    )(x_rows,
      prep["p0"], prep["q0"], prep["whh0"], prep["bih0"], prep["bhh0"],
      prep["p1"], prep["q1"], prep["whh1"], prep["bih1"], prep["bhh1"],
      prep["wv"], prep["bv"], prep["wo"], prep["bo"])
    return {"sentence_embedding": out}


# ------------------------- deterministic parameter init ----------------------------
def init_params(key):
    keys = iter(jax.random.split(key, 64))
    bound = 1.0 / math.sqrt(HIDDEN)
    gru = []
    for layer in range(NUM_LAYERS):
        d_in = INPUT_SIZE if layer == 0 else 2 * HIDDEN
        dirs = []
        for _ in range(2):  # forward, reverse
            dirs.append(dict(
                wih=jax.random.uniform(next(keys), (3 * HIDDEN, d_in), jnp.float32, -bound, bound),
                whh=jax.random.uniform(next(keys), (3 * HIDDEN, HIDDEN), jnp.float32, -bound, bound),
                bih=jax.random.uniform(next(keys), (3 * HIDDEN,), jnp.float32, -bound, bound),
                bhh=jax.random.uniform(next(keys), (3 * HIDDEN,), jnp.float32, -bound, bound)))
        gru.append(dirs)
    E = INPUT_SIZE
    xb = math.sqrt(6.0 / (2 * E))
    attn = dict(
        in_proj_w=jax.random.uniform(next(keys), (3 * E, E), jnp.float32, -xb, xb),
        in_proj_b=jax.random.uniform(next(keys), (3 * E,), jnp.float32, -0.02, 0.02),
        out_proj_w=jax.random.uniform(next(keys), (E, E), jnp.float32, -xb, xb),
        out_proj_b=jax.random.uniform(next(keys), (E,), jnp.float32, -0.02, 0.02))
    return dict(gru=gru, attn=attn)


# ---------------------- pure-JAX reference (full attention path) -------------------
def _ref_forward(params, x):
    B, S, E = x.shape
    H = HIDDEN

    def gru_dir(seq_in, p, reverse):
        wih_t, whh_t, bih, bhh = p["wih"].T, p["whh"].T, p["bih"], p["bhh"]
        h = jnp.zeros((B, H), jnp.float32)
        outs = [None] * S
        ts = range(S - 1, -1, -1) if reverse else range(S)
        for t in ts:
            gi = seq_in[:, t, :] @ wih_t + bih
            gh = h @ whh_t + bhh
            r = jax.nn.sigmoid(gi[:, :H] + gh[:, :H])
            z = jax.nn.sigmoid(gi[:, H:2 * H] + gh[:, H:2 * H])
            n = jnp.tanh(gi[:, 2 * H:] + r * gh[:, 2 * H:])
            h = (1 - z) * n + z * h
            outs[t] = h
        return jnp.stack(outs, axis=1), h

    inp = x
    hids = []
    for layer in range(NUM_LAYERS):
        fwd, rev = params["gru"][layer]
        of, hf = gru_dir(inp, fwd, False)
        orv, hr = gru_dir(inp, rev, True)
        inp = jnp.concatenate([of, orv], axis=-1)
        hids.extend([hf, hr])
    gru_out = inp
    h = jnp.concatenate([hids[-2], hids[-1]], axis=1)

    a = params["attn"]
    wq, wk, wv = a["in_proj_w"][:E], a["in_proj_w"][E:2 * E], a["in_proj_w"][2 * E:]
    bq, bk, bv = a["in_proj_b"][:E], a["in_proj_b"][E:2 * E], a["in_proj_b"][2 * E:]
    q = (x @ wq.T + bq) / math.sqrt(E)
    kvec = h @ wk.T + bk
    v = gru_out @ wv.T + bv
    scores = jnp.einsum("bse,bte->bst", q, jnp.broadcast_to(kvec[:, None, :], (B, S, E)))
    attn = jax.nn.softmax(scores, axis=-1)
    ctx = jnp.einsum("bst,bte->bse", attn, v)
    out = ctx @ a["out_proj_w"].T + a["out_proj_b"]
    return out.mean(axis=1)


# ------------------------------------- main -----------------------------------------
if __name__ == "__main__":
    key = jax.random.PRNGKey(0)
    pkey, xkey = jax.random.split(key)
    params = init_params(pkey)
    x = jax.random.normal(xkey, (BATCH, SEQ, INPUT_SIZE), jnp.float32)

    prep = prepare_params(params)                  # one-time weight packing
    out = document_embedding_gru_forward(prep, x)
    emb = jax.block_until_ready(out["sentence_embedding"])
    assert emb.shape == (BATCH, INPUT_SIZE)

    ref = _ref_forward(params, x)
    np.testing.assert_allclose(np.asarray(emb), np.asarray(ref), rtol=2e-2, atol=2e-2)
    print("KERNEL_OK")
</pallas_src>

<mosaic_0001>
module attributes {stable_mosaic.version = 11 : i64} {
  func.func @_doc_gru_kernel(%arg0: memref<64x128xf32, #tpu.memory_space<vmem>>, %arg1: memref<128x384xf32, #tpu.memory_space<vmem>>, %arg2: memref<128x384xf32, #tpu.memory_space<vmem>>, %arg3: memref<128x384xf32, #tpu.memory_space<vmem>>, %arg4: memref<1x384xf32, #tpu.memory_space<vmem>>, %arg5: memref<1x384xf32, #tpu.memory_space<vmem>>, %arg6: memref<128x384xf32, #tpu.memory_space<vmem>>, %arg7: memref<128x384xf32, #tpu.memory_space<vmem>>, %arg8: memref<128x384xf32, #tpu.memory_space<vmem>>, %arg9: memref<1x384xf32, #tpu.memory_space<vmem>>, %arg10: memref<1x384xf32, #tpu.memory_space<vmem>>, %arg11: memref<128x128xf32, #tpu.memory_space<vmem>>, %arg12: memref<1x128xf32, #tpu.memory_space<vmem>>, %arg13: memref<128x128xf32, #tpu.memory_space<vmem>>, %arg14: memref<1x128xf32, #tpu.memory_space<vmem>>, %arg15: memref<2x128xf32, #tpu.memory_space<vmem>>, %arg16: memref<64x384xf32, #tpu.memory_space<vmem>>, %arg17: memref<64x384xf32, #tpu.memory_space<vmem>>, %arg18: memref<64x128xf32, #tpu.memory_space<vmem>>) attributes {dimension_semantics = [], scalar_prefetch = 0 : i64, scratch_operands = 3 : i64, tpu.core_type = #tpu.core_type<tc>} {
    %c0 = arith.constant 0 : index
    %c0_0 = arith.constant 0 : index
    %0 = vector.load %arg0[%c0, %c0_0] : memref<64x128xf32, #tpu.memory_space<vmem>>, vector<64x128xf32>
    %c0_1 = arith.constant 0 : index
    %c0_2 = arith.constant 0 : index
    %1 = vector.load %arg1[%c0_1, %c0_2] : memref<128x384xf32, #tpu.memory_space<vmem>>, vector<128x384xf32>
    %cst = arith.constant dense<0.000000e+00> : vector<64x384xf32>
    %2 = tpu.matmul %0, %1, %cst {dimension_numbers = #tpu.dot_dimension_numbers<[1], [0], [0], [1], [0, 0, 1, 1], [], []>} : vector<64x128xf32>, vector<128x384xf32>, vector<64x384xf32> -> vector<64x384xf32>
    %c0_3 = arith.constant 0 : index
    %c0_4 = arith.constant 0 : index
    %3 = vector.load %arg4[%c0_3, %c0_4] : memref<1x384xf32, #tpu.memory_space<vmem>>, vector<1x384xf32>
    %4 = vector.broadcast %3 : vector<1x384xf32> to vector<64x384xf32>
    %5 = arith.addf %2, %4 : vector<64x384xf32>
    %c0_5 = arith.constant 0 : index
    %c0_6 = arith.constant 0 : index
    %6 = vector.load %arg16[%c0_5, %c0_6] : memref<64x384xf32, #tpu.memory_space<vmem>>, vector<64x384xf32>
    tpu.vector_store %arg16[%c0_5, %c0_6], %5 {strides = array<i32>} : memref<64x384xf32, #tpu.memory_space<vmem>>, vector<64x384xf32>,
    %c0_7 = arith.constant 0 : index
    %c0_8 = arith.constant 0 : index
    %7 = vector.load %arg2[%c0_7, %c0_8] : memref<128x384xf32, #tpu.memory_space<vmem>>, vector<128x384xf32>
    %cst_9 = arith.constant dense<0.000000e+00> : vector<64x384xf32>
    %8 = tpu.matmul %0, %7, %cst_9 {dimension_numbers = #tpu.dot_dimension_numbers<[1], [0], [0], [1], [0, 0, 1, 1], [], []>} : vector<64x128xf32>, vector<128x384xf32>, vector<64x384xf32> -> vector<64x384xf32>
    %c0_10 = arith.constant 0 : index
    %c0_11 = arith.constant 0 : index
    %9 = vector.load %arg17[%c0_10, %c0_11] : memref<64x384xf32, #tpu.memory_space<vmem>>, vector<64x384xf32>
    tpu.vector_store %arg17[%c0_10, %c0_11], %8 {strides = array<i32>} : memref<64x384xf32, #tpu.memory_space<vmem>>, vector<64x384xf32>,
    %c0_12 = arith.constant 0 : index
    %c0_13 = arith.constant 0 : index
    %10 = vector.load %arg3[%c0_12, %c0_13] : memref<128x384xf32, #tpu.memory_space<vmem>>, vector<128x384xf32>
    %c0_14 = arith.constant 0 : index
    %c0_15 = arith.constant 0 : index
    %11 = vector.load %arg5[%c0_14, %c0_15] : memref<1x384xf32, #tpu.memory_space<vmem>>, vector<1x384xf32>
    %cst_16 = arith.constant 0.000000e+00 : f32
    %12 = vector.broadcast %cst_16 : f32 to vector<8x128xf32>
    %c0_17 = arith.constant 0 : index
    %c0_18 = arith.constant 0 : index
    %13 = vector.load %arg16[%c0_17, %c0_18] : memref<64x384xf32, #tpu.memory_space<vmem>>, vector<8x384xf32>
    %c56 = arith.constant 56 : index
    %c0_19 = arith.constant 0 : index
    %14 = vector.load %arg17[%c56, %c0_19] : memref<64x384xf32, #tpu.memory_space<vmem>>, vector<8x384xf32>
    %15 = arith.addf %13, %14 : vector<8x384xf32>
    %cst_20 = arith.constant dense<0.000000e+00> : vector<8x384xf32>
    %16 = tpu.matmul %12, %10, %cst_20 {dimension_numbers = #tpu.dot_dimension_numbers<[1], [0], [0], [1], [0, 0, 1, 1], [], []>} : vector<8x128xf32>, vector<128x384xf32>, vector<8x384xf32> -> vector<8x384xf32>
    %17 = vector.broadcast %11 : vector<1x384xf32> to vector<8x384xf32>
    %18 = arith.addf %16, %17 : vector<8x384xf32>
    %19 = vector.extract_strided_slice %15 {offsets = [0, 0], sizes = [8, 128], strides = [1, 1]} : vector<8x384xf32> to vector<8x128xf32>
    %20 = vector.extract_strided_slice %18 {offsets = [0, 0], sizes = [8, 128], strides = [1, 1]} : vector<8x384xf32> to vector<8x128xf32>
    %21 = arith.addf %19, %20 : vector<8x128xf32>
    %22 = arith.negf %21 : vector<8x128xf32>
    %23 = math.exp %22 : vector<8x128xf32>
    %cst_21 = arith.constant 1.000000e+00 : f32
    %24 = vector.broadcast %cst_21 : f32 to vector<8x128xf32>
    %25 = arith.addf %24, %23 : vector<8x128xf32>
    %26 = arith.divf %24, %25 : vector<8x128xf32>
    %27 = vector.extract_strided_slice %15 {offsets = [0, 128], sizes = [8, 128], strides = [1, 1]} : vector<8x384xf32> to vector<8x128xf32>
    %28 = vector.extract_strided_slice %18 {offsets = [0, 128], sizes = [8, 128], strides = [1, 1]} : vector<8x384xf32> to vector<8x128xf32>
    %29 = arith.addf %27, %28 : vector<8x128xf32>
    %30 = arith.negf %29 : vector<8x128xf32>
    %31 = math.exp %30 : vector<8x128xf32>
    %cst_22 = arith.constant 1.000000e+00 : f32
    %32 = vector.broadcast %cst_22 : f32 to vector<8x128xf32>
    %33 = arith.addf %32, %31 : vector<8x128xf32>
    %34 = arith.divf %32, %33 : vector<8x128xf32>
    %35 = vector.extract_strided_slice %15 {offsets = [0, 256], sizes = [8, 128], strides = [1, 1]} : vector<8x384xf32> to vector<8x128xf32>
    %36 = vector.extract_strided_slice %18 {offsets = [0, 256], sizes = [8, 128], strides = [1, 1]} : vector<8x384xf32> to vector<8x128xf32>
    %37 = arith.mulf %26, %36 : vector<8x128xf32>
    %38 = arith.addf %35, %37 : vector<8x128xf32>
    %39 = math.tanh %38 : vector<8x128xf32>
    %cst_23 = arith.constant 1.000000e+00 : f32
    %40 = vector.broadcast %cst_23 : f32 to vector<8x128xf32>
    %41 = arith.subf %40, %34 : vector<8x128xf32>
    %42 = arith.mulf %41, %39 : vector<8x128xf32>
    %43 = arith.mulf %34, %12 : vector<8x128xf32>
    %44 = arith.addf %42, %43 : vector<8x128xf32>
    %c0_24 = arith.constant 0 : index
    %c0_25 = arith.constant 0 : index
    %45 = vector.load %arg18[%c0_24, %c0_25] : memref<64x128xf32, #tpu.memory_space<vmem>>, vector<8x128xf32>
    tpu.vector_store %arg18[%c0_24, %c0_25], %44 {strides = array<i32>} : memref<64x128xf32, #tpu.memory_space<vmem>>, vector<8x128xf32>,
    %c8 = arith.constant 8 : index
    %c0_26 = arith.constant 0 : index
    %46 = vector.load %arg16[%c8, %c0_26] : memref<64x384xf32, #tpu.memory_space<vmem>>, vector<8x384xf32>
    %c48 = arith.constant 48 : index
    %c0_27 = arith.constant 0 : index
    %47 = vector.load %arg17[%c48, %c0_27] : memref<64x384xf32, #tpu.memory_space<vmem>>, vector<8x384xf32>
    %48 = arith.addf %46, %47 : vector<8x384xf32>
    %cst_28 = arith.constant dense<0.000000e+00> : vector<8x384xf32>
    %49 = tpu.matmul %44, %10, %cst_28 {dimension_numbers = #tpu.dot_dimension_numbers<[1], [0], [0], [1], [0, 0, 1, 1], [], []>} : vector<8x128xf32>, vector<128x384xf32>, vector<8x384xf32> -> vector<8x384xf32>
    %50 = vector.broadcast %11 : vector<1x384xf32> to vector<8x384xf32>
    %51 = arith.addf %49, %50 : vector<8x384xf32>
    %52 = vector.extract_strided_slice %48 {offsets = [0, 0], sizes = [8, 128], strides = [1, 1]} : vector<8x384xf32> to vector<8x128xf32>
    %53 = vector.extract_strided_slice %51 {offsets = [0, 0], sizes = [8, 128], strides = [1, 1]} : vector<8x384xf32> to vector<8x128xf32>
    %54 = arith.addf %52, %53 : vector<8x128xf32>
    %55 = arith.negf %54 : vector<8x128xf32>
    %56 = math.exp %55 : vector<8x128xf32>
    %cst_29 = arith.constant 1.000000e+00 : f32
    %57 = vector.broadcast %cst_29 : f32 to vector<8x128xf32>
    %58 = arith.addf %57, %56 : vector<8x128xf32>
    %59 = arith.divf %57, %58 : vector<8x128xf32>
    %60 = vector.extract_strided_slice %48 {offsets = [0, 128], sizes = [8, 128], strides = [1, 1]} : vector<8x384xf32> to vector<8x128xf32>
    %61 = vector.extract_strided_slice %51 {offsets = [0, 128], sizes = [8, 128], strides = [1, 1]} : vector<8x384xf32> to vector<8x128xf32>
    %62 = arith.addf %60, %61 : vector<8x128xf32>
    %63 = arith.negf %62 : vector<8x128xf32>
    %64 = math.exp %63 : vector<8x128xf32>
    %cst_30 = arith.constant 1.000000e+00 : f32
    %65 = vector.broadcast %cst_30 : f32 to vector<8x128xf32>
    %66 = arith.addf %65, %64 : vector<8x128xf32>
    %67 = arith.divf %65, %66 : vector<8x128xf32>
    %68 = vector.extract_strided_slice %48 {offsets = [0, 256], sizes = [8, 128], strides = [1, 1]} : vector<8x384xf32> to vector<8x128xf32>
    %69 = vector.extract_strided_slice %51 {offsets = [0, 256], sizes = [8, 128], strides = [1, 1]} : vector<8x384xf32> to vector<8x128xf32>
    %70 = arith.mulf %59, %69 : vector<8x128xf32>
    %71 = arith.addf %68, %70 : vector<8x128xf32>
    %72 = math.tanh %71 : vector<8x128xf32>
    %cst_31 = arith.constant 1.000000e+00 : f32
    %73 = vector.broadcast %cst_31 : f32 to vector<8x128xf32>
    %74 = arith.subf %73, %67 : vector<8x128xf32>
    %75 = arith.mulf %74, %72 : vector<8x128xf32>
    %76 = arith.mulf %67, %44 : vector<8x128xf32>
    %77 = arith.addf %75, %76 : vector<8x128xf32>
    %c8_32 = arith.constant 8 : index
    %c0_33 = arith.constant 0 : index
    %78 = vector.load %arg18[%c8_32, %c0_33] : memref<64x128xf32, #tpu.memory_space<vmem>>, vector<8x128xf32>
    tpu.vector_store %arg18[%c8_32, %c0_33], %77 {strides = array<i32>} : memref<64x128xf32, #tpu.memory_space<vmem>>, vector<8x128xf32>,
    %c16 = arith.constant 16 : index
    %c0_34 = arith.constant 0 : index
    %79 = vector.load %arg16[%c16, %c0_34] : memref<64x384xf32, #tpu.memory_space<vmem>>, vector<8x384xf32>
    %c40 = arith.constant 40 : index
    %c0_35 = arith.constant 0 : index
    %80 = vector.load %arg17[%c40, %c0_35] : memref<64x384xf32, #tpu.memory_space<vmem>>, vector<8x384xf32>
    %81 = arith.addf %79, %80 : vector<8x384xf32>
    %cst_36 = arith.constant dense<0.000000e+00> : vector<8x384xf32>
    %82 = tpu.matmul %77, %10, %cst_36 {dimension_numbers = #tpu.dot_dimension_numbers<[1], [0], [0], [1], [0, 0, 1, 1], [], []>} : vector<8x128xf32>, vector<128x384xf32>, vector<8x384xf32> -> vector<8x384xf32>
    %83 = vector.broadcast %11 : vector<1x384xf32> to vector<8x384xf32>
    %84 = arith.addf %82, %83 : vector<8x384xf32>
    %85 = vector.extract_strided_slice %81 {offsets = [0, 0], sizes = [8, 128], strides = [1, 1]} : vector<8x384xf32> to vector<8x128xf32>
    %86 = vector.extract_strided_slice %84 {offsets = [0, 0], sizes = [8, 128], strides = [1, 1]} : vector<8x384xf32> to vector<8x128xf32>
    %87 = arith.addf %85, %86 : vector<8x128xf32>
    %88 = arith.negf %87 : vector<8x128xf32>
    %89 = math.exp %88 : vector<8x128xf32>
    %cst_37 = arith.constant 1.000000e+00 : f32
    %90 = vector.broadcast %cst_37 : f32 to vector<8x128xf32>
    %91 = arith.addf %90, %89 : vector<8x128xf32>
    %92 = arith.divf %90, %91 : vector<8x128xf32>
    %93 = vector.extract_strided_slice %81 {offsets = [0, 128], sizes = [8, 128], strides = [1, 1]} : vector<8x384xf32> to vector<8x128xf32>
    %94 = vector.extract_strided_slice %84 {offsets = [0, 128], sizes = [8, 128], strides = [1, 1]} : vector<8x384xf32> to vector<8x128xf32>
    %95 = arith.addf %93, %94 : vector<8x128xf32>
    %96 = arith.negf %95 : vector<8x128xf32>
    %97 = math.exp %96 : vector<8x128xf32>
    %cst_38 = arith.constant 1.000000e+00 : f32
    %98 = vector.broadcast %cst_38 : f32 to vector<8x128xf32>
    %99 = arith.addf %98, %97 : vector<8x128xf32>
    %100 = arith.divf %98, %99 : vector<8x128xf32>
    %101 = vector.extract_strided_slice %81 {offsets = [0, 256], sizes = [8, 128], strides = [1, 1]} : vector<8x384xf32> to vector<8x128xf32>
    %102 = vector.extract_strided_slice %84 {offsets = [0, 256], sizes = [8, 128], strides = [1, 1]} : vector<8x384xf32> to vector<8x128xf32>
    %103 = arith.mulf %92, %102 : vector<8x128xf32>
    %104 = arith.addf %101, %103 : vector<8x128xf32>
    %105 = math.tanh %104 : vector<8x128xf32>
    %cst_39 = arith.constant 1.000000e+00 : f32
    %106 = vector.broadcast %cst_39 : f32 to vector<8x128xf32>
    %107 = arith.subf %106, %100 : vector<8x128xf32>
    %108 = arith.mulf %107, %105 : vector<8x128xf32>
    %109 = arith.mulf %100, %77 : vector<8x128xf32>
    %110 = arith.addf %108, %109 : vector<8x128xf32>
    %c16_40 = arith.constant 16 : index
    %c0_41 = arith.constant 0 : index
    %111 = vector.load %arg18[%c16_40, %c0_41] : memref<64x128xf32, #tpu.memory_space<vmem>>, vector<8x128xf32>
    tpu.vector_store %arg18[%c16_40, %c0_41], %110 {strides = array<i32>} : memref<64x128xf32, #tpu.memory_space<vmem>>, vector<8x128xf32>,
    %c24 = arith.constant 24 : index
    %c0_42 = arith.constant 0 : index
    %112 = vector.load %arg16[%c24, %c0_42] : memref<64x384xf32, #tpu.memory_space<vmem>>, vector<8x384xf32>
    %c32 = arith.constant 32 : index
    %c0_43 = arith.constant 0 : index
    %113 = vector.load %arg17[%c32, %c0_43] : memref<64x384xf32, #tpu.memory_space<vmem>>, vector<8x384xf32>
    %114 = arith.addf %112, %113 : vector<8x384xf32>
    %cst_44 = arith.constant dense<0.000000e+00> : vector<8x384xf32>
    %115 = tpu.matmul %110, %10, %cst_44 {dimension_numbers = #tpu.dot_dimension_numbers<[1], [0], [0], [1], [0, 0, 1, 1], [], []>} : vector<8x128xf32>, vector<128x384xf32>, vector<8x384xf32> -> vector<8x384xf32>
    %116 = vector.broadcast %11 : vector<1x384xf32> to vector<8x384xf32>
    %117 = arith.addf %115, %116 : vector<8x384xf32>
    %118 = vector.extract_strided_slice %114 {offsets = [0, 0], sizes = [8, 128], strides = [1, 1]} : vector<8x384xf32> to vector<8x128xf32>
    %119 = vector.extract_strided_slice %117 {offsets = [0, 0], sizes = [8, 128], strides = [1, 1]} : vector<8x384xf32> to vector<8x128xf32>
    %120 = arith.addf %118, %119 : vector<8x128xf32>
    %121 = arith.negf %120 : vector<8x128xf32>
    %122 = math.exp %121 : vector<8x128xf32>
    %cst_45 = arith.constant 1.000000e+00 : f32
    %123 = vector.broadcast %cst_45 : f32 to vector<8x128xf32>
    %124 = arith.addf %123, %122 : vector<8x128xf32>
    %125 = arith.divf %123, %124 : vector<8x128xf32>
    %126 = vector.extract_strided_slice %114 {offsets = [0, 128], sizes = [8, 128], strides = [1, 1]} : vector<8x384xf32> to vector<8x128xf32>
    %127 = vector.extract_strided_slice %117 {offsets = [0, 128], sizes = [8, 128], strides = [1, 1]} : vector<8x384xf32> to vector<8x128xf32>
    %128 = arith.addf %126, %127 : vector<8x128xf32>
    %129 = arith.negf %128 : vector<8x128xf32>
    %130 = math.exp %129 : vector<8x128xf32>
    %cst_46 = arith.constant 1.000000e+00 : f32
    %131 = vector.broadcast %cst_46 : f32 to vector<8x128xf32>
    %132 = arith.addf %131, %130 : vector<8x128xf32>
    %133 = arith.divf %131, %132 : vector<8x128xf32>
    %134 = vector.extract_strided_slice %114 {offsets = [0, 256], sizes = [8, 128], strides = [1, 1]} : vector<8x384xf32> to vector<8x128xf32>
    %135 = vector.extract_strided_slice %117 {offsets = [0, 256], sizes = [8, 128], strides = [1, 1]} : vector<8x384xf32> to vector<8x128xf32>
    %136 = arith.mulf %125, %135 : vector<8x128xf32>
    %137 = arith.addf %134, %136 : vector<8x128xf32>
    %138 = math.tanh %137 : vector<8x128xf32>
    %cst_47 = arith.constant 1.000000e+00 : f32
    %139 = vector.broadcast %cst_47 : f32 to vector<8x128xf32>
    %140 = arith.subf %139, %133 : vector<8x128xf32>
    %141 = arith.mulf %140, %138 : vector<8x128xf32>
    %142 = arith.mulf %133, %110 : vector<8x128xf32>
    %143 = arith.addf %141, %142 : vector<8x128xf32>
    %c24_48 = arith.constant 24 : index
    %c0_49 = arith.constant 0 : index
    %144 = vector.load %arg18[%c24_48, %c0_49] : memref<64x128xf32, #tpu.memory_space<vmem>>, vector<8x128xf32>
    tpu.vector_store %arg18[%c24_48, %c0_49], %143 {strides = array<i32>} : memref<64x128xf32, #tpu.memory_space<vmem>>, vector<8x128xf32>,
    %c32_50 = arith.constant 32 : index
    %c0_51 = arith.constant 0 : index
    %145 = vector.load %arg16[%c32_50, %c0_51] : memref<64x384xf32, #tpu.memory_space<vmem>>, vector<8x384xf32>
    %c24_52 = arith.constant 24 : index
    %c0_53 = arith.constant 0 : index
    %146 = vector.load %arg17[%c24_52, %c0_53] : memref<64x384xf32, #tpu.memory_space<vmem>>, vector<8x384xf32>
    %147 = arith.addf %145, %146 : vector<8x384xf32>
    %cst_54 = arith.constant dense<0.000000e+00> : vector<8x384xf32>
    %148 = tpu.matmul %143, %10, %cst_54 {dimension_numbers = #tpu.dot_dimension_numbers<[1], [0], [0], [1], [0, 0, 1, 1], [], []>} : vector<8x128xf32>, vector<128x384xf32>, vector<8x384xf32> -> vector<8x384xf32>
    %149 = vector.broadcast %11 : vector<1x384xf32> to vector<8x384xf32>
    %150 = arith.addf %148, %149 : vector<8x384xf32>
    %151 = vector.extract_strided_slice %147 {offsets = [0, 0], sizes = [8, 128], strides = [1, 1]} : vector<8x384xf32> to vector<8x128xf32>
    %152 = vector.extract_strided_slice %150 {offsets = [0, 0], sizes = [8, 128], strides = [1, 1]} : vector<8x384xf32> to vector<8x128xf32>
    %153 = arith.addf %151, %152 : vector<8x128xf32>
    %154 = arith.negf %153 : vector<8x128xf32>
    %155 = math.exp %154 : vector<8x128xf32>
    %cst_55 = arith.constant 1.000000e+00 : f32
    %156 = vector.broadcast %cst_55 : f32 to vector<8x128xf32>
    %157 = arith.addf %156, %155 : vector<8x128xf32>
    %158 = arith.divf %156, %157 : vector<8x128xf32>
    %159 = vector.extract_strided_slice %147 {offsets = [0, 128], sizes = [8, 128], strides = [1, 1]} : vector<8x384xf32> to vector<8x128xf32>
    %160 = vector.extract_strided_slice %150 {offsets = [0, 128], sizes = [8, 128], strides = [1, 1]} : vector<8x384xf32> to vector<8x128xf32>
    %161 = arith.addf %159, %160 : vector<8x128xf32>
    %162 = arith.negf %161 : vector<8x128xf32>
    %163 = math.exp %162 : vector<8x128xf32>
    %cst_56 = arith.constant 1.000000e+00 : f32
    %164 = vector.broadcast %cst_56 : f32 to vector<8x128xf32>
    %165 = arith.addf %164, %163 : vector<8x128xf32>
    %166 = arith.divf %164, %165 : vector<8x128xf32>
    %167 = vector.extract_strided_slice %147 {offsets = [0, 256], sizes = [8, 128], strides = [1, 1]} : vector<8x384xf32> to vector<8x128xf32>
    %168 = vector.extract_strided_slice %150 {offsets = [0, 256], sizes = [8, 128], strides = [1, 1]} : vector<8x384xf32> to vector<8x128xf32>
    %169 = arith.mulf %158, %168 : vector<8x128xf32>
    %170 = arith.addf %167, %169 : vector<8x128xf32>
    %171 = math.tanh %170 : vector<8x128xf32>
    %cst_57 = arith.constant 1.000000e+00 : f32
    %172 = vector.broadcast %cst_57 : f32 to vector<8x128xf32>
    %173 = arith.subf %172, %166 : vector<8x128xf32>
    %174 = arith.mulf %173, %171 : vector<8x128xf32>
    %175 = arith.mulf %166, %143 : vector<8x128xf32>
    %176 = arith.addf %174, %175 : vector<8x128xf32>
    %c32_58 = arith.constant 32 : index
    %c0_59 = arith.constant 0 : index
    %177 = vector.load %arg18[%c32_58, %c0_59] : memref<64x128xf32, #tpu.memory_space<vmem>>, vector<8x128xf32>
    tpu.vector_store %arg18[%c32_58, %c0_59], %176 {strides = array<i32>} : memref<64x128xf32, #tpu.memory_space<vmem>>, vector<8x128xf32>,
    %c40_60 = arith.constant 40 : index
    %c0_61 = arith.constant 0 : index
    %178 = vector.load %arg16[%c40_60, %c0_61] : memref<64x384xf32, #tpu.memory_space<vmem>>, vector<8x384xf32>
    %c16_62 = arith.constant 16 : index
    %c0_63 = arith.constant 0 : index
    %179 = vector.load %arg17[%c16_62, %c0_63] : memref<64x384xf32, #tpu.memory_space<vmem>>, vector<8x384xf32>
    %180 = arith.addf %178, %179 : vector<8x384xf32>
    %cst_64 = arith.constant dense<0.000000e+00> : vector<8x384xf32>
    %181 = tpu.matmul %176, %10, %cst_64 {dimension_numbers = #tpu.dot_dimension_numbers<[1], [0], [0], [1], [0, 0, 1, 1], [], []>} : vector<8x128xf32>, vector<128x384xf32>, vector<8x384xf32> -> vector<8x384xf32>
    %182 = vector.broadcast %11 : vector<1x384xf32> to vector<8x384xf32>
    %183 = arith.addf %181, %182 : vector<8x384xf32>
    %184 = vector.extract_strided_slice %180 {offsets = [0, 0], sizes = [8, 128], strides = [1, 1]} : vector<8x384xf32> to vector<8x128xf32>
    %185 = vector.extract_strided_slice %183 {offsets = [0, 0], sizes = [8, 128], strides = [1, 1]} : vector<8x384xf32> to vector<8x128xf32>
    %186 = arith.addf %184, %185 : vector<8x128xf32>
    %187 = arith.negf %186 : vector<8x128xf32>
    %188 = math.exp %187 : vector<8x128xf32>
    %cst_65 = arith.constant 1.000000e+00 : f32
    %189 = vector.broadcast %cst_65 : f32 to vector<8x128xf32>
    %190 = arith.addf %189, %188 : vector<8x128xf32>
    %191 = arith.divf %189, %190 : vector<8x128xf32>
    %192 = vector.extract_strided_slice %180 {offsets = [0, 128], sizes = [8, 128], strides = [1, 1]} : vector<8x384xf32> to vector<8x128xf32>
    %193 = vector.extract_strided_slice %183 {offsets = [0, 128], sizes = [8, 128], strides = [1, 1]} : vector<8x384xf32> to vector<8x128xf32>
    %194 = arith.addf %192, %193 : vector<8x128xf32>
    %195 = arith.negf %194 : vector<8x128xf32>
    %196 = math.exp %195 : vector<8x128xf32>
    %cst_66 = arith.constant 1.000000e+00 : f32
    %197 = vector.broadcast %cst_66 : f32 to vector<8x128xf32>
    %198 = arith.addf %197, %196 : vector<8x128xf32>
    %199 = arith.divf %197, %198 : vector<8x128xf32>
    %200 = vector.extract_strided_slice %180 {offsets = [0, 256], sizes = [8, 128], strides = [1, 1]} : vector<8x384xf32> to vector<8x128xf32>
    %201 = vector.extract_strided_slice %183 {offsets = [0, 256], sizes = [8, 128], strides = [1, 1]} : vector<8x384xf32> to vector<8x128xf32>
    %202 = arith.mulf %191, %201 : vector<8x128xf32>
    %203 = arith.addf %200, %202 : vector<8x128xf32>
    %204 = math.tanh %203 : vector<8x128xf32>
    %cst_67 = arith.constant 1.000000e+00 : f32
    %205 = vector.broadcast %cst_67 : f32 to vector<8x128xf32>
    %206 = arith.subf %205, %199 : vector<8x128xf32>
    %207 = arith.mulf %206, %204 : vector<8x128xf32>
    %208 = arith.mulf %199, %176 : vector<8x128xf32>
    %209 = arith.addf %207, %208 : vector<8x128xf32>
    %c40_68 = arith.constant 40 : index
    %c0_69 = arith.constant 0 : index
    %210 = vector.load %arg18[%c40_68, %c0_69] : memref<64x128xf32, #tpu.memory_space<vmem>>, vector<8x128xf32>
    tpu.vector_store %arg18[%c40_68, %c0_69], %209 {strides = array<i32>} : memref<64x128xf32, #tpu.memory_space<vmem>>, vector<8x128xf32>,
    %c48_70 = arith.constant 48 : index
    %c0_71 = arith.constant 0 : index
    %211 = vector.load %arg16[%c48_70, %c0_71] : memref<64x384xf32, #tpu.memory_space<vmem>>, vector<8x384xf32>
    %c8_72 = arith.constant 8 : index
    %c0_73 = arith.constant 0 : index
    %212 = vector.load %arg17[%c8_72, %c0_73] : memref<64x384xf32, #tpu.memory_space<vmem>>, vector<8x384xf32>
    %213 = arith.addf %211, %212 : vector<8x384xf32>
    %cst_74 = arith.constant dense<0.000000e+00> : vector<8x384xf32>
    %214 = tpu.matmul %209, %10, %cst_74 {dimension_numbers = #tpu.dot_dimension_numbers<[1], [0], [0], [1], [0, 0, 1, 1], [], []>} : vector<8x128xf32>, vector<128x384xf32>, vector<8x384xf32> -> vector<8x384xf32>
    %215 = vector.broadcast %11 : vector<1x384xf32> to vector<8x384xf32>
    %216 = arith.addf %214, %215 : vector<8x384xf32>
    %217 = vector.extract_strided_slice %213 {offsets = [0, 0], sizes = [8, 128], strides = [1, 1]} : vector<8x384xf32> to vector<8x128xf32>
    %218 = vector.extract_strided_slice %216 {offsets = [0, 0], sizes = [8, 128], strides = [1, 1]} : vector<8x384xf32> to vector<8x128xf32>
    %219 = arith.addf %217, %218 : vector<8x128xf32>
    %220 = arith.negf %219 : vector<8x128xf32>
    %221 = math.exp %220 : vector<8x128xf32>
    %cst_75 = arith.constant 1.000000e+00 : f32
    %222 = vector.broadcast %cst_75 : f32 to vector<8x128xf32>
    %223 = arith.addf %222, %221 : vector<8x128xf32>
    %224 = arith.divf %222, %223 : vector<8x128xf32>
    %225 = vector.extract_strided_slice %213 {offsets = [0, 128], sizes = [8, 128], strides = [1, 1]} : vector<8x384xf32> to vector<8x128xf32>
    %226 = vector.extract_strided_slice %216 {offsets = [0, 128], sizes = [8, 128], strides = [1, 1]} : vector<8x384xf32> to vector<8x128xf32>
    %227 = arith.addf %225, %226 : vector<8x128xf32>
    %228 = arith.negf %227 : vector<8x128xf32>
    %229 = math.exp %228 : vector<8x128xf32>
    %cst_76 = arith.constant 1.000000e+00 : f32
    %230 = vector.broadcast %cst_76 : f32 to vector<8x128xf32>
    %231 = arith.addf %230, %229 : vector<8x128xf32>
    %232 = arith.divf %230, %231 : vector<8x128xf32>
    %233 = vector.extract_strided_slice %213 {offsets = [0, 256], sizes = [8, 128], strides = [1, 1]} : vector<8x384xf32> to vector<8x128xf32>
    %234 = vector.extract_strided_slice %216 {offsets = [0, 256], sizes = [8, 128], strides = [1, 1]} : vector<8x384xf32> to vector<8x128xf32>
    %235 = arith.mulf %224, %234 : vector<8x128xf32>
    %236 = arith.addf %233, %235 : vector<8x128xf32>
    %237 = math.tanh %236 : vector<8x128xf32>
    %cst_77 = arith.constant 1.000000e+00 : f32
    %238 = vector.broadcast %cst_77 : f32 to vector<8x128xf32>
    %239 = arith.subf %238, %232 : vector<8x128xf32>
    %240 = arith.mulf %239, %237 : vector<8x128xf32>
    %241 = arith.mulf %232, %209 : vector<8x128xf32>
    %242 = arith.addf %240, %241 : vector<8x128xf32>
    %c48_78 = arith.constant 48 : index
    %c0_79 = arith.constant 0 : index
    %243 = vector.load %arg18[%c48_78, %c0_79] : memref<64x128xf32, #tpu.memory_space<vmem>>, vector<8x128xf32>
    tpu.vector_store %arg18[%c48_78, %c0_79], %242 {strides = array<i32>} : memref<64x128xf32, #tpu.memory_space<vmem>>, vector<8x128xf32>,
    %c56_80 = arith.constant 56 : index
    %c0_81 = arith.constant 0 : index
    %244 = vector.load %arg16[%c56_80, %c0_81] : memref<64x384xf32, #tpu.memory_space<vmem>>, vector<8x384xf32>
    %c0_82 = arith.constant 0 : index
    %c0_83 = arith.constant 0 : index
    %245 = vector.load %arg17[%c0_82, %c0_83] : memref<64x384xf32, #tpu.memory_space<vmem>>, vector<8x384xf32>
    %246 = arith.addf %244, %245 : vector<8x384xf32>
    %cst_84 = arith.constant dense<0.000000e+00> : vector<8x384xf32>
    %247 = tpu.matmul %242, %10, %cst_84 {dimension_numbers = #tpu.dot_dimension_numbers<[1], [0], [0], [1], [0, 0, 1, 1], [], []>} : vector<8x128xf32>, vector<128x384xf32>, vector<8x384xf32> -> vector<8x384xf32>
    %248 = vector.broadcast %11 : vector<1x384xf32> to vector<8x384xf32>
    %249 = arith.addf %247, %248 : vector<8x384xf32>
    %250 = vector.extract_strided_slice %246 {offsets = [0, 0], sizes = [8, 128], strides = [1, 1]} : vector<8x384xf32> to vector<8x128xf32>
    %251 = vector.extract_strided_slice %249 {offsets = [0, 0], sizes = [8, 128], strides = [1, 1]} : vector<8x384xf32> to vector<8x128xf32>
    %252 = arith.addf %250, %251 : vector<8x128xf32>
    %253 = arith.negf %252 : vector<8x128xf32>
    %254 = math.exp %253 : vector<8x128xf32>
    %cst_85 = arith.constant 1.000000e+00 : f32
    %255 = vector.broadcast %cst_85 : f32 to vector<8x128xf32>
    %256 = arith.addf %255, %254 : vector<8x128xf32>
    %257 = arith.divf %255, %256 : vector<8x128xf32>
    %258 = vector.extract_strided_slice %246 {offsets = [0, 128], sizes = [8, 128], strides = [1, 1]} : vector<8x384xf32> to vector<8x128xf32>
    %259 = vector.extract_strided_slice %249 {offsets = [0, 128], sizes = [8, 128], strides = [1, 1]} : vector<8x384xf32> to vector<8x128xf32>
    %260 = arith.addf %258, %259 : vector<8x128xf32>
    %261 = arith.negf %260 : vector<8x128xf32>
    %262 = math.exp %261 : vector<8x128xf32>
    %cst_86 = arith.constant 1.000000e+00 : f32
    %263 = vector.broadcast %cst_86 : f32 to vector<8x128xf32>
    %264 = arith.addf %263, %262 : vector<8x128xf32>
    %265 = arith.divf %263, %264 : vector<8x128xf32>
    %266 = vector.extract_strided_slice %246 {offsets = [0, 256], sizes = [8, 128], strides = [1, 1]} : vector<8x384xf32> to vector<8x128xf32>
    %267 = vector.extract_strided_slice %249 {offsets = [0, 256], sizes = [8, 128], strides = [1, 1]} : vector<8x384xf32> to vector<8x128xf32>
    %268 = arith.mulf %257, %267 : vector<8x128xf32>
    %269 = arith.addf %266, %268 : vector<8x128xf32>
    %270 = math.tanh %269 : vector<8x128xf32>
    %cst_87 = arith.constant 1.000000e+00 : f32
    %271 = vector.broadcast %cst_87 : f32 to vector<8x128xf32>
    %272 = arith.subf %271, %265 : vector<8x128xf32>
    %273 = arith.mulf %272, %270 : vector<8x128xf32>
    %274 = arith.mulf %265, %242 : vector<8x128xf32>
    %275 = arith.addf %273, %274 : vector<8x128xf32>
    %c56_88 = arith.constant 56 : index
    %c0_89 = arith.constant 0 : index
    %276 = vector.load %arg18[%c56_88, %c0_89] : memref<64x128xf32, #tpu.memory_space<vmem>>, vector<8x128xf32>
    tpu.vector_store %arg18[%c56_88, %c0_89], %275 {strides = array<i32>} : memref<64x128xf32, #tpu.memory_space<vmem>>, vector<8x128xf32>,
    %c0_90 = arith.constant 0 : index
    %c0_91 = arith.constant 0 : index
    %277 = vector.load %arg18[%c0_90, %c0_91] : memref<64x128xf32, #tpu.memory_space<vmem>>, vector<64x128xf32>
    %c0_92 = arith.constant 0 : index
    %c0_93 = arith.constant 0 : index
    %278 = vector.load %arg6[%c0_92, %c0_93] : memref<128x384xf32, #tpu.memory_space<vmem>>, vector<128x384xf32>
    %cst_94 = arith.constant dense<0.000000e+00> : vector<64x384xf32>
    %279 = tpu.matmul %277, %278, %cst_94 {dimension_numbers = #tpu.dot_dimension_numbers<[1], [0], [0], [1], [0, 0, 1, 1], [], []>} : vector<64x128xf32>, vector<128x384xf32>, vector<64x384xf32> -> vector<64x384xf32>
    %c0_95 = arith.constant 0 : index
    %c0_96 = arith.constant 0 : index
    %280 = vector.load %arg9[%c0_95, %c0_96] : memref<1x384xf32, #tpu.memory_space<vmem>>, vector<1x384xf32>
    %281 = vector.broadcast %280 : vector<1x384xf32> to vector<64x384xf32>
    %282 = arith.addf %279, %281 : vector<64x384xf32>
    %c0_97 = arith.constant 0 : index
    %c0_98 = arith.constant 0 : index
    %283 = vector.load %arg16[%c0_97, %c0_98] : memref<64x384xf32, #tpu.memory_space<vmem>>, vector<64x384xf32>
    tpu.vector_store %arg16[%c0_97, %c0_98], %282 {strides = array<i32>} : memref<64x384xf32, #tpu.memory_space<vmem>>, vector<64x384xf32>,
    %c0_99 = arith.constant 0 : index
    %c0_100 = arith.constant 0 : index
    %284 = vector.load %arg7[%c0_99, %c0_100] : memref<128x384xf32, #tpu.memory_space<vmem>>, vector<128x384xf32>
    %cst_101 = arith.constant dense<0.000000e+00> : vector<64x384xf32>
    %285 = tpu.matmul %277, %284, %cst_101 {dimension_numbers = #tpu.dot_dimension_numbers<[1], [0], [0], [1], [0, 0, 1, 1], [], []>} : vector<64x128xf32>, vector<128x384xf32>, vector<64x384xf32> -> vector<64x384xf32>
    %c0_102 = arith.constant 0 : index
    %c0_103 = arith.constant 0 : index
    %286 = vector.load %arg17[%c0_102, %c0_103] : memref<64x384xf32, #tpu.memory_space<vmem>>, vector<64x384xf32>
    tpu.vector_store %arg17[%c0_102, %c0_103], %285 {strides = array<i32>} : memref<64x384xf32, #tpu.memory_space<vmem>>, vector<64x384xf32>,
    %c0_104 = arith.constant 0 : index
    %c0_105 = arith.constant 0 : index
    %287 = vector.load %arg8[%c0_104, %c0_105] : memref<128x384xf32, #tpu.memory_space<vmem>>, vector<128x384xf32>
    %c0_106 = arith.constant 0 : index
    %c0_107 = arith.constant 0 : index
    %288 = vector.load %arg10[%c0_106, %c0_107] : memref<1x384xf32, #tpu.memory_space<vmem>>, vector<1x384xf32>
    %cst_108 = arith.constant 0.000000e+00 : f32
    %289 = vector.broadcast %cst_108 : f32 to vector<8x128xf32>
    %cst_109 = arith.constant 0.000000e+00 : f32
    %290 = vector.broadcast %cst_109 : f32 to vector<8x128xf32>
    %c0_110 = arith.constant 0 : index
    %c0_111 = arith.constant 0 : index
    %291 = vector.load %arg16[%c0_110, %c0_111] : memref<64x384xf32, #tpu.memory_space<vmem>>, vector<8x384xf32>
    %c56_112 = arith.constant 56 : index
    %c0_113 = arith.constant 0 : index
    %292 = vector.load %arg17[%c56_112, %c0_113] : memref<64x384xf32, #tpu.memory_space<vmem>>, vector<8x384xf32>
    %293 = arith.addf %291, %292 : vector<8x384xf32>
    %cst_114 = arith.constant dense<0.000000e+00> : vector<8x384xf32>
    %294 = tpu.matmul %289, %287, %cst_114 {dimension_numbers = #tpu.dot_dimension_numbers<[1], [0], [0], [1], [0, 0, 1, 1], [], []>} : vector<8x128xf32>, vector<128x384xf32>, vector<8x384xf32> -> vector<8x384xf32>
    %295 = vector.broadcast %288 : vector<1x384xf32> to vector<8x384xf32>
    %296 = arith.addf %294, %295 : vector<8x384xf32>
    %297 = vector.extract_strided_slice %293 {offsets = [0, 0], sizes = [8, 128], strides = [1, 1]} : vector<8x384xf32> to vector<8x128xf32>
    %298 = vector.extract_strided_slice %296 {offsets = [0, 0], sizes = [8, 128], strides = [1, 1]} : vector<8x384xf32> to vector<8x128xf32>
    %299 = arith.addf %297, %298 : vector<8x128xf32>
    %300 = arith.negf %299 : vector<8x128xf32>
    %301 = math.exp %300 : vector<8x128xf32>
    %cst_115 = arith.constant 1.000000e+00 : f32
    %302 = vector.broadcast %cst_115 : f32 to vector<8x128xf32>
    %303 = arith.addf %302, %301 : vector<8x128xf32>
    %304 = arith.divf %302, %303 : vector<8x128xf32>
    %305 = vector.extract_strided_slice %293 {offsets = [0, 128], sizes = [8, 128], strides = [1, 1]} : vector<8x384xf32> to vector<8x128xf32>
    %306 = vector.extract_strided_slice %296 {offsets = [0, 128], sizes = [8, 128], strides = [1, 1]} : vector<8x384xf32> to vector<8x128xf32>
    %307 = arith.addf %305, %306 : vector<8x128xf32>
    %308 = arith.negf %307 : vector<8x128xf32>
    %309 = math.exp %308 : vector<8x128xf32>
    %cst_116 = arith.constant 1.000000e+00 : f32
    %310 = vector.broadcast %cst_116 : f32 to vector<8x128xf32>
    %311 = arith.addf %310, %309 : vector<8x128xf32>
    %312 = arith.divf %310, %311 : vector<8x128xf32>
    %313 = vector.extract_strided_slice %293 {offsets = [0, 256], sizes = [8, 128], strides = [1, 1]} : vector<8x384xf32> to vector<8x128xf32>
    %314 = vector.extract_strided_slice %296 {offsets = [0, 256], sizes = [8, 128], strides = [1, 1]} : vector<8x384xf32> to vector<8x128xf32>
    %315 = arith.mulf %304, %314 : vector<8x128xf32>
    %316 = arith.addf %313, %315 : vector<8x128xf32>
    %317 = math.tanh %316 : vector<8x128xf32>
    %cst_117 = arith.constant 1.000000e+00 : f32
    %318 = vector.broadcast %cst_117 : f32 to vector<8x128xf32>
    %319 = arith.subf %318, %312 : vector<8x128xf32>
    %320 = arith.mulf %319, %317 : vector<8x128xf32>
    %321 = arith.mulf %312, %289 : vector<8x128xf32>
    %322 = arith.addf %320, %321 : vector<8x128xf32>
    %323 = arith.addf %290, %322 : vector<8x128xf32>
    %c8_118 = arith.constant 8 : index
    %c0_119 = arith.constant 0 : index
    %324 = vector.load %arg16[%c8_118, %c0_119] : memref<64x384xf32, #tpu.memory_space<vmem>>, vector<8x384xf32>
    %c48_120 = arith.constant 48 : index
    %c0_121 = arith.constant 0 : index
    %325 = vector.load %arg17[%c48_120, %c0_121] : memref<64x384xf32, #tpu.memory_space<vmem>>, vector<8x384xf32>
    %326 = arith.addf %324, %325 : vector<8x384xf32>
    %cst_122 = arith.constant dense<0.000000e+00> : vector<8x384xf32>
    %327 = tpu.matmul %322, %287, %cst_122 {dimension_numbers = #tpu.dot_dimension_numbers<[1], [0], [0], [1], [0, 0, 1, 1], [], []>} : vector<8x128xf32>, vector<128x384xf32>, vector<8x384xf32> -> vector<8x384xf32>
    %328 = vector.broadcast %288 : vector<1x384xf32> to vector<8x384xf32>
    %329 = arith.addf %327, %328 : vector<8x384xf32>
    %330 = vector.extract_strided_slice %326 {offsets = [0, 0], sizes = [8, 128], strides = [1, 1]} : vector<8x384xf32> to vector<8x128xf32>
    %331 = vector.extract_strided_slice %329 {offsets = [0, 0], sizes = [8, 128], strides = [1, 1]} : vector<8x384xf32> to vector<8x128xf32>
    %332 = arith.addf %330, %331 : vector<8x128xf32>
    %333 = arith.negf %332 : vector<8x128xf32>
    %334 = math.exp %333 : vector<8x128xf32>
    %cst_123 = arith.constant 1.000000e+00 : f32
    %335 = vector.broadcast %cst_123 : f32 to vector<8x128xf32>
    %336 = arith.addf %335, %334 : vector<8x128xf32>
    %337 = arith.divf %335, %336 : vector<8x128xf32>
    %338 = vector.extract_strided_slice %326 {offsets = [0, 128], sizes = [8, 128], strides = [1, 1]} : vector<8x384xf32> to vector<8x128xf32>
    %339 = vector.extract_strided_slice %329 {offsets = [0, 128], sizes = [8, 128], strides = [1, 1]} : vector<8x384xf32> to vector<8x128xf32>
    %340 = arith.addf %338, %339 : vector<8x128xf32>
    %341 = arith.negf %340 : vector<8x128xf32>
    %342 = math.exp %341 : vector<8x128xf32>
    %cst_124 = arith.constant 1.000000e+00 : f32
    %343 = vector.broadcast %cst_124 : f32 to vector<8x128xf32>
    %344 = arith.addf %343, %342 : vector<8x128xf32>
    %345 = arith.divf %343, %344 : vector<8x128xf32>
    %346 = vector.extract_strided_slice %326 {offsets = [0, 256], sizes = [8, 128], strides = [1, 1]} : vector<8x384xf32> to vector<8x128xf32>
    %347 = vector.extract_strided_slice %329 {offsets = [0, 256], sizes = [8, 128], strides = [1, 1]} : vector<8x384xf32> to vector<8x128xf32>
    %348 = arith.mulf %337, %347 : vector<8x128xf32>
    %349 = arith.addf %346, %348 : vector<8x128xf32>
    %350 = math.tanh %349 : vector<8x128xf32>
    %cst_125 = arith.constant 1.000000e+00 : f32
    %351 = vector.broadcast %cst_125 : f32 to vector<8x128xf32>
    %352 = arith.subf %351, %345 : vector<8x128xf32>
    %353 = arith.mulf %352, %350 : vector<8x128xf32>
    %354 = arith.mulf %345, %322 : vector<8x128xf32>
    %355 = arith.addf %353, %354 : vector<8x128xf32>
    %356 = arith.addf %323, %355 : vector<8x128xf32>
    %c16_126 = arith.constant 16 : index
    %c0_127 = arith.constant 0 : index
    %357 = vector.load %arg16[%c16_126, %c0_127] : memref<64x384xf32, #tpu.memory_space<vmem>>, vector<8x384xf32>
    %c40_128 = arith.constant 40 : index
    %c0_129 = arith.constant 0 : index
    %358 = vector.load %arg17[%c40_128, %c0_129] : memref<64x384xf32, #tpu.memory_space<vmem>>, vector<8x384xf32>
    %359 = arith.addf %357, %358 : vector<8x384xf32>
    %cst_130 = arith.constant dense<0.000000e+00> : vector<8x384xf32>
    %360 = tpu.matmul %355, %287, %cst_130 {dimension_numbers = #tpu.dot_dimension_numbers<[1], [0], [0], [1], [0, 0, 1, 1], [], []>} : vector<8x128xf32>, vector<128x384xf32>, vector<8x384xf32> -> vector<8x384xf32>
    %361 = vector.broadcast %288 : vector<1x384xf32> to vector<8x384xf32>
    %362 = arith.addf %360, %361 : vector<8x384xf32>
    %363 = vector.extract_strided_slice %359 {offsets = [0, 0], sizes = [8, 128], strides = [1, 1]} : vector<8x384xf32> to vector<8x128xf32>
    %364 = vector.extract_strided_slice %362 {offsets = [0, 0], sizes = [8, 128], strides = [1, 1]} : vector<8x384xf32> to vector<8x128xf32>
    %365 = arith.addf %363, %364 : vector<8x128xf32>
    %366 = arith.negf %365 : vector<8x128xf32>
    %367 = math.exp %366 : vector<8x128xf32>
    %cst_131 = arith.constant 1.000000e+00 : f32
    %368 = vector.broadcast %cst_131 : f32 to vector<8x128xf32>
    %369 = arith.addf %368, %367 : vector<8x128xf32>
    %370 = arith.divf %368, %369 : vector<8x128xf32>
    %371 = vector.extract_strided_slice %359 {offsets = [0, 128], sizes = [8, 128], strides = [1, 1]} : vector<8x384xf32> to vector<8x128xf32>
    %372 = vector.extract_strided_slice %362 {offsets = [0, 128], sizes = [8, 128], strides = [1, 1]} : vector<8x384xf32> to vector<8x128xf32>
    %373 = arith.addf %371, %372 : vector<8x128xf32>
    %374 = arith.negf %373 : vector<8x128xf32>
    %375 = math.exp %374 : vector<8x128xf32>
    %cst_132 = arith.constant 1.000000e+00 : f32
    %376 = vector.broadcast %cst_132 : f32 to vector<8x128xf32>
    %377 = arith.addf %376, %375 : vector<8x128xf32>
    %378 = arith.divf %376, %377 : vector<8x128xf32>
    %379 = vector.extract_strided_slice %359 {offsets = [0, 256], sizes = [8, 128], strides = [1, 1]} : vector<8x384xf32> to vector<8x128xf32>
    %380 = vector.extract_strided_slice %362 {offsets = [0, 256], sizes = [8, 128], strides = [1, 1]} : vector<8x384xf32> to vector<8x128xf32>
    %381 = arith.mulf %370, %380 : vector<8x128xf32>
    %382 = arith.addf %379, %381 : vector<8x128xf32>
    %383 = math.tanh %382 : vector<8x128xf32>
    %cst_133 = arith.constant 1.000000e+00 : f32
    %384 = vector.broadcast %cst_133 : f32 to vector<8x128xf32>
    %385 = arith.subf %384, %378 : vector<8x128xf32>
    %386 = arith.mulf %385, %383 : vector<8x128xf32>
    %387 = arith.mulf %378, %355 : vector<8x128xf32>
    %388 = arith.addf %386, %387 : vector<8x128xf32>
    %389 = arith.addf %356, %388 : vector<8x128xf32>
    %c24_134 = arith.constant 24 : index
    %c0_135 = arith.constant 0 : index
    %390 = vector.load %arg16[%c24_134, %c0_135] : memref<64x384xf32, #tpu.memory_space<vmem>>, vector<8x384xf32>
    %c32_136 = arith.constant 32 : index
    %c0_137 = arith.constant 0 : index
    %391 = vector.load %arg17[%c32_136, %c0_137] : memref<64x384xf32, #tpu.memory_space<vmem>>, vector<8x384xf32>
    %392 = arith.addf %390, %391 : vector<8x384xf32>
    %cst_138 = arith.constant dense<0.000000e+00> : vector<8x384xf32>
    %393 = tpu.matmul %388, %287, %cst_138 {dimension_numbers = #tpu.dot_dimension_numbers<[1], [0], [0], [1], [0, 0, 1, 1], [], []>} : vector<8x128xf32>, vector<128x384xf32>, vector<8x384xf32> -> vector<8x384xf32>
    %394 = vector.broadcast %288 : vector<1x384xf32> to vector<8x384xf32>
    %395 = arith.addf %393, %394 : vector<8x384xf32>
    %396 = vector.extract_strided_slice %392 {offsets = [0, 0], sizes = [8, 128], strides = [1, 1]} : vector<8x384xf32> to vector<8x128xf32>
    %397 = vector.extract_strided_slice %395 {offsets = [0, 0], sizes = [8, 128], strides = [1, 1]} : vector<8x384xf32> to vector<8x128xf32>
    %398 = arith.addf %396, %397 : vector<8x128xf32>
    %399 = arith.negf %398 : vector<8x128xf32>
    %400 = math.exp %399 : vector<8x128xf32>
    %cst_139 = arith.constant 1.000000e+00 : f32
    %401 = vector.broadcast %cst_139 : f32 to vector<8x128xf32>
    %402 = arith.addf %401, %400 : vector<8x128xf32>
    %403 = arith.divf %401, %402 : vector<8x128xf32>
    %404 = vector.extract_strided_slice %392 {offsets = [0, 128], sizes = [8, 128], strides = [1, 1]} : vector<8x384xf32> to vector<8x128xf32>
    %405 = vector.extract_strided_slice %395 {offsets = [0, 128], sizes = [8, 128], strides = [1, 1]} : vector<8x384xf32> to vector<8x128xf32>
    %406 = arith.addf %404, %405 : vector<8x128xf32>
    %407 = arith.negf %406 : vector<8x128xf32>
    %408 = math.exp %407 : vector<8x128xf32>
    %cst_140 = arith.constant 1.000000e+00 : f32
    %409 = vector.broadcast %cst_140 : f32 to vector<8x128xf32>
    %410 = arith.addf %409, %408 : vector<8x128xf32>
    %411 = arith.divf %409, %410 : vector<8x128xf32>
    %412 = vector.extract_strided_slice %392 {offsets = [0, 256], sizes = [8, 128], strides = [1, 1]} : vector<8x384xf32> to vector<8x128xf32>
    %413 = vector.extract_strided_slice %395 {offsets = [0, 256], sizes = [8, 128], strides = [1, 1]} : vector<8x384xf32> to vector<8x128xf32>
    %414 = arith.mulf %403, %413 : vector<8x128xf32>
    %415 = arith.addf %412, %414 : vector<8x128xf32>
    %416 = math.tanh %415 : vector<8x128xf32>
    %cst_141 = arith.constant 1.000000e+00 : f32
    %417 = vector.broadcast %cst_141 : f32 to vector<8x128xf32>
    %418 = arith.subf %417, %411 : vector<8x128xf32>
    %419 = arith.mulf %418, %416 : vector<8x128xf32>
    %420 = arith.mulf %411, %388 : vector<8x128xf32>
    %421 = arith.addf %419, %420 : vector<8x128xf32>
    %422 = arith.addf %389, %421 : vector<8x128xf32>
    %c32_142 = arith.constant 32 : index
    %c0_143 = arith.constant 0 : index
    %423 = vector.load %arg16[%c32_142, %c0_143] : memref<64x384xf32, #tpu.memory_space<vmem>>, vector<8x384xf32>
    %c24_144 = arith.constant 24 : index
    %c0_145 = arith.constant 0 : index
    %424 = vector.load %arg17[%c24_144, %c0_145] : memref<64x384xf32, #tpu.memory_space<vmem>>, vector<8x384xf32>
    %425 = arith.addf %423, %424 : vector<8x384xf32>
    %cst_146 = arith.constant dense<0.000000e+00> : vector<8x384xf32>
    %426 = tpu.matmul %421, %287, %cst_146 {dimension_numbers = #tpu.dot_dimension_numbers<[1], [0], [0], [1], [0, 0, 1, 1], [], []>} : vector<8x128xf32>, vector<128x384xf32>, vector<8x384xf32> -> vector<8x384xf32>
    %427 = vector.broadcast %288 : vector<1x384xf32> to vector<8x384xf32>
    %428 = arith.addf %426, %427 : vector<8x384xf32>
    %429 = vector.extract_strided_slice %425 {offsets = [0, 0], sizes = [8, 128], strides = [1, 1]} : vector<8x384xf32> to vector<8x128xf32>
    %430 = vector.extract_strided_slice %428 {offsets = [0, 0], sizes = [8, 128], strides = [1, 1]} : vector<8x384xf32> to vector<8x128xf32>
    %431 = arith.addf %429, %430 : vector<8x128xf32>
    %432 = arith.negf %431 : vector<8x128xf32>
    %433 = math.exp %432 : vector<8x128xf32>
    %cst_147 = arith.constant 1.000000e+00 : f32
    %434 = vector.broadcast %cst_147 : f32 to vector<8x128xf32>
    %435 = arith.addf %434, %433 : vector<8x128xf32>
    %436 = arith.divf %434, %435 : vector<8x128xf32>
    %437 = vector.extract_strided_slice %425 {offsets = [0, 128], sizes = [8, 128], strides = [1, 1]} : vector<8x384xf32> to vector<8x128xf32>
    %438 = vector.extract_strided_slice %428 {offsets = [0, 128], sizes = [8, 128], strides = [1, 1]} : vector<8x384xf32> to vector<8x128xf32>
    %439 = arith.addf %437, %438 : vector<8x128xf32>
    %440 = arith.negf %439 : vector<8x128xf32>
    %441 = math.exp %440 : vector<8x128xf32>
    %cst_148 = arith.constant 1.000000e+00 : f32
    %442 = vector.broadcast %cst_148 : f32 to vector<8x128xf32>
    %443 = arith.addf %442, %441 : vector<8x128xf32>
    %444 = arith.divf %442, %443 : vector<8x128xf32>
    %445 = vector.extract_strided_slice %425 {offsets = [0, 256], sizes = [8, 128], strides = [1, 1]} : vector<8x384xf32> to vector<8x128xf32>
    %446 = vector.extract_strided_slice %428 {offsets = [0, 256], sizes = [8, 128], strides = [1, 1]} : vector<8x384xf32> to vector<8x128xf32>
    %447 = arith.mulf %436, %446 : vector<8x128xf32>
    %448 = arith.addf %445, %447 : vector<8x128xf32>
    %449 = math.tanh %448 : vector<8x128xf32>
    %cst_149 = arith.constant 1.000000e+00 : f32
    %450 = vector.broadcast %cst_149 : f32 to vector<8x128xf32>
    %451 = arith.subf %450, %444 : vector<8x128xf32>
    %452 = arith.mulf %451, %449 : vector<8x128xf32>
    %453 = arith.mulf %444, %421 : vector<8x128xf32>
    %454 = arith.addf %452, %453 : vector<8x128xf32>
    %455 = arith.addf %422, %454 : vector<8x128xf32>
    %c40_150 = arith.constant 40 : index
    %c0_151 = arith.constant 0 : index
    %456 = vector.load %arg16[%c40_150, %c0_151] : memref<64x384xf32, #tpu.memory_space<vmem>>, vector<8x384xf32>
    %c16_152 = arith.constant 16 : index
    %c0_153 = arith.constant 0 : index
    %457 = vector.load %arg17[%c16_152, %c0_153] : memref<64x384xf32, #tpu.memory_space<vmem>>, vector<8x384xf32>
    %458 = arith.addf %456, %457 : vector<8x384xf32>
    %cst_154 = arith.constant dense<0.000000e+00> : vector<8x384xf32>
    %459 = tpu.matmul %454, %287, %cst_154 {dimension_numbers = #tpu.dot_dimension_numbers<[1], [0], [0], [1], [0, 0, 1, 1], [], []>} : vector<8x128xf32>, vector<128x384xf32>, vector<8x384xf32> -> vector<8x384xf32>
    %460 = vector.broadcast %288 : vector<1x384xf32> to vector<8x384xf32>
    %461 = arith.addf %459, %460 : vector<8x384xf32>
    %462 = vector.extract_strided_slice %458 {offsets = [0, 0], sizes = [8, 128], strides = [1, 1]} : vector<8x384xf32> to vector<8x128xf32>
    %463 = vector.extract_strided_slice %461 {offsets = [0, 0], sizes = [8, 128], strides = [1, 1]} : vector<8x384xf32> to vector<8x128xf32>
    %464 = arith.addf %462, %463 : vector<8x128xf32>
    %465 = arith.negf %464 : vector<8x128xf32>
    %466 = math.exp %465 : vector<8x128xf32>
    %cst_155 = arith.constant 1.000000e+00 : f32
    %467 = vector.broadcast %cst_155 : f32 to vector<8x128xf32>
    %468 = arith.addf %467, %466 : vector<8x128xf32>
    %469 = arith.divf %467, %468 : vector<8x128xf32>
    %470 = vector.extract_strided_slice %458 {offsets = [0, 128], sizes = [8, 128], strides = [1, 1]} : vector<8x384xf32> to vector<8x128xf32>
    %471 = vector.extract_strided_slice %461 {offsets = [0, 128], sizes = [8, 128], strides = [1, 1]} : vector<8x384xf32> to vector<8x128xf32>
    %472 = arith.addf %470, %471 : vector<8x128xf32>
    %473 = arith.negf %472 : vector<8x128xf32>
    %474 = math.exp %473 : vector<8x128xf32>
    %cst_156 = arith.constant 1.000000e+00 : f32
    %475 = vector.broadcast %cst_156 : f32 to vector<8x128xf32>
    %476 = arith.addf %475, %474 : vector<8x128xf32>
    %477 = arith.divf %475, %476 : vector<8x128xf32>
    %478 = vector.extract_strided_slice %458 {offsets = [0, 256], sizes = [8, 128], strides = [1, 1]} : vector<8x384xf32> to vector<8x128xf32>
    %479 = vector.extract_strided_slice %461 {offsets = [0, 256], sizes = [8, 128], strides = [1, 1]} : vector<8x384xf32> to vector<8x128xf32>
    %480 = arith.mulf %469, %479 : vector<8x128xf32>
    %481 = arith.addf %478, %480 : vector<8x128xf32>
    %482 = math.tanh %481 : vector<8x128xf32>
    %cst_157 = arith.constant 1.000000e+00 : f32
    %483 = vector.broadcast %cst_157 : f32 to vector<8x128xf32>
    %484 = arith.subf %483, %477 : vector<8x128xf32>
    %485 = arith.mulf %484, %482 : vector<8x128xf32>
    %486 = arith.mulf %477, %454 : vector<8x128xf32>
    %487 = arith.addf %485, %486 : vector<8x128xf32>
    %488 = arith.addf %455, %487 : vector<8x128xf32>
    %c48_158 = arith.constant 48 : index
    %c0_159 = arith.constant 0 : index
    %489 = vector.load %arg16[%c48_158, %c0_159] : memref<64x384xf32, #tpu.memory_space<vmem>>, vector<8x384xf32>
    %c8_160 = arith.constant 8 : index
    %c0_161 = arith.constant 0 : index
    %490 = vector.load %arg17[%c8_160, %c0_161] : memref<64x384xf32, #tpu.memory_space<vmem>>, vector<8x384xf32>
    %491 = arith.addf %489, %490 : vector<8x384xf32>
    %cst_162 = arith.constant dense<0.000000e+00> : vector<8x384xf32>
    %492 = tpu.matmul %487, %287, %cst_162 {dimension_numbers = #tpu.dot_dimension_numbers<[1], [0], [0], [1], [0, 0, 1, 1], [], []>} : vector<8x128xf32>, vector<128x384xf32>, vector<8x384xf32> -> vector<8x384xf32>
    %493 = vector.broadcast %288 : vector<1x384xf32> to vector<8x384xf32>
    %494 = arith.addf %492, %493 : vector<8x384xf32>
    %495 = vector.extract_strided_slice %491 {offsets = [0, 0], sizes = [8, 128], strides = [1, 1]} : vector<8x384xf32> to vector<8x128xf32>
    %496 = vector.extract_strided_slice %494 {offsets = [0, 0], sizes = [8, 128], strides = [1, 1]} : vector<8x384xf32> to vector<8x128xf32>
    %497 = arith.addf %495, %496 : vector<8x128xf32>
    %498 = arith.negf %497 : vector<8x128xf32>
    %499 = math.exp %498 : vector<8x128xf32>
    %cst_163 = arith.constant 1.000000e+00 : f32
    %500 = vector.broadcast %cst_163 : f32 to vector<8x128xf32>
    %501 = arith.addf %500, %499 : vector<8x128xf32>
    %502 = arith.divf %500, %501 : vector<8x128xf32>
    %503 = vector.extract_strided_slice %491 {offsets = [0, 128], sizes = [8, 128], strides = [1, 1]} : vector<8x384xf32> to vector<8x128xf32>
    %504 = vector.extract_strided_slice %494 {offsets = [0, 128], sizes = [8, 128], strides = [1, 1]} : vector<8x384xf32> to vector<8x128xf32>
    %505 = arith.addf %503, %504 : vector<8x128xf32>
    %506 = arith.negf %505 : vector<8x128xf32>
    %507 = math.exp %506 : vector<8x128xf32>
    %cst_164 = arith.constant 1.000000e+00 : f32
    %508 = vector.broadcast %cst_164 : f32 to vector<8x128xf32>
    %509 = arith.addf %508, %507 : vector<8x128xf32>
    %510 = arith.divf %508, %509 : vector<8x128xf32>
    %511 = vector.extract_strided_slice %491 {offsets = [0, 256], sizes = [8, 128], strides = [1, 1]} : vector<8x384xf32> to vector<8x128xf32>
    %512 = vector.extract_strided_slice %494 {offsets = [0, 256], sizes = [8, 128], strides = [1, 1]} : vector<8x384xf32> to vector<8x128xf32>
    %513 = arith.mulf %502, %512 : vector<8x128xf32>
    %514 = arith.addf %511, %513 : vector<8x128xf32>
    %515 = math.tanh %514 : vector<8x128xf32>
    %cst_165 = arith.constant 1.000000e+00 : f32
    %516 = vector.broadcast %cst_165 : f32 to vector<8x128xf32>
    %517 = arith.subf %516, %510 : vector<8x128xf32>
    %518 = arith.mulf %517, %515 : vector<8x128xf32>
    %519 = arith.mulf %510, %487 : vector<8x128xf32>
    %520 = arith.addf %518, %519 : vector<8x128xf32>
    %521 = arith.addf %488, %520 : vector<8x128xf32>
    %c56_166 = arith.constant 56 : index
    %c0_167 = arith.constant 0 : index
    %522 = vector.load %arg16[%c56_166, %c0_167] : memref<64x384xf32, #tpu.memory_space<vmem>>, vector<8x384xf32>
    %c0_168 = arith.constant 0 : index
    %c0_169 = arith.constant 0 : index
    %523 = vector.load %arg17[%c0_168, %c0_169] : memref<64x384xf32, #tpu.memory_space<vmem>>, vector<8x384xf32>
    %524 = arith.addf %522, %523 : vector<8x384xf32>
    %cst_170 = arith.constant dense<0.000000e+00> : vector<8x384xf32>
    %525 = tpu.matmul %520, %287, %cst_170 {dimension_numbers = #tpu.dot_dimension_numbers<[1], [0], [0], [1], [0, 0, 1, 1], [], []>} : vector<8x128xf32>, vector<128x384xf32>, vector<8x384xf32> -> vector<8x384xf32>
    %526 = vector.broadcast %288 : vector<1x384xf32> to vector<8x384xf32>
    %527 = arith.addf %525, %526 : vector<8x384xf32>
    %528 = vector.extract_strided_slice %524 {offsets = [0, 0], sizes = [8, 128], strides = [1, 1]} : vector<8x384xf32> to vector<8x128xf32>
    %529 = vector.extract_strided_slice %527 {offsets = [0, 0], sizes = [8, 128], strides = [1, 1]} : vector<8x384xf32> to vector<8x128xf32>
    %530 = arith.addf %528, %529 : vector<8x128xf32>
    %531 = arith.negf %530 : vector<8x128xf32>
    %532 = math.exp %531 : vector<8x128xf32>
    %cst_171 = arith.constant 1.000000e+00 : f32
    %533 = vector.broadcast %cst_171 : f32 to vector<8x128xf32>
    %534 = arith.addf %533, %532 : vector<8x128xf32>
    %535 = arith.divf %533, %534 : vector<8x128xf32>
    %536 = vector.extract_strided_slice %524 {offsets = [0, 128], sizes = [8, 128], strides = [1, 1]} : vector<8x384xf32> to vector<8x128xf32>
    %537 = vector.extract_strided_slice %527 {offsets = [0, 128], sizes = [8, 128], strides = [1, 1]} : vector<8x384xf32> to vector<8x128xf32>
    %538 = arith.addf %536, %537 : vector<8x128xf32>
    %539 = arith.negf %538 : vector<8x128xf32>
    %540 = math.exp %539 : vector<8x128xf32>
    %cst_172 = arith.constant 1.000000e+00 : f32
    %541 = vector.broadcast %cst_172 : f32 to vector<8x128xf32>
    %542 = arith.addf %541, %540 : vector<8x128xf32>
    %543 = arith.divf %541, %542 : vector<8x128xf32>
    %544 = vector.extract_strided_slice %524 {offsets = [0, 256], sizes = [8, 128], strides = [1, 1]} : vector<8x384xf32> to vector<8x128xf32>
    %545 = vector.extract_strided_slice %527 {offsets = [0, 256], sizes = [8, 128], strides = [1, 1]} : vector<8x384xf32> to vector<8x128xf32>
    %546 = arith.mulf %535, %545 : vector<8x128xf32>
    %547 = arith.addf %544, %546 : vector<8x128xf32>
    %548 = math.tanh %547 : vector<8x128xf32>
    %cst_173 = arith.constant 1.000000e+00 : f32
    %549 = vector.broadcast %cst_173 : f32 to vector<8x128xf32>
    %550 = arith.subf %549, %543 : vector<8x128xf32>
    %551 = arith.mulf %550, %548 : vector<8x128xf32>
    %552 = arith.mulf %543, %520 : vector<8x128xf32>
    %553 = arith.addf %551, %552 : vector<8x128xf32>
    %554 = arith.addf %521, %553 : vector<8x128xf32>
    %cst_174 = arith.constant 1.250000e-01 : f32
    %555 = vector.broadcast %cst_174 : f32 to vector<8x128xf32>
    %556 = arith.mulf %554, %555 : vector<8x128xf32>
    %c0_175 = arith.constant 0 : index
    %c0_176 = arith.constant 0 : index
    %557 = vector.load %arg11[%c0_175, %c0_176] : memref<128x128xf32, #tpu.memory_space<vmem>>, vector<128x128xf32>
    %cst_177 = arith.constant dense<0.000000e+00> : vector<8x128xf32>
    %558 = tpu.matmul %556, %557, %cst_177 {dimension_numbers = #tpu.dot_dimension_numbers<[1], [0], [0], [1], [0, 0, 1, 1], [], []>} : vector<8x128xf32>, vector<128x128xf32>, vector<8x128xf32> -> vector<8x128xf32>
    %c0_178 = arith.constant 0 : index
    %c0_179 = arith.constant 0 : index
    %559 = vector.load %arg12[%c0_178, %c0_179] : memref<1x128xf32, #tpu.memory_space<vmem>>, vector<1x128xf32>
    %560 = vector.broadcast %559 : vector<1x128xf32> to vector<8x128xf32>
    %561 = arith.addf %558, %560 : vector<8x128xf32>
    %c0_180 = arith.constant 0 : index
    %c0_181 = arith.constant 0 : index
    %562 = vector.load %arg13[%c0_180, %c0_181] : memref<128x128xf32, #tpu.memory_space<vmem>>, vector<128x128xf32>
    %cst_182 = arith.constant dense<0.000000e+00> : vector<8x128xf32>
    %563 = tpu.matmul %561, %562, %cst_182 {dimension_numbers = #tpu.dot_dimension_numbers<[1], [0], [0], [1], [0, 0, 1, 1], [], []>} : vector<8x128xf32>, vector<128x128xf32>, vector<8x128xf32> -> vector<8x128xf32>
    %c0_183 = arith.constant 0 : index
    %c0_184 = arith.constant 0 : index
    %564 = vector.load %arg14[%c0_183, %c0_184] : memref<1x128xf32, #tpu.memory_space<vmem>>, vector<1x128xf32>
    %565 = vector.broadcast %564 : vector<1x128xf32> to vector<8x128xf32>
    %566 = arith.addf %563, %565 : vector<8x128xf32>
    %567 = vector.extract_strided_slice %566 {offsets = [0, 0], sizes = [2, 128], strides = [1, 1]} : vector<8x128xf32> to vector<2x128xf32>
    %c0_185 = arith.constant 0 : index
    %c0_186 = arith.constant 0 : index
    %568 = vector.load %arg15[%c0_185, %c0_186] : memref<2x128xf32, #tpu.memory_space<vmem>>, vector<2x128xf32>
    tpu.vector_store %arg15[%c0_185, %c0_186], %567 {strides = array<i32>} : memref<2x128xf32, #tpu.memory_space<vmem>>, vector<2x128xf32>,
    return
  }
}

</mosaic_0001>

<bundles_post_ra>
// kernel: document_embedding_gru_forward.1
= control target key start
LH: loop header
LB: loop body
LE: loop exit
PB: predicated region body
PF: predicated region fallthrough
CT: control target
= control target key end

     0   :  { %20 = vsyncpa [#allocation6], 0  ;;  %s8473_s0 = inlined_call_operand.vmem [shape: f32[64,128], index: 0, kind: input, shape index: {}]   ;;  %s8474_s1 = inlined_call_operand.hbm [shape: f32[128,384], index: 1, kind: input, shape index: {}]   ;;  %s8475_s2 = inlined_call_operand.hbm [shape: f32[128,384], index: 2, kind: input, shape index: {}]   ;;  %s8476_s3 = inlined_call_operand.hbm [shape: f32[128,384], index: 3, kind: input, shape index: {}]   ;;  %s8477_s4 = inlined_call_operand.vmem [shape: f32[1,384], index: 4, kind: input, shape index: {}]   ;;  %s8478_s5 = inlined_call_operand.vmem [shape: f32[1,384], index: 5, kind: input, shape index: {}]   ;;  %s8479_s6 = inlined_call_operand.hbm [shape: f32[128,384], index: 6, kind: input, shape index: {}]   ;;  %s8480_s7 = inlined_call_operand.hbm [shape: f32[128,384], index: 7, kind: input, shape index: {}]   ;;  %s8481_s8 = inlined_call_operand.hbm [shape: f32[128,384], index: 8, kind: input, shape index: {}]   ;;  %s8482_s9 = inlined_call_operand.vmem [shape: f32[1,384], index: 9, kind: input, shape index: {}]   ;;  %s8483_s10 = inlined_call_operand.hbm [shape: f32[1,384], index: 10, kind: input, shape index: {}]   ;;  %s8484_s11 = inlined_call_operand.vmem [shape: f32[128,128], index: 11, kind: input, shape index: {}]   ;;  %s8485_s12 = inlined_call_operand.hbm [shape: f32[1,128], index: 12, kind: input, shape index: {}]   ;;  %s8486_s13 = inlined_call_operand.hbm [shape: f32[128,128], index: 13, kind: input, shape index: {}]   ;;  %s8487_s14 = inlined_call_operand.hbm [shape: f32[1,128], index: 14, kind: input, shape index: {}]   ;;  %s8488_s15 = inlined_call_operand.hbm [shape: f32[2,128], index: 15, kind: output, shape index: {}]  }
   0x1   :  { %21 = vsyncpa [#allocation9], 0 }
   0x2   :  { %22 = vsyncpa [#allocation12], 0 }
   0x3   :  { %23 = vsyncpa [#allocation15], 0 }
   0x4   :  { %24 = vsyncpa [#allocation18], 0 }
   0x5   :  { %25 = vsyncpa [#allocation21], 0 }
   0x6   :  { %26 = vsyncpa [#allocation7], 0  ;;  %s6230_s18 = smov [#allocation8]   ;;  %s6231_s20 = smov [#allocation11]  }
   0x7   :  { %s46_s19 = sshll.u32 %s6230_s18, 4  ;;  %s74_s21 = sshll.u32 %s6231_s20, 4  ;;  %s47_s19 = int_to_ptr.vmem [resolvable:$true] %s46_s19  ;;  %s75_s21 = int_to_ptr.vmem [resolvable:$true] %s74_s21 }
   0x8   :  { %s6004_s22 = scalar_lea.vmem %s47_s19, 6144  ;;  %p6009_p1 = scmp.lt.s32.totalorder %s47_s19, %s47_s19 }
   0x9   :  { %p6005_p0 = scmp.ne.s32.totalorder %s47_s19, %s6004_s22  ;;  %p6010_p2 = scmp.lt.s32.totalorder %s6004_s22, %s6004_s22 }
   0xb   :  { %p6011_p3 = por %p6010_p2, %p6009_p1 }
   0xd   :  { %p6012_p4 = pnand %p6011_p3, %p6005_p0 }
   0xf   :  { %6015 = shalt.err (!%p6012_p4)
}
  0x10   :  { %s6232_s23 = smov 384   ;;  %s6233_s24 = smov 24  }
  0x11   :  { %52 = dma.hbm_to_vmem [thread:$0]  %s8475_s2, 6144, %s47_s19, [#allocation9], %s6232_s23, %s6232_s23, %s6233_s24  }
  0x12   :  { %s6024_s27 = scalar_lea.vmem %s75_s21, 6144  ;;  %p6029_p6 = scmp.lt.s32.totalorder %s75_s21, %s75_s21 }
  0x13   :  { %p6025_p5 = scmp.ne.s32.totalorder %s75_s21, %s6024_s27  ;;  %p6030_p7 = scmp.lt.s32.totalorder %s6024_s27, %s6024_s27 }
  0x15   :  { %p6031_p8 = por %p6030_p7, %p6029_p6 }
  0x17   :  { %p6032_p9 = pnand %p6031_p8, %p6025_p5 }
  0x19   :  { %6035 = shalt.err (!%p6032_p9)
}
  0x1a   :  { %80 = dma.hbm_to_vmem [thread:$0]  %s8479_s6, 6144, %s75_s21, [#allocation12], %s6232_s23, %s6232_s23, %s6233_s24  }
  0x1b   :  { %s6234_s30 = smov [#allocation14]   ;;  %s6235_s17 = smov [#allocation17]  }
  0x1c   :  { %s98_s16 = sshll.u32 %s6234_s30, 4  ;;  %s125_s18 = sshll.u32 %s6235_s17, 4  ;;  %s99_s16 = int_to_ptr.vmem [resolvable:$true] %s98_s16  ;;  %s126_s18 = int_to_ptr.vmem [resolvable:$true] %s125_s18 }
  0x1d   :  { %s6044_s2 = scalar_lea.vmem %s99_s16, 6144  ;;  %p6049_p11 = scmp.lt.s32.totalorder %s99_s16, %s99_s16 }
  0x1e   :  { %p6045_p10 = scmp.ne.s32.totalorder %s99_s16, %s6044_s2  ;;  %p6050_p12 = scmp.lt.s32.totalorder %s6044_s2, %s6044_s2 }
  0x20   :  { %p6051_p13 = por %p6050_p12, %p6049_p11 }
  0x22   :  { %p6052_p0 = pnand %p6051_p13, %p6045_p10 }
  0x24   :  { %6055 = shalt.err (!%p6052_p0)
}
  0x25   :  { %104 = dma.hbm_to_vmem [thread:$0]  %s8481_s8, 6144, %s99_s16, [#allocation15], %s6232_s23, %s6232_s23, %s6233_s24  }
  0x26   :  { %s6064_s6 = scalar_lea.vmem %s126_s18, 16  ;;  %s6068_s21 = scalar_lea.vmem %s126_s18, 32 }
  0x27   :  { %p6065_p1 = scmp.ne.s32.totalorder %s126_s18, %s6064_s6  ;;  %p6069_p2 = scmp.lt.s32.totalorder %s126_s18, %s126_s18 }
  0x28   :  { %p6070_p3 = scmp.lt.s32.totalorder %s6068_s21, %s6064_s6 }
  0x2a   :  { %p6071_p4 = por %p6070_p3, %p6069_p2 }
  0x2c   :  { %p6072_p5 = pnand %p6071_p4, %p6065_p1 }
  0x2e   :  { %6075 = shalt.err (!%p6072_p5)
}
  0x2f   :  { %128 = dma.hbm_to_vmem [thread:$0]  %s8485_s12, 16, %s126_s18, [#allocation18]  }
  0x30   :  { %s6236_s26 = smov [#allocation5]   ;;  %s6237_s28 = smov [#allocation10]  }
  0x31   :  { %s34_s27 = sshll.u32 %s6236_s26, 4  ;;  %s58_s29 = sshll.u32 %s6237_s28, 4  ;;  %s35_s27 = int_to_ptr.vmem [resolvable:$true] %s34_s27  ;;  %s59_s29 = int_to_ptr.vmem [resolvable:$true] %s58_s29 }
  0x32   :  { %s6084_s30 = scalar_lea.vmem %s35_s27, 6144  ;;  %p6089_p7 = scmp.lt.s32.totalorder %s35_s27, %s35_s27 }
  0x33   :  { %p6085_p6 = scmp.ne.s32.totalorder %s35_s27, %s6084_s30  ;;  %p6090_p8 = scmp.lt.s32.totalorder %s6084_s30, %s6084_s30 }
  0x35   :  { %p6091_p9 = por %p6090_p8, %p6089_p7 }
  0x37   :  { %p6092_p10 = pnand %p6091_p9, %p6085_p6 }
  0x39   :  { %6095 = shalt.err (!%p6092_p10)
}
  0x3a   :  { %40 = dma.hbm_to_vmem [thread:$0]  %s8474_s1, 6144, %s35_s27, [#allocation6], %s6232_s23, %s6232_s23, %s6233_s24  }
  0x3b   :  { %s6104_s12 = scalar_lea.vmem %s59_s29, 6144  ;;  %p6109_p12 = scmp.lt.s32.totalorder %s59_s29, %s59_s29 }
  0x3c   :  { %p6105_p11 = scmp.ne.s32.totalorder %s59_s29, %s6104_s12  ;;  %p6110_p13 = scmp.lt.s32.totalorder %s6104_s12, %s6104_s12 }
  0x3e   :  { %p6111_p0 = por %p6110_p13, %p6109_p12 }
  0x40   :  { %p6112_p1 = pnand %p6111_p0, %p6105_p11 }
  0x42   :  { %6115 = shalt.err (!%p6112_p1)
}
  0x43   :  { %64 = dma.hbm_to_vmem [thread:$0]  %s8476_s3, 6144, %s59_s29, [#allocation9], %s6232_s23, %s6232_s23, %s6233_s24  }
  0x44   :  { %s6238_s2 = smov [#allocation13]   ;;  %s6239_s20 = smov [#allocation16]  }
  0x45   :  { %s86_s19 = sshll.u32 %s6238_s2, 4  ;;  %s113_s6 = sshll.u32 %s6239_s20, 4  ;;  %s87_s19 = int_to_ptr.vmem [resolvable:$true] %s86_s19  ;;  %s114_s6 = int_to_ptr.vmem [resolvable:$true] %s113_s6 }
  0x46   :  { %s6124_s1 = scalar_lea.vmem %s87_s19, 6144  ;;  %p6129_p3 = scmp.lt.s32.totalorder %s87_s19, %s87_s19 }
  0x47   :  { %p6125_p2 = scmp.ne.s32.totalorder %s87_s19, %s6124_s1  ;;  %p6130_p4 = scmp.lt.s32.totalorder %s6124_s1, %s6124_s1 }
  0x49   :  { %p6131_p5 = por %p6130_p4, %p6129_p3 }
  0x4b   :  { %p6132_p6 = pnand %p6131_p5, %p6125_p2 }
  0x4d   :  { %6135 = shalt.err (!%p6132_p6)
}
  0x4e   :  { %92 = dma.hbm_to_vmem [thread:$0]  %s8480_s7, 6144, %s87_s19, [#allocation12], %s6232_s23, %s6232_s23, %s6233_s24  }
  0x4f   :  { %s6144_s3 = scalar_lea.vmem %s114_s6, 48  ;;  %s6148_s25 = scalar_lea.vmem %s114_s6, 64 }
  0x50   :  { %p6145_p7 = scmp.ne.s32.totalorder %s114_s6, %s6144_s3  ;;  %p6149_p8 = scmp.lt.s32.totalorder %s114_s6, %s114_s6 }
  0x51   :  { %p6150_p9 = scmp.lt.s32.totalorder %s6148_s25, %s6144_s3 }
  0x53   :  { %p6151_p10 = por %p6150_p9, %p6149_p8 }
  0x55   :  { %p6152_p11 = pnand %p6151_p10, %p6145_p7 }
  0x57   :  { %6155 = shalt.err (!%p6152_p11)
}
  0x58   :  { %116 = dma.hbm_to_vmem [thread:$0]  %s8483_s10, 48, %s114_s6, [#allocation15]  }
  0x59   :  { %s6240_s28 = smov [#allocation19]  }
  0x5a   :  { %s134_s29 = sshll.u32 %s6240_s28, 4  ;;  %s135_s29 = int_to_ptr.vmem [resolvable:$true] %s134_s29 }
  0x5b   :  { %s6164_s30 = scalar_lea.vmem %s135_s29, 2048  ;;  %p6169_p13 = scmp.lt.s32.totalorder %s135_s29, %s135_s29 }
  0x5c   :  { %p6165_p12 = scmp.ne.s32.totalorder %s135_s29, %s6164_s30  ;;  %p6170_p0 = scmp.lt.s32.totalorder %s6164_s30, %s6164_s30 }
  0x5e   :  { %p6171_p1 = por %p6170_p0, %p6169_p13 }
  0x60   :  { %p6172_p2 = pnand %p6171_p1, %p6165_p12 }
  0x62   :  { %6175 = shalt.err (!%p6172_p2)
}
  0x63   :  { %s6241_s7 = smov 128   ;;  %s6242_s23 = smov 8  }
  0x64   :  { %140 = dma.hbm_to_vmem [thread:$0]  %s8486_s13, 2048, %s135_s29, [#allocation18], %s6241_s7, %s6241_s7, %s6242_s23  }
  0x65   :  { %s6243_s16 = smov [#allocation20]  }
  0x66   :  { %s147_s12 = sshll.u32 %s6243_s16, 4  ;;  %s148_s12 = int_to_ptr.vmem [resolvable:$true] %s147_s12 }
  0x67   :  { %s6184_s10 = scalar_lea.vmem %s148_s12, 16  ;;  %s6188_s17 = scalar_lea.vmem %s148_s12, 32 }
  0x68   :  { %p6185_p3 = scmp.ne.s32.totalorder %s148_s12, %s6184_s10  ;;  %p6189_p4 = scmp.lt.s32.totalorder %s148_s12, %s148_s12 }
  0x69   :  { %p6190_p5 = scmp.lt.s32.totalorder %s6188_s17, %s6184_s10 }
  0x6b   :  { %p6191_p6 = por %p6190_p5, %p6189_p4 }
  0x6d   :  { %p6192_p7 = pnand %p6191_p6, %p6185_p3 }
  0x6f   :  { %6195 = shalt.err (!%p6192_p7)
}
  0x70   :  { %150 = dma.hbm_to_vmem [thread:$0]  %s8487_s14, 16, %s148_s12, [#allocation21]  }
  0x71   :  { %6216 = dma.done.wait [#allocation6], 6144  }
  0x72   :  { %6217 = vsyncadd [#allocation6], 4294961152 }
  0x73   :  { %6218 = dma.done.wait [#allocation9], 12288  }
  0x74   :  { %6219 = vsyncadd [#allocation9], 4294955008 }
  0x75   :  { %6220 = dma.done.wait [#allocation12], 12288  }
  0x76   :  { %6221 = vsyncadd [#allocation12], 4294955008 }
  0x77   :  { %6222 = dma.done.wait [#allocation15], 6192  }
  0x78   :  { %6223 = vsyncadd [#allocation15], 4294961104 }
  0x79   :  { %6224 = dma.done.wait [#allocation18], 2064  }
  0x7a   :  { %6225 = vsyncadd [#allocation18], 4294965232 }
  0x7b   :  { %6226 = dma.done.wait [#allocation21], 16  }
  0x7c   :  { %6227 = vsyncadd [#allocation21], 4294967280  ;;  %v8489_v0 = vmov 0.0   ;;  %v235_v1 = vld [vmem:[#allocation5 + $0x170] sm:$0xff]  ;;  %v236_v2 = vld [vmem:[#allocation5 + $0x178] sm:$0xff]  ;;  %vm6245_vm0 = vmmov 0  }
  0x7d   :  { %318 = vmatprep.mubr.f32.mxu0 %v8489_v0  ;;  %v234_v3 = vld [vmem:[#allocation5 + $0x168] sm:$0xff]  ;;  %254 = vmatprep.subr.mxu0 %v235_v1  ;;  %v232_v4 = vld [vmem:[#allocation5 + $0x158] sm:$0xff]  ;;  %v233_v5 = vld [vmem:[#allocation5 + $0x160] sm:$0xff] }
  0x7e   :  { %4917 = vmatprep.subr.mxu1 %v236_v2  ;;  %v231_v6 = vld [vmem:[#allocation5 + $0x150] sm:$0xff]  ;;  %255 = vmatpush1.msra.mxu0 %v234_v3  ;;  %v229_v7 = vld [vmem:[#allocation5 + $0x140] sm:$0xff]  ;;  %v230_v8 = vld [vmem:[#allocation5 + $0x148] sm:$0xff] }
  0x7f   :  { %4918 = vmatpush3.msra.mxu1 %v236_v2  ;;  %256 = vmatprep.subr.mxu0 %v232_v4  ;;  %v228_v9 = vld [vmem:[#allocation5 + $0x138] sm:$0xff]  ;;  %v226_v10 = vld [vmem:[#allocation5 + $0x128] sm:$0xff]  ;;  %v227_v11 = vld [vmem:[#allocation5 + $0x130] sm:$0xff] }
  0x80   :  { %4919 = vmatprep.subr.mxu1 %v233_v5  ;;  %257 = vmatpush1.msra.mxu0 %v231_v6  ;;  %v225_v12 = vld [vmem:[#allocation5 + $0x120] sm:$0xff]  ;;  %v223_v13 = vld [vmem:[#allocation5 + $0x110] sm:$0xff]  ;;  %v224_v14 = vld [vmem:[#allocation5 + $0x118] sm:$0xff] }
  0x81   :  { %4920 = vmatpush3.msra.mxu1 %v233_v5  ;;  %258 = vmatprep.subr.mxu0 %v229_v7  ;;  %v222_v15 = vld [vmem:[#allocation5 + $0x108] sm:$0xff]  ;;  %v220_v16 = vld [vmem:[#allocation5 + $0xf8] sm:$0xff]  ;;  %v221_v17 = vld [vmem:[#allocation5 + $0x100] sm:$0xff] }
  0x82   :  { %4921 = vmatprep.subr.mxu1 %v230_v8  ;;  %259 = vmatpush1.msra.mxu0 %v228_v9  ;;  %v219_v18 = vld [vmem:[#allocation5 + $0xf0] sm:$0xff]  ;;  %v217_v19 = vld [vmem:[#allocation5 + $0xe0] sm:$0xff]  ;;  %v218_v20 = vld [vmem:[#allocation5 + $0xe8] sm:$0xff] }
  0x83   :  { %4922 = vmatpush3.msra.mxu1 %v230_v8  ;;  %260 = vmatprep.subr.mxu0 %v226_v10  ;;  %v216_v21 = vld [vmem:[#allocation5 + $0xd8] sm:$0xff]  ;;  %v214_v22 = vld [vmem:[#allocation5 + $0xc8] sm:$0xff]  ;;  %v215_v23 = vld [vmem:[#allocation5 + $0xd0] sm:$0xff] }
  0x84   :  { %4923 = vmatprep.subr.mxu1 %v227_v11  ;;  %261 = vmatpush1.msra.mxu0 %v225_v12  ;;  %v213_v24 = vld [vmem:[#allocation5 + $0xc0] sm:$0xff]  ;;  %v211_v25 = vld [vmem:[#allocation5 + $0xb0] sm:$0xff]  ;;  %v212_v26 = vld [vmem:[#allocation5 + $0xb8] sm:$0xff] }
  0x85   :  { %4924 = vmatpush3.msra.mxu1 %v227_v11  ;;  %262 = vmatprep.subr.mxu0 %v223_v13  ;;  %v210_v27 = vld [vmem:[#allocation5 + $0xa8] sm:$0xff]  ;;  %v208_v28 = vld [vmem:[#allocation5 + $0x98] sm:$0xff]  ;;  %v209_v29 = vld [vmem:[#allocation5 + $0xa0] sm:$0xff] }
  0x86   :  { %4925 = vmatprep.subr.mxu1 %v224_v14  ;;  %263 = vmatpush1.msra.mxu0 %v222_v15  ;;  %v207_v30 = vld [vmem:[#allocation5 + $0x90] sm:$0xff]  ;;  %v205_v31 = vld [vmem:[#allocation5 + $0x80] sm:$0xff]  ;;  %v206_v32 = vld [vmem:[#allocation5 + $0x88] sm:$0xff] }
  0x87   :  { %4926 = vmatpush3.msra.mxu1 %v224_v14  ;;  %264 = vmatprep.subr.mxu0 %v220_v16  ;;  %v204_v33 = vld [vmem:[#allocation5 + $0x78] sm:$0xff]  ;;  %v202_v34 = vld [vmem:[#allocation5 + $0x68] sm:$0xff]  ;;  %v203_v35 = vld [vmem:[#allocation5 + $0x70] sm:$0xff] }
  0x88   :  { %4927 = vmatprep.subr.mxu1 %v221_v17  ;;  %265 = vmatpush1.msra.mxu0 %v219_v18  ;;  %v201_v36 = vld [vmem:[#allocation5 + $0x60] sm:$0xff]  ;;  %v199_v37 = vld [vmem:[#allocation5 + $0x50] sm:$0xff]  ;;  %v200_v38 = vld [vmem:[#allocation5 + $0x58] sm:$0xff] }
  0x89   :  { %4928 = vmatpush3.msra.mxu1 %v221_v17  ;;  %266 = vmatprep.subr.mxu0 %v217_v19  ;;  %v198_v39 = vld [vmem:[#allocation5 + $0x48] sm:$0xff]  ;;  %v196_v40 = vld [vmem:[#allocation5 + $0x38] sm:$0xff]  ;;  %v197_v41 = vld [vmem:[#allocation5 + $0x40] sm:$0xff] }
  0x8a   :  { %4929 = vmatprep.subr.mxu1 %v218_v20  ;;  %267 = vmatpush1.msra.mxu0 %v216_v21  ;;  %v195_v42 = vld [vmem:[#allocation5 + $0x30] sm:$0xff]  ;;  %v193_v43 = vld [vmem:[#allocation5 + $0x20] sm:$0xff]  ;;  %v194_v44 = vld [vmem:[#allocation5 + $0x28] sm:$0xff] }
  0x8b   :  { %4930 = vmatpush3.msra.mxu1 %v218_v20  ;;  %268 = vmatprep.subr.mxu0 %v214_v22  ;;  %v192_v45 = vld [vmem:[#allocation5 + $0x18] sm:$0xff]  ;;  %v190_v46 = vld [vmem:[#allocation5 + $0x8] sm:$0xff]  ;;  %v191_v47 = vld [vmem:[#allocation5 + $0x10] sm:$0xff] }
  0x8c   :  { %4931 = vmatprep.subr.mxu1 %v215_v23  ;;  %269 = vmatpush1.msra.mxu0 %v213_v24  ;;  %v189_v48 = vld [vmem:[#allocation5] sm:$0xff]  ;;  %v542_v50 = vld [vmem:[#allocation8 + $0x170] sm:$0xff]  ;;  %v543_v51 = vld [vmem:[#allocation8 + $0x178] sm:$0xff] }
  0x8d   :  { %4932 = vmatpush3.msra.mxu1 %v215_v23  ;;  %270 = vmatprep.subr.mxu0 %v211_v25  ;;  %v6379_v49 = vld [vmem:[%s8473_s0] sm:$0xff]  ;;  %v6384_v52 = vld [vmem:[%s8473_s0 + $0x8] sm:$0xff]  ;;  %v539_v54 = vld [vmem:[#allocation8 + $0x158] sm:$0xff] }
  0x8e   :  { %4933 = vmatprep.subr.mxu1 %v212_v26  ;;  %271 = vmatpush1.msra.mxu0 %v210_v27  ;;  %v541_v53 = vld [vmem:[#allocation8 + $0x168] sm:$0xff]  ;;  %v540_v55 = vld [vmem:[#allocation8 + $0x160] sm:$0xff]  ;;  %v538_v56 = vld [vmem:[#allocation8 + $0x150] sm:$0xff] }
  0x8f   :  { %4934 = vmatpush3.msra.mxu1 %v212_v26  ;;  %272 = vmatprep.subr.mxu0 %v208_v28  ;;  %v536_v57 = vld [vmem:[#allocation8 + $0x140] sm:$0xff]  ;;  %v537_v58 = vld [vmem:[#allocation8 + $0x148] sm:$0xff]  ;;  %v535_v59 = vld [vmem:[#allocation8 + $0x138] sm:$0xff] }
  0x90   :  { %4935 = vmatprep.subr.mxu1 %v209_v29  ;;  %273 = vmatpush1.msra.mxu0 %v207_v30  ;;  %v533_v60 = vld [vmem:[#allocation8 + $0x128] sm:$0xff]  ;;  %v534_v61 = vld [vmem:[#allocation8 + $0x130] sm:$0xff]  ;;  %v532_v62 = vld [vmem:[#allocation8 + $0x120] sm:$0xff] }
  0x91   :  { %4936 = vmatpush3.msra.mxu1 %v209_v29  ;;  %274 = vmatprep.subr.mxu0 %v205_v31  ;;  %v6394_v63 = vld [vmem:[%s8473_s0 + $0x10] sm:$0xff]  ;;  %v531_v2 = vld [vmem:[#allocation8 + $0x118] sm:$0xff]  ;;  %v529_v3 = vld [vmem:[#allocation8 + $0x108] sm:$0xff] }
  0x92   :  { %4937 = vmatprep.subr.mxu1 %v206_v32  ;;  %275 = vmatpush1.msra.mxu0 %v204_v33  ;;  %v530_v1 = vld [vmem:[#allocation8 + $0x110] sm:$0xff]  ;;  %v527_v4 = vld [vmem:[#allocation8 + $0xf8] sm:$0xff]  ;;  %v528_v5 = vld [vmem:[#allocation8 + $0x100] sm:$0xff] }
  0x93   :  { %4938 = vmatpush3.msra.mxu1 %v206_v32  ;;  %276 = vmatprep.subr.mxu0 %v202_v34  ;;  %v526_v6 = vld [vmem:[#allocation8 + $0xf0] sm:$0xff]  ;;  %v6401_v7 = vld [vmem:[%s8473_s0 + $0x18] sm:$0xff]  ;;  %v524_v8 = vld [vmem:[#allocation8 + $0xe0] sm:$0xff] }
  0x94   :  { %4939 = vmatprep.subr.mxu1 %v203_v35  ;;  %277 = vmatpush1.msra.mxu0 %v201_v36  ;;  %v525_v9 = vld [vmem:[#allocation8 + $0xe8] sm:$0xff]  ;;  %v523_v10 = vld [vmem:[#allocation8 + $0xd8] sm:$0xff]  ;;  %v522_v12 = vld [vmem:[#allocation8 + $0xd0] sm:$0xff] }
  0x95   :  { %4940 = vmatpush3.msra.mxu1 %v203_v35  ;;  %278 = vmatprep.subr.mxu0 %v199_v37  ;;  %v521_v11 = vld [vmem:[#allocation8 + $0xc8] sm:$0xff]  ;;  %v520_v13 = vld [vmem:[#allocation8 + $0xc0] sm:$0xff]  ;;  %v518_v15 = vld [vmem:[#allocation8 + $0xb0] sm:$0xff] }
  0x96   :  { %4941 = vmatprep.subr.mxu1 %v200_v38  ;;  %279 = vmatpush1.msra.mxu0 %v198_v39  ;;  %v6408_v14 = vld [vmem:[%s8473_s0 + $0x20] sm:$0xff]  ;;  %v519_v16 = vld [vmem:[#allocation8 + $0xb8] sm:$0xff]  ;;  %v517_v17 = vld [vmem:[#allocation8 + $0xa8] sm:$0xff] }
  0x97   :  { %4942 = vmatpush3.msra.mxu1 %v200_v38  ;;  %280 = vmatprep.subr.mxu0 %v196_v40  ;;  %v515_v18 = vld [vmem:[#allocation8 + $0x98] sm:$0xff]  ;;  %v516_v19 = vld [vmem:[#allocation8 + $0xa0] sm:$0xff]  ;;  %v514_v20 = vld [vmem:[#allocation8 + $0x90] sm:$0xff] }
  0x98   :  { %4943 = vmatprep.subr.mxu1 %v197_v41  ;;  %281 = vmatpush1.msra.mxu0 %v195_v42  ;;  %v6415_v21 = vld [vmem:[%s8473_s0 + $0x28] sm:$0xff]  ;;  %v512_v22 = vld [vmem:[#allocation8 + $0x80] sm:$0xff]  ;;  %v511_v24 = vld [vmem:[#allocation8 + $0x78] sm:$0xff] }
  0x99   :  { %4944 = vmatpush3.msra.mxu1 %v197_v41  ;;  %282 = vmatprep.subr.mxu0 %v193_v43  ;;  %v513_v23 = vld [vmem:[#allocation8 + $0x88] sm:$0xff]  ;;  %v510_v26 = vld [vmem:[#allocation8 + $0x70] sm:$0xff]  ;;  %v508_v27 = vld [vmem:[#allocation8 + $0x60] sm:$0xff] }
  0x9a   :  { %4945 = vmatprep.subr.mxu1 %v194_v44  ;;  %283 = vmatpush1.msra.mxu0 %v192_v45  ;;  %v509_v25 = vld [vmem:[#allocation8 + $0x68] sm:$0xff]  ;;  %v6424_v28 = vld [vmem:[%s8473_s0 + $0x30] sm:$0xff]  ;;  %v507_v30 = vld [vmem:[#allocation8 + $0x58] sm:$0xff] }
  0x9b   :  { %4946 = vmatpush3.msra.mxu1 %v194_v44  ;;  %284 = vmatprep.subr.mxu0 %v190_v46  ;;  %v506_v29 = vld [vmem:[#allocation8 + $0x50] sm:$0xff]  ;;  %v505_v31 = vld [vmem:[#allocation8 + $0x48] sm:$0xff]  ;;  %v503_v32 = vld [vmem:[#allocation8 + $0x38] sm:$0xff] }
  0x9c   :  { %4947 = vmatprep.subr.mxu1 %v191_v47  ;;  %285 = vmatpush1.msra.mxu0 %v189_v48  ;;  %v504_v33 = vld [vmem:[#allocation8 + $0x40] sm:$0xff]  ;;  %v502_v34 = vld [vmem:[#allocation8 + $0x30] sm:$0xff]  ;;  %v6433_v35 = vld [vmem:[%s8473_s0 + $0x38] sm:$0xff] }
  0x9d   :  { %4948 = vmatpush3.msra.mxu1 %v191_v47  ;;  %319 = vmatmul.mubr.f32.vlgmr.msra.gmra.mxu0 %v6379_v49  ;;  %v500_v36 = vld [vmem:[#allocation8 + $0x20] sm:$0xff]  ;;  %v501_v37 = vld [vmem:[#allocation8 + $0x28] sm:$0xff]  ;;  %v499_v38 = vld [vmem:[#allocation8 + $0x18] sm:$0xff] }
  0x9e   :  { %4949 = vmatprep.mubr.f32.mxu1 %v6379_v49  ;;  %544 = vmatprep.subr.mxu0 %v542_v50  ;;  %v497_v39 = vld [vmem:[#allocation8 + $0x8] sm:$0xff]  ;;  %v498_v40 = vld [vmem:[#allocation8 + $0x10] sm:$0xff]  ;;  %v496_v41 = vld [vmem:[#allocation8] sm:$0xff] }
  0x9f   :  { %4961 = vmatprep.subr.mxu1 %v543_v51  ;;  %4950 = vmatmul.mubr.f32.vlgmr.msra.gmra.mxu1 %v6384_v52  ;;  %v6439_v42 = vld [vmem:[#allocation10 + $0x170] sm:$0xff]  ;;  %v6442_v43 = vld [vmem:[#allocation10 + $0x168] sm:$0xff]  ;;  %v6446_v44 = vld [vmem:[#allocation10 + $0x158] sm:$0xff] }
  0xa0   :  { %545 = vmatpush1.msra.mxu0 %v541_v53  ;;  %4962 = vmatpush3.msra.mxu1 %v543_v51  ;;  %8652 = vst [vmem:[#allocation30_spill] sm:$0xff] %v6439_v42  ;;  %v6450_v45 = vld [vmem:[#allocation10 + $0x150] sm:$0xff]  ;;  %v6456_v46 = vld [vmem:[#allocation10 + $0x140] sm:$0xff]  ;;  %v6459_v47 = vld [vmem:[#allocation10 + $0x138] sm:$0xff] }
  0xa1   :  { %546 = vmatprep.subr.mxu0 %v539_v54  ;;  %4963 = vmatprep.subr.mxu1 %v540_v55  ;;  %v6464_v48 = vld [vmem:[#allocation10 + $0x128] sm:$0xff]  ;;  %v6470_v50 = vld [vmem:[#allocation10 + $0x120] sm:$0xff]  ;;  %v6474_v51 = vld [vmem:[#allocation10 + $0x110] sm:$0xff] }
  0xa2   :  { %324 = vmatprep.mubr.f32.mxu0 %v8489_v0  ;;  %547 = vmatpush1.msra.mxu0 %v538_v56  ;;  %v6482_v53 = vld [vmem:[#allocation10 + $0xf8] sm:$0xff]  ;;  %v6486_v54 = vld [vmem:[#allocation10 + $0xf0] sm:$0xff] }
  0xa3   :  { %4964 = vmatpush3.msra.mxu1 %v540_v55  ;;  %325 = vmatmul.mubr.f32.gmra.mxu0 %v6384_v52  ;;  %v6490_v55 = vld [vmem:[#allocation10 + $0xe0] sm:$0xff]  ;;  %v6494_v56 = vld [vmem:[#allocation10 + $0xd8] sm:$0xff] }
  0xa4   :  { %548 = vmatprep.subr.mxu0 %v536_v57  ;;  %4965 = vmatprep.subr.mxu1 %v537_v58  ;;  %v6498_v57 = vld [vmem:[#allocation10 + $0xc8] sm:$0xff] }
  0xa5   :  { %549 = vmatpush1.msra.mxu0 %v535_v59  ;;  %4966 = vmatpush3.msra.mxu1 %v537_v58  ;;  %8653 = vst [vmem:[#allocation31_spill] sm:$0xff] %v6498_v57  ;;  %v6502_v58 = vld [vmem:[#allocation10 + $0xc0] sm:$0xff] }
  0xa6   :  { %550 = vmatprep.subr.mxu0 %v533_v60  ;;  %4967 = vmatprep.subr.mxu1 %v534_v61  ;;  %8654 = vst [vmem:[#allocation32_spill] sm:$0xff] %v6502_v58  ;;  %v6504_v59 = vld [vmem:[#allocation10 + $0x160] sm:$0xff]  ;;  %v6508_v60 = vld [vmem:[#allocation10 + $0xb0] sm:$0xff] }
  0xa7   :  { %330 = vmatprep.mubr.f32.mxu0 %v8489_v0  ;;  %551 = vmatpush1.msra.mxu0 %v532_v62  ;;  %8655 = vst [vmem:[#allocation33_spill] sm:$0xff] %v6508_v60  ;;  %v6515_v62 = vld [vmem:[#allocation10 + $0x98] sm:$0xff] }
  0xa8   :  { %4968 = vmatpush3.msra.mxu1 %v534_v61  ;;  %331 = vmatmul.mubr.f32.gmra.mxu0 %v6394_v63  ;;  %v6511_v61 = vld [vmem:[#allocation10 + $0xa8] sm:$0xff]  ;;  %8657 = vst [vmem:[#allocation35_spill] sm:$0xff] %v6515_v62 }
  0xa9   :  { %552 = vmatprep.subr.mxu0 %v530_v1  ;;  %4969 = vmatprep.subr.mxu1 %v531_v2  ;;  %8656 = vst [vmem:[#allocation34_spill] sm:$0xff] %v6511_v61  ;;  %v6522_v1 = vld [vmem:[#allocation10 + $0x148] sm:$0xff] }
  0xaa   :  { %553 = vmatpush1.msra.mxu0 %v529_v3  ;;  %4970 = vmatpush3.msra.mxu1 %v531_v2  ;;  %v6526_v2 = vld [vmem:[#allocation10 + $0x80] sm:$0xff]  ;;  %v6529_v3 = vld [vmem:[#allocation10 + $0x78] sm:$0xff] }
  0xab   :  { %554 = vmatprep.subr.mxu0 %v527_v4  ;;  %4971 = vmatprep.subr.mxu1 %v528_v5  ;;  %8659 = vst [vmem:[#allocation37_spill] sm:$0xff] %v6526_v2  ;;  %8660 = vst [vmem:[#allocation38_spill] sm:$0xff] %v6529_v3  ;;  %v6533_v4 = vld [vmem:[#allocation10 + $0x68] sm:$0xff] }
  0xac   :  { %336 = vmatprep.mubr.f32.mxu0 %v8489_v0  ;;  %555 = vmatpush1.msra.mxu0 %v526_v6  ;;  %8661 = vst [vmem:[#allocation39_spill] sm:$0xff] %v6533_v4  ;;  %v6540_v6 = vld [vmem:[#allocation10 + $0x130] sm:$0xff] }
  0xad   :  { %4972 = vmatpush3.msra.mxu1 %v528_v5  ;;  %337 = vmatmul.mubr.f32.gmra.mxu0 %v6401_v7  ;;  %v6538_v5 = vld [vmem:[#allocation10 + $0x60] sm:$0xff] }
  0xae   :  { %556 = vmatprep.subr.mxu0 %v524_v8  ;;  %4973 = vmatprep.subr.mxu1 %v525_v9  ;;  %8662 = vst [vmem:[#allocation40_spill] sm:$0xff] %v6538_v5  ;;  %v6547_v8 = vld [vmem:[#allocation10 + $0x48] sm:$0xff] }
  0xaf   :  { %557 = vmatpush1.msra.mxu0 %v523_v10  ;;  %4974 = vmatpush3.msra.mxu1 %v525_v9  ;;  %8664 = vst [vmem:[#allocation42_spill] sm:$0xff] %v6547_v8  ;;  %v6551_v9 = vld [vmem:[#allocation10 + $0x38] sm:$0xff]  ;;  %v6556_v10 = vld [vmem:[#allocation10 + $0x30] sm:$0xff] }
  0xb0   :  { %558 = vmatprep.subr.mxu0 %v521_v11  ;;  %4975 = vmatprep.subr.mxu1 %v522_v12  ;;  %8665 = vst [vmem:[#allocation43_spill] sm:$0xff] %v6551_v9  ;;  %8666 = vst [vmem:[#allocation44_spill] sm:$0xff] %v6556_v10  ;;  %v6558_v11 = vld [vmem:[#allocation10 + $0x118] sm:$0xff] }
  0xb1   :  { %342 = vmatprep.mubr.f32.mxu0 %v8489_v0  ;;  %559 = vmatpush1.msra.mxu0 %v520_v13  ;;  %v6565_v13 = vld [vmem:[#allocation10 + $0x18] sm:$0xff] }
  0xb2   :  { %4976 = vmatpush3.msra.mxu1 %v522_v12  ;;  %343 = vmatmul.mubr.f32.gmra.mxu0 %v6408_v14  ;;  %v6562_v12 = vld [vmem:[#allocation10 + $0x20] sm:$0xff]  ;;  %8668 = vst [vmem:[#allocation46_spill] sm:$0xff] %v6565_v13 }
  0xb3   :  { %560 = vmatprep.subr.mxu0 %v518_v15  ;;  %4977 = vmatprep.subr.mxu1 %v519_v16  ;;  %8667 = vst [vmem:[#allocation45_spill] sm:$0xff] %v6562_v12  ;;  %v6574_v15 = vld [vmem:[#allocation10] sm:$0xff] }
  0xb4   :  { %561 = vmatpush1.msra.mxu0 %v517_v17  ;;  %4978 = vmatpush3.msra.mxu1 %v519_v16  ;;  %8670 = vst [vmem:[#allocation48_spill] sm:$0xff] %v6574_v15  ;;  %v6576_v16 = vld [vmem:[#allocation10 + $0x100] sm:$0xff]  ;;  %v6582_v17 = vld [vmem:[#allocation10 + $0xe8] sm:$0xff] }
  0xb5   :  { %562 = vmatprep.subr.mxu0 %v515_v18  ;;  %4979 = vmatprep.subr.mxu1 %v516_v19  ;;  %8671 = vst [vmem:[#allocation49_spill] sm:$0xff] %v6582_v17  ;;  %v6588_v18 = vld [vmem:[#allocation10 + $0xd0] sm:$0xff] }
  0xb6   :  { %348 = vmatprep.mubr.f32.mxu0 %v8489_v0  ;;  %4952 = vmatprep.mubr.f32.mxu1 %v6394_v63  ;;  %8672 = vst [vmem:[#allocation50_spill] sm:$0xff] %v6588_v18 }
  0xb7   :  { %563 = vmatpush1.msra.mxu0 %v514_v20  ;;  %4980 = vmatpush3.msra.mxu1 %v516_v19  ;;  %v6594_v19 = vld [vmem:[#allocation10 + $0xb8] sm:$0xff]  ;;  %v6600_v20 = vld [vmem:[#allocation10 + $0xa0] sm:$0xff] }
  0xb8   :  { %349 = vmatmul.mubr.f32.gmra.mxu0 %v6415_v21  ;;  %4953 = vmatmul.mubr.f32.gmra.mxu1 %v6401_v7  ;;  %8673 = vst [vmem:[#allocation51_spill] sm:$0xff] %v6594_v19  ;;  %8674 = vst [vmem:[#allocation52_spill] sm:$0xff] %v6600_v20 }
  0xb9   :  { %564 = vmatprep.subr.mxu0 %v512_v22  ;;  %4981 = vmatprep.subr.mxu1 %v513_v23  ;;  %v6612_v22 = vld [vmem:[#allocation10 + $0x70] sm:$0xff] }
  0xba   :  { %565 = vmatpush1.msra.mxu0 %v511_v24  ;;  %4982 = vmatpush3.msra.mxu1 %v513_v23  ;;  %8676 = vst [vmem:[#allocation54_spill] sm:$0xff] %v6612_v22  ;;  %v6618_v23 = vld [vmem:[#allocation10 + $0x58] sm:$0xff]  ;;  %v6624_v24 = vld [vmem:[#allocation10 + $0x40] sm:$0xff] }
  0xbb   :  { %566 = vmatprep.subr.mxu0 %v509_v25  ;;  %4983 = vmatprep.subr.mxu1 %v510_v26  ;;  %8677 = vst [vmem:[#allocation55_spill] sm:$0xff] %v6618_v23  ;;  %8678 = vst [vmem:[#allocation56_spill] sm:$0xff] %v6624_v24  ;;  %v6630_v25 = vld [vmem:[#allocation10 + $0x28] sm:$0xff] }
  0xbc   :  { %354 = vmatprep.mubr.f32.mxu0 %v8489_v0  ;;  %4955 = vmatprep.mubr.f32.mxu1 %v6408_v14  ;;  %8679 = vst [vmem:[#allocation57_spill] sm:$0xff] %v6630_v25 }
  0xbd   :  { %567 = vmatpush1.msra.mxu0 %v508_v27  ;;  %4984 = vmatpush3.msra.mxu1 %v510_v26  ;;  %v6636_v26 = vld [vmem:[#allocation10 + $0x10] sm:$0xff]  ;;  %v239_v27 = vlaneseq }
  0xbe   :  { %355 = vmatmul.mubr.f32.gmra.mxu0 %v6424_v28  ;;  %4956 = vmatmul.mubr.f32.gmra.mxu1 %v6415_v21  ;;  %8680 = vst [vmem:[#allocation58_spill] sm:$0xff] %v6636_v26 }
  0xbf   :  { %568 = vmatprep.subr.mxu0 %v506_v29  ;;  %4985 = vmatprep.subr.mxu1 %v507_v30 }
  0xc0   :  { %569 = vmatpush1.msra.mxu0 %v505_v31  ;;  %4986 = vmatpush3.msra.mxu1 %v507_v30  ;;  %v237_v30 = vld [vmem:[%s8477_s4] sm:$0x7] }
  0xc1   :  { %570 = vmatprep.subr.mxu0 %v503_v32  ;;  %4987 = vmatprep.subr.mxu1 %v504_v33 }
  0xc2   :  { %360 = vmatprep.mubr.f32.mxu0 %v8489_v0  ;;  %4958 = vmatprep.mubr.f32.mxu1 %v6424_v28 }
  0xc3   :  { %571 = vmatpush1.msra.mxu0 %v502_v34  ;;  %4988 = vmatpush3.msra.mxu1 %v504_v33 }
  0xc4   :  { %361 = vmatmul.mubr.f32.gmra.mxu0 %v6433_v35  ;;  %4959 = vmatmul.mubr.f32.gmra.mxu1 %v6433_v35 }
  0xc5   :  { %572 = vmatprep.subr.mxu0 %v500_v36  ;;  %4989 = vmatprep.subr.mxu1 %v501_v37 }
  0xc6   :  { %573 = vmatpush1.msra.mxu0 %v499_v38  ;;  %4990 = vmatpush3.msra.mxu1 %v501_v37 }
  0xc7   :  { %574 = vmatprep.subr.mxu0 %v497_v39  ;;  %4991 = vmatprep.subr.mxu1 %v498_v40 }
  0xc8   :  { %575 = vmatpush1.msra.mxu0 %v496_v41  ;;  %608 = vmatprep.mubr.f32.mxu0 %v8489_v0 }
  0xc9   :  { %4992 = vmatpush3.msra.mxu1 %v498_v40  ;;  %4993 = vmatprep.mubr.f32.mxu1 %v6379_v49 }
  0xca   :  { %609 = vmatmul.mubr.f32.vlgmr.msra.gmra.mxu0 %v6379_v49  ;;  %4994 = vmatmul.mubr.f32.vlgmr.msra.gmra.mxu1 %v6384_v52  ;;  %v6466_v49 = vld [vmem:[#allocation10 + $0x178] sm:$0xff] }
  0xcb   :  { %860 = vmatprep.subr.mxu0 %v6439_v42  ;;  %614 = vmatprep.mubr.f32.mxu0 %v8489_v0 }
  0xcc   :  { %861 = vmatpush1.msra.mxu0 %v6442_v43  ;;  %4996 = vmatprep.mubr.f32.mxu1 %v6394_v63 }
  0xcd   :  { %862 = vmatprep.subr.mxu0 %v6446_v44  ;;  %5005 = vmatprep.subr.mxu1 %v8489_v0 }
  0xce   :  { %863 = vmatpush1.msra.mxu0 %v6450_v45  ;;  %4997 = vmatmul.mubr.f32.gmra.mxu1 %v6401_v7 }
  0xcf   :  { %615 = vmatmul.mubr.f32.gmra.mxu0 %v6384_v52  ;;  %864 = vmatprep.subr.mxu0 %v6456_v46  ;;  %v6477_v52 = vld [vmem:[#allocation10 + $0x108] sm:$0xff] }
  0xd0   :  { %620 = vmatprep.mubr.f32.mxu0 %v8489_v0  ;;  %865 = vmatpush1.msra.mxu0 %v6459_v47 }
  0xd1   :  { %4999 = vmatprep.mubr.f32.mxu1 %v6408_v14  ;;  %866 = vmatprep.subr.mxu0 %v6464_v48 }
  0xd2   :  { %5006 = vmatpush3.msra.mxu1 %v6466_v49  ;;  %867 = vmatpush1.msra.mxu0 %v6470_v50 }
  0xd3   :  { %5000 = vmatmul.mubr.f32.gmra.mxu1 %v6415_v21  ;;  %621 = vmatmul.mubr.f32.gmra.mxu0 %v6394_v63  ;;  %v6520_v63 = vld [vmem:[#allocation10 + $0x90] sm:$0xff] }
  0xd4   :  { %868 = vmatprep.subr.mxu0 %v6474_v51  ;;  %626 = vmatprep.mubr.f32.mxu0 %v8489_v0  ;;  %8658 = vst [vmem:[#allocation36_spill] sm:$0xff] %v6520_v63 }
  0xd5   :  { %869 = vmatpush1.msra.mxu0 %v6477_v52  ;;  %5002 = vmatprep.mubr.f32.mxu1 %v6424_v28 }
  0xd6   :  { %870 = vmatprep.subr.mxu0 %v6482_v53  ;;  %5007 = vmatprep.subr.mxu1 %v8489_v0 }
  0xd7   :  { %871 = vmatpush1.msra.mxu0 %v6486_v54  ;;  %5003 = vmatmul.mubr.f32.gmra.mxu1 %v6433_v35 }
  0xd8   :  { %627 = vmatmul.mubr.f32.gmra.mxu0 %v6401_v7  ;;  %872 = vmatprep.subr.mxu0 %v6490_v55  ;;  %v6544_v7 = vld [vmem:[#allocation10 + $0x50] sm:$0xff] }
  0xd9   :  { %873 = vmatpush1.msra.mxu0 %v6494_v56  ;;  %632 = vmatprep.mubr.f32.mxu0 %v8489_v0  ;;  %8663 = vst [vmem:[#allocation41_spill] sm:$0xff] %v6544_v7 }
  0xda   :  { %874 = vmatprep.subr.mxu0 %v6498_v57  ;;  %5008 = vmatpush3.msra.mxu1 %v6504_v59 }
  0xdb   :  { %875 = vmatpush1.msra.mxu0 %v6502_v58  ;;  %5009 = vmatprep.subr.mxu1 %v8489_v0 }
  0xdc   :  { %633 = vmatmul.mubr.f32.gmra.mxu0 %v6408_v14  ;;  %876 = vmatprep.subr.mxu0 %v6508_v60  ;;  %v6569_v14 = vld [vmem:[#allocation10 + $0x8] sm:$0xff] }
  0xdd   :  { %877 = vmatpush1.msra.mxu0 %v6511_v61  ;;  %638 = vmatprep.mubr.f32.mxu0 %v8489_v0  ;;  %8669 = vst [vmem:[#allocation47_spill] sm:$0xff] %v6569_v14 }
  0xde   :  { %878 = vmatprep.subr.mxu0 %v6515_v62  ;;  %5010 = vmatpush3.msra.mxu1 %v6522_v1 }
  0xdf   :  { %879 = vmatpush1.msra.mxu0 %v6520_v63  ;;  %5011 = vmatprep.subr.mxu1 %v8489_v0 }
  0xe0   :  { %639 = vmatmul.mubr.f32.gmra.mxu0 %v6415_v21  ;;  %880 = vmatprep.subr.mxu0 %v6526_v2  ;;  %v6606_v21 = vld [vmem:[#allocation10 + $0x88] sm:$0xff] }
  0xe1   :  { %881 = vmatpush1.msra.mxu0 %v6529_v3  ;;  %644 = vmatprep.mubr.f32.mxu0 %v8489_v0  ;;  %8675 = vst [vmem:[#allocation53_spill] sm:$0xff] %v6606_v21 }
  0xe2   :  { %882 = vmatprep.subr.mxu0 %v6533_v4  ;;  %5012 = vmatpush3.msra.mxu1 %v6540_v6 }
  0xe3   :  { %883 = vmatpush1.msra.mxu0 %v6538_v5  ;;  %5013 = vmatprep.subr.mxu1 %v8489_v0 }
  0xe4   :  { %645 = vmatmul.mubr.f32.gmra.mxu0 %v6424_v28  ;;  %884 = vmatprep.subr.mxu0 %v6544_v7  ;;  %v240_v28 = vshrl.u32 %v239_v27, 7 }
  0xe5   :  { %885 = vmatpush1.msra.mxu0 %v6547_v8  ;;  %650 = vmatprep.mubr.f32.mxu0 %v8489_v0 }
  0xe6   :  { %886 = vmatprep.subr.mxu0 %v6551_v9  ;;  %5014 = vmatpush3.msra.mxu1 %v6558_v11  ;;  %v6697_v29 = vsub.s32 2, %v240_v28  ;;  %v6707_v33 = vsub.s32 0, %v240_v28  ;;  %v6711_v36 = vsub.s32 1, %v240_v28 }
  0xe7   :  { %887 = vmatpush1.msra.mxu0 %v6556_v10  ;;  %5015 = vmatprep.subr.mxu1 %v8489_v0 }
  0xe8   :  { %651 = vmatmul.mubr.f32.gmra.mxu0 %v6433_v35  ;;  %888 = vmatprep.subr.mxu0 %v6562_v12  ;;  %8681 = vst [vmem:[#allocation59_spill] sm:$0xff] %v6697_v29  ;;  %v6703_v31 = vrot.slane %v237_v30, %v6697_v29  ;;  %8682 = vst [vmem:[#allocation60_spill] sm:$0xff] %v6707_v33  ;;  %v6717_v38 = vrot.slane %v237_v30, %v6707_v33 }
  0xe9   :  { %889 = vmatpush1.msra.mxu0 %v6565_v13  ;;  %924 = vmatprep.mubr.f32.mxu0 %v8489_v0  ;;  %8683 = vst [vmem:[#allocation61_spill] sm:$0xff] %v6711_v36  ;;  %v6720_v40 = vrot.slane %v237_v30, %v6711_v36 }
  0xea   :  { %890 = vmatprep.subr.mxu0 %v6569_v14  ;;  %5016 = vmatpush3.msra.mxu1 %v6576_v16 }
  0xeb   :  { %891 = vmatpush1.msra.mxu0 %v6574_v15  ;;  %5017 = vmatprep.subr.mxu1 %v8489_v0 }
  0xec   :  { %925 = vmatmul.mubr.f32.vlgmr.msra.gmra.mxu0 %v8489_v0  ;;  %5018 = vmatpush3.msra.mxu1 %v6582_v17 }
  0xed   :  { %5037 = vmatprep.mubr.msk.f32.mxu1 %vm6245_vm0, %v8489_v0  ;;  %5019 = vmatprep.subr.mxu1 %v8489_v0 }
  0xee   :  { %1032 = vmatprep.subr.mxu0 %v6439_v42  ;;  %5020 = vmatpush3.msra.mxu1 %v6588_v18 }
  0xef   :  { %1033 = vmatpush1.msra.mxu0 %v6442_v43  ;;  %5021 = vmatprep.subr.mxu1 %v8489_v0 }
  0xf0   :  { %1034 = vmatprep.subr.mxu0 %v6446_v44  ;;  %5022 = vmatpush3.msra.mxu1 %v6594_v19 }
  0xf1   :  { %1035 = vmatpush1.msra.mxu0 %v6450_v45  ;;  %5023 = vmatprep.subr.mxu1 %v8489_v0 }
  0xf2   :  { %1036 = vmatprep.subr.mxu0 %v6456_v46  ;;  %5024 = vmatpush3.msra.mxu1 %v6600_v20 }
  0xf3   :  { %1037 = vmatpush1.msra.mxu0 %v6459_v47  ;;  %5025 = vmatprep.subr.mxu1 %v8489_v0 }
  0xf4   :  { %1038 = vmatprep.subr.mxu0 %v6464_v48  ;;  %5026 = vmatpush3.msra.mxu1 %v6606_v21 }
  0xf5   :  { %1039 = vmatpush1.msra.mxu0 %v6470_v50  ;;  %5027 = vmatprep.subr.mxu1 %v8489_v0 }
  0xf6   :  { %1040 = vmatprep.subr.mxu0 %v6474_v51  ;;  %5028 = vmatpush3.msra.mxu1 %v6612_v22 }
  0xf7   :  { %1041 = vmatpush1.msra.mxu0 %v6477_v52  ;;  %5029 = vmatprep.subr.mxu1 %v8489_v0 }
  0xf8   :  { %1042 = vmatprep.subr.mxu0 %v6482_v53  ;;  %5030 = vmatpush3.msra.mxu1 %v6618_v23 }
  0xf9   :  { %1043 = vmatpush1.msra.mxu0 %v6486_v54  ;;  %5031 = vmatprep.subr.mxu1 %v8489_v0 }
  0xfa   :  { %1044 = vmatprep.subr.mxu0 %v6490_v55  ;;  %5032 = vmatpush3.msra.mxu1 %v6624_v24 }
  0xfb   :  { %1045 = vmatpush1.msra.mxu0 %v6494_v56  ;;  %5033 = vmatprep.subr.mxu1 %v8489_v0 }
  0xfc   :  { %1046 = vmatprep.subr.mxu0 %v6498_v57  ;;  %5034 = vmatpush3.msra.mxu1 %v6630_v25 }
  0xfd   :  { %1047 = vmatpush1.msra.mxu0 %v6502_v58  ;;  %5035 = vmatprep.subr.mxu1 %v8489_v0 }
  0xfe   :  { %1048 = vmatprep.subr.mxu0 %v6508_v60  ;;  %5036 = vmatpush3.msra.mxu1 %v6636_v26 }
  0xff   :  { %1049 = vmatpush1.msra.mxu0 %v6511_v61  ;;  %5038 = vmatmul.mubr.f32.vlgmr.msra.gmra.mxu1 %v8489_v0 }
 0x100   :  { %5040 = vmatprep.subr.mxu1 %v8489_v0  ;;  %1050 = vmatprep.subr.mxu0 %v6515_v62 }
 0x101   :  { %5041 = vmatpush3.msra.mxu1 %v6466_v49  ;;  %1051 = vmatpush1.msra.mxu0 %v6520_v63 }
 0x102   :  { %5042 = vmatprep.subr.mxu1 %v8489_v0  ;;  %1052 = vmatprep.subr.mxu0 %v6526_v2 }
 0x103   :  { %5043 = vmatpush3.msra.mxu1 %v6504_v59  ;;  %1053 = vmatpush1.msra.mxu0 %v6529_v3 }
 0x104   :  { %5044 = vmatprep.subr.mxu1 %v8489_v0  ;;  %1054 = vmatprep.subr.mxu0 %v6533_v4 }
 0x105   :  { %5045 = vmatpush3.msra.mxu1 %v6522_v1  ;;  %1055 = vmatpush1.msra.mxu0 %v6538_v5 }
 0x106   :  { %5046 = vmatprep.subr.mxu1 %v8489_v0  ;;  %1056 = vmatprep.subr.mxu0 %v6544_v7 }
 0x107   :  { %5047 = vmatpush3.msra.mxu1 %v6540_v6  ;;  %1057 = vmatpush1.msra.mxu0 %v6547_v8 }
 0x108   :  { %5048 = vmatprep.subr.mxu1 %v8489_v0  ;;  %1058 = vmatprep.subr.mxu0 %v6551_v9 }
 0x109   :  { %5049 = vmatpush3.msra.mxu1 %v6558_v11  ;;  %1059 = vmatpush1.msra.mxu0 %v6556_v10 }
 0x10a   :  { %5050 = vmatprep.subr.mxu1 %v8489_v0  ;;  %1060 = vmatprep.subr.mxu0 %v6562_v12 }
 0x10b   :  { %5051 = vmatpush3.msra.mxu1 %v6576_v16  ;;  %1061 = vmatpush1.msra.mxu0 %v6565_v13 }
 0x10c   :  { %5052 = vmatprep.subr.mxu1 %v8489_v0  ;;  %1062 = vmatprep.subr.mxu0 %v6569_v14 }
 0x10d   :  { %5053 = vmatpush3.msra.mxu1 %v6582_v17  ;;  %1063 = vmatpush1.msra.mxu0 %v6574_v15 }
 0x10e   :  { %5054 = vmatprep.subr.mxu1 %v8489_v0  ;;  %1096 = vmatprep.mubr.f32.mxu0 %v8489_v0 }
 0x10f   :  { %5055 = vmatpush3.msra.mxu1 %v6588_v18  ;;  %5072 = vmatprep.mubr.msk.f32.mxu1 %vm6245_vm0, %v8489_v0 }
 0x110   :  { %5056 = vmatprep.subr.mxu1 %v8489_v0  ;;  %1204 = vmatprep.subr.mxu0 %v6439_v42 }
 0x111   :  { %5057 = vmatpush3.msra.mxu1 %v6594_v19 }
 0x112   :  { %5058 = vmatprep.subr.mxu1 %v8489_v0 }
 0x113   :  { %5059 = vmatpush3.msra.mxu1 %v6600_v20 }
 0x114   :  { %5060 = vmatprep.subr.mxu1 %v8489_v0 }
 0x115   :  { %5061 = vmatpush3.msra.mxu1 %v6606_v21 }
 0x116   :  { %5062 = vmatprep.subr.mxu1 %v8489_v0 }
 0x117   :  { %5063 = vmatpush3.msra.mxu1 %v6612_v22 }
 0x118   :  { %5064 = vmatprep.subr.mxu1 %v8489_v0 }
 0x119   :  { %5065 = vmatpush3.msra.mxu1 %v6618_v23 }
 0x11a   :  { %5066 = vmatprep.subr.mxu1 %v8489_v0 }
 0x11b   :  { %5067 = vmatpush3.msra.mxu1 %v6624_v24 }
 0x11c   :  { %5068 = vmatprep.subr.mxu1 %v8489_v0 }
 0x11d   :  { %5069 = vmatpush3.msra.mxu1 %v6630_v25 }
 0x11e   :  { %5070 = vmatprep.subr.mxu1 %v8489_v0 }
 0x11f   :  { %5071 = vmatpush3.msra.mxu1 %v6636_v26 }
 0x120   :  { %5075 = vmatprep.subr.mxu1 %v8489_v0 }
 0x15d   :  { %v6705_v32 = vpop.f32.mrf.mxu0 }
 0x15f   :  { %v6709_v34 = vpop.f32.mrf.mxu0  ;;  %v4951_v35 = vpop.f32.mrf.mxu1 }
 0x160   :  { %v6714_v37 = vadd.f32 %v4951_v35, %v6703_v31 }
 0x161   :  { %v6741_v12 = vpop.f32.mrf.mxu1 }
 0x163   :  { %v326_v39 = vpop.f32.mrf.mxu0 }
 0x164   :  { %v6723_v41 = vadd.f32 %v326_v39, %v6717_v38 }
 0x165   :  { %v328_v27 = vpop.f32.mrf.mxu0 }
 0x166   :  { %v6726_v0 = vadd.f32 %v328_v27, %v6720_v40 }
 0x168   :  { %v332_v42 = vpop.f32.mrf.mxu0 }
 0x169   :  { %v6729_v28 = vadd.f32 %v332_v42, %v6717_v38 }
 0x16a   :  { %v334_v35 = vpop.f32.mrf.mxu0 }
 0x16b   :  { %v6732_v26 = vadd.f32 %v334_v35, %v6720_v40 }
 0x16d   :  { %v338_v15 = vpop.f32.mrf.mxu0 }
 0x16e   :  { %v6735_v14 = vadd.f32 %v338_v15, %v6717_v38 }
 0x16f   :  { %v340_v30 = vpop.f32.mrf.mxu0 }
 0x170   :  { %v6738_v39 = vadd.f32 %v340_v30, %v6720_v40 }
 0x172   :  { %v344_v25 = vpop.f32.mrf.mxu0 }
 0x173   :  { %v345_v27 = vadd.f32 %v344_v25, %v6717_v38 }
 0x174   :  { %v346_v13 = vpop.f32.mrf.mxu0 }
 0x175   :  { %v347_v42 = vadd.f32 %v346_v13, %v6720_v40 }
 0x178   :  { %v350_v24 = vpop.f32.mrf.mxu0  ;;  %v4954_v10 = vpop.f32.mrf.mxu1 }
 0x179   :  { %v351_v35 = vadd.f32 %v350_v24, %v6717_v38  ;;  %v449_v9 = vadd.f32 %v4954_v10, %v6703_v31 }
 0x17a   :  { %v352_v15 = vpop.f32.mrf.mxu0  ;;  %v443_v8 = vpop.f32.mrf.mxu1 }
 0x17b   :  { %v353_v23 = vadd.f32 %v352_v15, %v6720_v40  ;;  %v444_v30 = vadd.f32 %v443_v8, %v6703_v31 }
 0x17e   :  { %v356_v7 = vpop.f32.mrf.mxu0  ;;  %v4957_v22 = vpop.f32.mrf.mxu1 }
 0x17f   :  { %v357_v25 = vadd.f32 %v356_v7, %v6717_v38  ;;  %v459_v5 = vadd.f32 %v4957_v22, %v6703_v31 }
 0x180   :  { %v358_v4 = vpop.f32.mrf.mxu0  ;;  %v453_v21 = vpop.f32.mrf.mxu1 }
 0x181   :  { %v359_v13 = vadd.f32 %v358_v4, %v6720_v40  ;;  %v454_v24 = vadd.f32 %v453_v21, %v6703_v31 }
 0x184   :  { %v362_v3 = vpop.f32.mrf.mxu0  ;;  %v4960_v2 = vpop.f32.mrf.mxu1 }
 0x185   :  { %v363_v10 = vadd.f32 %v362_v3, %v6717_v38  ;;  %v469_v15 = vadd.f32 %v4960_v2, %v6703_v31 }
 0x186   :  { %v364_v20 = vpop.f32.mrf.mxu0  ;;  %v463_v63 = vpop.f32.mrf.mxu1 }
 0x187   :  { %v365_v8 = vadd.f32 %v364_v20, %v6720_v40  ;;  %v464_v7 = vadd.f32 %v463_v63, %v6703_v31 }
 0x18a   :  { %v610_v62 = vpop.f32.mrf.mxu0  ;;  %v4995_v19 = vpop.f32.mrf.mxu1 }
 0x18b   :  { %v6756_v22 = vadd.f32 %v610_v62, %v363_v10  ;;  %v6758_v4 = vadd.f32 %v4995_v19, %v464_v7 }
 0x18c   :  { %v612_v61 = vpop.f32.mrf.mxu0  ;;  %v723_v60 = vpop.f32.mrf.mxu1 }
 0x18d   :  { %8684 = vst [vmem:[#allocation62_spill] sm:$0xff] %v6756_v22  ;;  %8685 = vst [vmem:[#allocation63_spill] sm:$0xff] %v6758_v4  ;;  %v6760_v21 = vadd.f32 %v612_v61, %v365_v8  ;;  %v6762_v3 = vadd.f32 %v723_v60, %v469_v15  ;;  %v8726_v22 = vld [vmem:[#allocation56_spill] sm:$0xff]  ;;  %v8727_v4 = vld [vmem:[#allocation45_spill] sm:$0xff] }
 0x18e   :  { %v4998_v2 = vpop.f32.mrf.mxu1 }
 0x18f   :  { %8686 = vst [vmem:[#allocation64_spill] sm:$0xff] %v6760_v21  ;;  %8687 = vst [vmem:[#allocation65_spill] sm:$0xff] %v6762_v3  ;;  %v616_v18 = vpop.f32.mrf.mxu0  ;;  %v6766_v20 = vadd.f32 %v4998_v2, %v454_v24 }
 0x190   :  { %v6764_v58 = vadd.f32 %v616_v18, %v357_v25  ;;  %v733_v63 = vpop.f32.mrf.mxu1 }
 0x191   :  { %8689 = vst [vmem:[#allocation67_spill] sm:$0xff] %v6766_v20  ;;  %v618_v57 = vpop.f32.mrf.mxu0  ;;  %v6770_v62 = vadd.f32 %v733_v63, %v459_v5  ;;  %v8733_v20 = vld [vmem:[#allocation30_spill] sm:$0xff] }
 0x192   :  { %8688 = vst [vmem:[#allocation66_spill] sm:$0xff] %v6764_v58  ;;  %v6768_v17 = vadd.f32 %v618_v57, %v359_v13  ;;  %v8729_v58 = vld [vmem:[#allocation57_spill] sm:$0xff] }
 0x193   :  { %8691 = vst [vmem:[#allocation69_spill] sm:$0xff] %v6770_v62  ;;  %v5001_v19 = vpop.f32.mrf.mxu1  ;;  %v622_v10 = vpop.f32.mrf.mxu0  ;;  %v8730_v62 = vld [vmem:[#allocation47_spill] sm:$0xff] }
 0x194   :  { %8690 = vst [vmem:[#allocation68_spill] sm:$0xff] %v6768_v17  ;;  %v6772_v7 = vadd.f32 %v5001_v19, %v444_v30  ;;  %v6774_v61 = vadd.f32 %v622_v10, %v351_v35  ;;  %v8728_v17 = vld [vmem:[#allocation46_spill] sm:$0xff] }
 0x195   :  { %v743_v60 = vpop.f32.mrf.mxu1  ;;  %v624_v15 = vpop.f32.mrf.mxu0 }
 0x196   :  { %8692 = vst [vmem:[#allocation70_spill] sm:$0xff] %v6772_v7  ;;  %8693 = vst [vmem:[#allocation71_spill] sm:$0xff] %v6774_v61  ;;  %v6776_v8 = vadd.f32 %v743_v60, %v449_v9  ;;  %v6778_v18 = vadd.f32 %v624_v15, %v353_v23  ;;  %v8732_v61 = vld [vmem:[#allocation58_spill] sm:$0xff] }
 0x197   :  { %v5004_v25 = vpop.f32.mrf.mxu1 }
 0x198   :  { %8694 = vst [vmem:[#allocation72_spill] sm:$0xff] %v6776_v8  ;;  %8695 = vst [vmem:[#allocation73_spill] sm:$0xff] %v6778_v18  ;;  %v628_v24 = vpop.f32.mrf.mxu0  ;;  %v8731_v18 = vld [vmem:[#allocation48_spill] sm:$0xff] }
 0x199   :  { %v6780_v2 = vadd.f32 %v628_v24, %v345_v27  ;;  %v753_v57 = vpop.f32.mrf.mxu1 }
 0x19a   :  { %v630_v13 = vpop.f32.mrf.mxu0  ;;  %v6783_v5 = vadd.f32 %v753_v57, %v6714_v37 }
 0x19b   :  { %8696 = vst [vmem:[#allocation74_spill] sm:$0xff] %v6780_v2  ;;  %v6785_v63 = vadd.f32 %v630_v13, %v347_v42 }
 0x19c   :  { %v634_v30 = vpop.f32.mrf.mxu0 }
 0x19d   :  { %8697 = vst [vmem:[#allocation75_spill] sm:$0xff] %v6785_v63  ;;  %v6788_v35 = vadd.f32 %v634_v30, %v6735_v14  ;;  %v834_v14 = vld [vmem:[%s8478_s5] sm:$0x7] }
 0x19e   :  { %v636_v19 = vpop.f32.mrf.mxu0 }
 0x19f   :  { %8698 = vst [vmem:[#allocation76_spill] sm:$0xff] %v6788_v35  ;;  %v6791_v9 = vadd.f32 %v636_v19, %v6738_v39  ;;  %v6815_v19 = vrot.slane %v834_v14, %v6711_v36  ;;  %v8724_v36 = vld [vmem:[#allocation43_spill] sm:$0xff] }
 0x1a0   :  { %v640_v23 = vpop.f32.mrf.mxu0 }
 0x1a1   :  { %8699 = vst [vmem:[#allocation77_spill] sm:$0xff] %v6791_v9  ;;  %v6794_v10 = vadd.f32 %v640_v23, %v6729_v28  ;;  %v6809_v28 = vrot.slane %v834_v14, %v6707_v33 }
 0x1a2   :  { %v642_v27 = vpop.f32.mrf.mxu0 }
 0x1a3   :  { %8700 = vst [vmem:[#allocation78_spill] sm:$0xff] %v6794_v10  ;;  %v6797_v60 = vadd.f32 %v642_v27, %v6732_v26  ;;  %8702 = vst [vmem:[#allocation80_spill] sm:$0xff] %v6809_v28  ;;  %v321_v26 = vadd.f32 %v6705_v32, %v6717_v38 }
 0x1a4   :  { %v646_v37 = vpop.f32.mrf.mxu0 }
 0x1a5   :  { %8701 = vst [vmem:[#allocation79_spill] sm:$0xff] %v6797_v60  ;;  %v6800_v42 = vadd.f32 %v646_v37, %v6723_v41 }
 0x1a6   :  { %v648_v15 = vpop.f32.mrf.mxu0 }
 0x1a7   :  { %v6806_v39 = vadd.f32 %v648_v15, %v6726_v0  ;;  %v323_v0 = vadd.f32 %v6709_v34, %v6720_v40  ;;  %v434_v40 = vadd.f32 %v6741_v12, %v6703_v31  ;;  %v8704_v12 = vmov 0.0   ;;  %v8705_v31 = vld [vmem:[#allocation49_spill] sm:$0xff] }
 0x1a8   :  { %v652_v24 = vpop.f32.mrf.mxu0 }
 0x1a9   :  { %v841_v30 = vadd.f32 %v652_v24, %v321_v26 }
 0x1aa   :  { %v654_v57 = vpop.f32.mrf.mxu0 }
 0x1ab   :  { %v842_v33 = vadd.f32 %v654_v57, %v323_v0 }
 0x1ac   :  { %v926_v13 = vpop.f32.mrf.mxu0 }
 0x1ad   :  { %v927_v41 = vadd.f32 %v926_v13, %v6809_v28  ;;  %v6821_v13 = vrot.slane %v834_v14, %v6697_v29  ;;  %v8725_v29 = vld [vmem:[#allocation44_spill] sm:$0xff] }
 0x1ae   :  { %v928_v23 = vpop.f32.mrf.mxu0 }
 0x1af   :  { %v1001_v27 = vadd.f32 %v927_v41, %v841_v30  ;;  %v929_v15 = vadd.f32 %v928_v23, %v6815_v19  ;;  %v843_v23 = vadd.f32 %v5004_v25, %v434_v40  ;;  %v8706_v25 = vld [vmem:[#allocation31_spill] sm:$0xff]  ;;  %v8714_v40 = vld [vmem:[#allocation52_spill] sm:$0xff] }
 0x1b1   :  { %v4481_v37 = vmul.f32 -1.442695, %v1001_v27  ;;  %v1008_v3 = vadd.f32 %v929_v15, %v842_v33 }
 0x1b3   :  { %5740 = vpow2.f32 %v4481_v37  ;;  %v4482_v21 = vmul.f32 -1.442695, %v1008_v3 }
 0x1b5   :  { %5742 = vpow2.f32 %v4482_v21 }
 0x1bf   :  { %v997_v38 = vpop.f32.mrf.mxu1 }
 0x1c0   :  { %v5741_v32 = vpop.eup %5740  ;;  %v998_v34 = vadd.f32 %v997_v38, %v6821_v13  ;;  %v8708_v38 = vld [vmem:[#allocation50_spill] sm:$0xff] }
 0x1c1   :  { %v1005_v24 = vadd.f32 1.0, %v5741_v32  ;;  %v5039_v26 = vpop.f32.mrf.mxu1  ;;  %v8707_v32 = vld [vmem:[#allocation32_spill] sm:$0xff] }
 0x1c2   :  { %v5743_v30 = vpop.eup %5742  ;;  %v8710_v26 = vld [vmem:[#allocation34_spill] sm:$0xff] }
 0x1c3   :  { %5744 = vrcp.f32 %v1005_v24  ;;  %v1012_v41 = vadd.f32 1.0, %v5743_v30  ;;  %v8709_v24 = vld [vmem:[#allocation33_spill] sm:$0xff]  ;;  %v8711_v30 = vld [vmem:[#allocation51_spill] sm:$0xff] }
 0x1c5   :  { %5746 = vrcp.f32 %v1012_v41  ;;  %v8712_v41 = vld [vmem:[#allocation35_spill] sm:$0xff] }
 0x1d0   :  { %v5745_v57 = vpop.eup %5744 }
 0x1d1   :  { %v1015_v33 = vmul.f32 %v5745_v57, %v998_v34  ;;  %v8713_v34 = vld [vmem:[#allocation36_spill] sm:$0xff]  ;;  %v8715_v57 = vld [vmem:[#allocation37_spill] sm:$0xff] }
 0x1d2   :  { %v5747_v3 = vpop.eup %5746 }
 0x1d3   :  { %v1016_v21 = vadd.f32 %v1015_v33, %v843_v23  ;;  %v1018_v27 = vsub.f32 1.0, %v5747_v3  ;;  %v1020_v37 = vmul.f32 0.0, %v5747_v3  ;;  %v8716_v23 = vld [vmem:[#allocation38_spill] sm:$0xff]  ;;  %v8717_v33 = vld [vmem:[#allocation53_spill] sm:$0xff]  ;;  %v8719_v3 = vld [vmem:[#allocation40_spill] sm:$0xff] }
 0x1d5   :  { %5748 = vtanh.f32 %v1016_v21  ;;  %v8718_v21 = vld [vmem:[#allocation39_spill] sm:$0xff] }
 0x1e2   :  { %v5749_v0 = vpop.eup %5748 }
 0x1e3   :  { %v1019_v15 = vmul.f32 %v5749_v0, %v1018_v27  ;;  %v8720_v27 = vld [vmem:[#allocation54_spill] sm:$0xff]  ;;  %v8721_v0 = vld [vmem:[#allocation41_spill] sm:$0xff] }
 0x1e5   :  { %v6826_v14 = vadd.f32 %v1020_v37, %v1019_v15  ;;  %v8722_v37 = vld [vmem:[#allocation42_spill] sm:$0xff]  ;;  %v8723_v15 = vld [vmem:[#allocation55_spill] sm:$0xff] }
 0x1e7   :  { %8703 = vst [vmem:[#allocation81_spill] sm:$0xff] %v6826_v14  ;;  %1097 = vmatmul.mubr.f32.vlgmr.msra.gmra.mxu0 %v6826_v14  ;;  %5073 = vmatmul.mubr.f32.vlgmr.msra.gmra.mxu1 %v6826_v14 }
 0x1e8   :  { %1205 = vmatpush1.msra.mxu0 %v6442_v43  ;;  %5076 = vmatpush3.msra.mxu1 %v6466_v49 }
 0x1e9   :  { %1206 = vmatprep.subr.mxu0 %v6446_v44  ;;  %5077 = vmatprep.subr.mxu1 %v8704_v12 }
 0x1ea   :  { %1207 = vmatpush1.msra.mxu0 %v6450_v45  ;;  %5078 = vmatpush3.msra.mxu1 %v6504_v59 }
 0x1eb   :  { %1208 = vmatprep.subr.mxu0 %v6456_v46  ;;  %5079 = vmatprep.subr.mxu1 %v8704_v12 }
 0x1ec   :  { %1209 = vmatpush1.msra.mxu0 %v6459_v47  ;;  %5080 = vmatpush3.msra.mxu1 %v6522_v1 }
 0x1ed   :  { %1210 = vmatprep.subr.mxu0 %v6464_v48  ;;  %5081 = vmatprep.subr.mxu1 %v8704_v12 }
 0x1ee   :  { %1211 = vmatpush1.msra.mxu0 %v6470_v50  ;;  %5082 = vmatpush3.msra.mxu1 %v6540_v6 }
 0x1ef   :  { %1212 = vmatprep.subr.mxu0 %v6474_v51  ;;  %5083 = vmatprep.subr.mxu1 %v8704_v12 }
 0x1f0   :  { %1213 = vmatpush1.msra.mxu0 %v6477_v52  ;;  %5084 = vmatpush3.msra.mxu1 %v6558_v11 }
 0x1f1   :  { %1214 = vmatprep.subr.mxu0 %v6482_v53  ;;  %5085 = vmatprep.subr.mxu1 %v8704_v12 }
 0x1f2   :  { %1215 = vmatpush1.msra.mxu0 %v6486_v54  ;;  %5086 = vmatpush3.msra.mxu1 %v6576_v16 }
 0x1f3   :  { %1216 = vmatprep.subr.mxu0 %v6490_v55  ;;  %5087 = vmatprep.subr.mxu1 %v8704_v12 }
 0x1f4   :  { %1217 = vmatpush1.msra.mxu0 %v6494_v56  ;;  %5088 = vmatpush3.msra.mxu1 %v8705_v31 }
 0x1f5   :  { %1218 = vmatprep.subr.mxu0 %v8706_v25  ;;  %5089 = vmatprep.subr.mxu1 %v8704_v12 }
 0x1f6   :  { %1219 = vmatpush1.msra.mxu0 %v8707_v32  ;;  %5090 = vmatpush3.msra.mxu1 %v8708_v38 }
 0x1f7   :  { %1220 = vmatprep.subr.mxu0 %v8709_v24  ;;  %5091 = vmatprep.subr.mxu1 %v8704_v12 }
 0x1f8   :  { %1221 = vmatpush1.msra.mxu0 %v8710_v26  ;;  %5092 = vmatpush3.msra.mxu1 %v8711_v30 }
 0x1f9   :  { %1222 = vmatprep.subr.mxu0 %v8712_v41  ;;  %5093 = vmatprep.subr.mxu1 %v8704_v12 }
 0x1fa   :  { %1223 = vmatpush1.msra.mxu0 %v8713_v34  ;;  %5094 = vmatpush3.msra.mxu1 %v8714_v40 }
 0x1fb   :  { %1224 = vmatprep.subr.mxu0 %v8715_v57  ;;  %5095 = vmatprep.subr.mxu1 %v8704_v12 }
 0x1fc   :  { %1225 = vmatpush1.msra.mxu0 %v8716_v23  ;;  %5096 = vmatpush3.msra.mxu1 %v8717_v33 }
 0x1fd   :  { %1226 = vmatprep.subr.mxu0 %v8718_v21  ;;  %5097 = vmatprep.subr.mxu1 %v8704_v12 }
 0x1fe   :  { %1227 = vmatpush1.msra.mxu0 %v8719_v3  ;;  %5098 = vmatpush3.msra.mxu1 %v8720_v27 }
 0x1ff   :  { %1228 = vmatprep.subr.mxu0 %v8721_v0  ;;  %5099 = vmatprep.subr.mxu1 %v8704_v12 }
 0x200   :  { %1229 = vmatpush1.msra.mxu0 %v8722_v37  ;;  %5100 = vmatpush3.msra.mxu1 %v8723_v15 }
 0x201   :  { %1230 = vmatprep.subr.mxu0 %v8724_v36  ;;  %5101 = vmatprep.subr.mxu1 %v8704_v12 }
 0x202   :  { %1231 = vmatpush1.msra.mxu0 %v8725_v29  ;;  %5102 = vmatpush3.msra.mxu1 %v8726_v22 }
 0x203   :  { %1232 = vmatprep.subr.mxu0 %v8727_v4  ;;  %5103 = vmatprep.subr.mxu1 %v8704_v12 }
 0x204   :  { %1233 = vmatpush1.msra.mxu0 %v8728_v17  ;;  %5104 = vmatpush3.msra.mxu1 %v8729_v58 }
 0x205   :  { %1234 = vmatprep.subr.mxu0 %v8730_v62  ;;  %5105 = vmatprep.subr.mxu1 %v8704_v12 }
 0x206   :  { %1235 = vmatpush1.msra.mxu0 %v8731_v18  ;;  %1268 = vmatprep.mubr.f32.mxu0 %v8704_v12 }
 0x207   :  { %5106 = vmatpush3.msra.mxu1 %v8732_v61  ;;  %5107 = vmatprep.mubr.msk.f32.mxu1 %vm6245_vm0, %v8704_v12 }
 0x208   :  { %1376 = vmatprep.subr.mxu0 %v8733_v20  ;;  %5110 = vmatprep.subr.mxu1 %v8704_v12 }
 0x2a7   :  { %v1098_v63 = vpop.f32.mrf.mxu0  ;;  %v1169_v2 = vpop.f32.mrf.mxu1 }
 0x2a8   :  { %v1099_v8 = vadd.f32 %v1098_v63, %v6809_v28  ;;  %v1170_v4 = vadd.f32 %v1169_v2, %v6821_v13 }
 0x2a9   :  { %v1100_v9 = vpop.f32.mrf.mxu0  ;;  %v5074_v35 = vpop.f32.mrf.mxu1 }
 0x2aa   :  { %v1173_v7 = vadd.f32 %v1099_v8, %v6800_v42  ;;  %v1101_v10 = vadd.f32 %v1100_v9, %v6815_v19 }
 0x2ac   :  { %v4483_v60 = vmul.f32 -1.442695, %v1173_v7  ;;  %v1180_v61 = vadd.f32 %v1101_v10, %v6806_v39 }
 0x2ae   :  { %5750 = vpow2.f32 %v4483_v60  ;;  %v4484_v18 = vmul.f32 -1.442695, %v1180_v61 }
 0x2b0   :  { %5752 = vpow2.f32 %v4484_v18 }
 0x2bb   :  { %v5751_v62 = vpop.eup %5750 }
 0x2bc   :  { %v1177_v20 = vadd.f32 1.0, %v5751_v62 }
 0x2bd   :  { %v5753_v58 = vpop.eup %5752 }
 0x2be   :  { %5754 = vrcp.f32 %v1177_v20  ;;  %v1184_v17 = vadd.f32 1.0, %v5753_v58  ;;  %v8744_v20 = vld [vmem:[#allocation79_spill] sm:$0xff] }
 0x2c0   :  { %5756 = vrcp.f32 %v1184_v17 }
 0x2cb   :  { %v5755_v63 = vpop.eup %5754 }
 0x2cc   :  { %v1187_v28 = vmul.f32 %v5755_v63, %v1170_v4  ;;  %v6992_v63 = vld [vmem:[#allocation10 + $0x158] sm:$0xff] }
 0x2cd   :  { %v5757_v7 = vpop.eup %5756 }
 0x2ce   :  { %v1188_v8 = vadd.f32 %v1187_v28, %v6783_v5  ;;  %v1190_v35 = vsub.f32 1.0, %v5757_v7  ;;  %v1192_v61 = vmul.f32 %v5757_v7, %v6826_v14  ;;  %v7000_v7 = vld [vmem:[#allocation10 + $0x140] sm:$0xff] }
 0x2d0   :  { %5758 = vtanh.f32 %v1188_v8  ;;  %v6996_v8 = vld [vmem:[#allocation10 + $0x150] sm:$0xff] }
 0x2dd   :  { %v5759_v9 = vpop.eup %5758 }
 0x2de   :  { %v1191_v60 = vmul.f32 %v5759_v9, %v1190_v35  ;;  %v7004_v35 = vld [vmem:[#allocation10 + $0x138] sm:$0xff]  ;;  %v7008_v9 = vld [vmem:[#allocation10 + $0x128] sm:$0xff] }
 0x2e0   :  { %v6904_v18 = vadd.f32 %v1192_v61, %v1191_v60  ;;  %v7012_v60 = vld [vmem:[#allocation10 + $0x120] sm:$0xff]  ;;  %v7020_v61 = vld [vmem:[#allocation10 + $0x108] sm:$0xff] }
 0x2e2   :  { %8734 = vst [vmem:[#allocation49_spill] sm:$0xff] %v6904_v18  ;;  %1269 = vmatmul.mubr.f32.vlgmr.msra.gmra.mxu0 %v6904_v18  ;;  %5108 = vmatmul.mubr.f32.vlgmr.msra.gmra.mxu1 %v6904_v18 }
 0x2e3   :  { %1377 = vmatpush1.msra.mxu0 %v6442_v43  ;;  %5111 = vmatpush3.msra.mxu1 %v6466_v49  ;;  %v8735_v43 = vld [vmem:[#allocation45_spill] sm:$0xff]  ;;  %v8741_v49 = vld [vmem:[#allocation30_spill] sm:$0xff] }
 0x2e4   :  { %1378 = vmatprep.subr.mxu0 %v6446_v44  ;;  %5112 = vmatprep.subr.mxu1 %v8704_v12  ;;  %v8736_v44 = vld [vmem:[#allocation46_spill] sm:$0xff] }
 0x2e5   :  { %1379 = vmatpush1.msra.mxu0 %v6450_v45  ;;  %5113 = vmatpush3.msra.mxu1 %v6504_v59  ;;  %v8737_v45 = vld [vmem:[#allocation57_spill] sm:$0xff] }
 0x2e6   :  { %1380 = vmatprep.subr.mxu0 %v6456_v46  ;;  %5114 = vmatprep.subr.mxu1 %v8704_v12  ;;  %v8738_v46 = vld [vmem:[#allocation47_spill] sm:$0xff] }
 0x2e7   :  { %1381 = vmatpush1.msra.mxu0 %v6459_v47  ;;  %5115 = vmatpush3.msra.mxu1 %v6522_v1  ;;  %v8739_v47 = vld [vmem:[#allocation48_spill] sm:$0xff] }
 0x2e8   :  { %1382 = vmatprep.subr.mxu0 %v6464_v48  ;;  %5116 = vmatprep.subr.mxu1 %v8704_v12  ;;  %v8740_v48 = vld [vmem:[#allocation58_spill] sm:$0xff] }
 0x2e9   :  { %1383 = vmatpush1.msra.mxu0 %v6470_v50  ;;  %5117 = vmatpush3.msra.mxu1 %v6540_v6 }
 0x2ea   :  { %1384 = vmatprep.subr.mxu0 %v6474_v51  ;;  %5118 = vmatprep.subr.mxu1 %v8704_v12 }
 0x2eb   :  { %1385 = vmatpush1.msra.mxu0 %v6477_v52  ;;  %5119 = vmatpush3.msra.mxu1 %v6558_v11  ;;  %v8742_v52 = vld [vmem:[#allocation80_spill] sm:$0xff] }
 0x2ec   :  { %1386 = vmatprep.subr.mxu0 %v6482_v53  ;;  %5120 = vmatprep.subr.mxu1 %v8704_v12 }
 0x2ed   :  { %1387 = vmatpush1.msra.mxu0 %v6486_v54  ;;  %5121 = vmatpush3.msra.mxu1 %v6576_v16 }
 0x2ee   :  { %1388 = vmatprep.subr.mxu0 %v6490_v55  ;;  %5122 = vmatprep.subr.mxu1 %v8704_v12 }
 0x2ef   :  { %1389 = vmatpush1.msra.mxu0 %v6494_v56  ;;  %5123 = vmatpush3.msra.mxu1 %v8705_v31  ;;  %v8743_v56 = vld [vmem:[#allocation78_spill] sm:$0xff] }
 0x2f0   :  { %1390 = vmatprep.subr.mxu0 %v8706_v25  ;;  %5124 = vmatprep.subr.mxu1 %v8704_v12 }
 0x2f1   :  { %1391 = vmatpush1.msra.mxu0 %v8707_v32  ;;  %5125 = vmatpush3.msra.mxu1 %v8708_v38 }
 0x2f2   :  { %1392 = vmatprep.subr.mxu0 %v8709_v24  ;;  %5126 = vmatprep.subr.mxu1 %v8704_v12  ;;  %v8745_v24 = vld [vmem:[#allocation70_spill] sm:$0xff] }
 0x2f3   :  { %1393 = vmatpush1.msra.mxu0 %v8710_v26  ;;  %5127 = vmatpush3.msra.mxu1 %v8711_v30 }
 0x2f4   :  { %1394 = vmatprep.subr.mxu0 %v8712_v41  ;;  %5128 = vmatprep.subr.mxu1 %v8704_v12 }
 0x2f5   :  { %1395 = vmatpush1.msra.mxu0 %v8713_v34  ;;  %5129 = vmatpush3.msra.mxu1 %v8714_v40 }
 0x2f6   :  { %1396 = vmatprep.subr.mxu0 %v8715_v57  ;;  %5130 = vmatprep.subr.mxu1 %v8704_v12 }
 0x2f7   :  { %1397 = vmatpush1.msra.mxu0 %v8716_v23  ;;  %5131 = vmatpush3.msra.mxu1 %v8717_v33 }
 0x2f8   :  { %1398 = vmatprep.subr.mxu0 %v8718_v21  ;;  %5132 = vmatprep.subr.mxu1 %v8704_v12 }
 0x2f9   :  { %1399 = vmatpush1.msra.mxu0 %v8719_v3  ;;  %5133 = vmatpush3.msra.mxu1 %v8720_v27 }
 0x2fa   :  { %1400 = vmatprep.subr.mxu0 %v8721_v0  ;;  %5134 = vmatprep.subr.mxu1 %v8704_v12  ;;  %v6986_v0 = vld [vmem:[#allocation10 + $0x168] sm:$0xff] }
 0x2fb   :  { %1401 = vmatpush1.msra.mxu0 %v8722_v37  ;;  %5135 = vmatpush3.msra.mxu1 %v8723_v15  ;;  %v6989_v37 = vld [vmem:[#allocation10 + $0x178] sm:$0xff] }
 0x2fc   :  { %1402 = vmatprep.subr.mxu0 %v8724_v36  ;;  %5136 = vmatprep.subr.mxu1 %v8704_v12 }
 0x2fd   :  { %1403 = vmatpush1.msra.mxu0 %v8725_v29  ;;  %5137 = vmatpush3.msra.mxu1 %v8726_v22 }
 0x2fe   :  { %1404 = vmatprep.subr.mxu0 %v8735_v43  ;;  %5138 = vmatprep.subr.mxu1 %v8704_v12 }
 0x2ff   :  { %1405 = vmatpush1.msra.mxu0 %v8736_v44  ;;  %5139 = vmatpush3.msra.mxu1 %v8737_v45 }
 0x300   :  { %1406 = vmatprep.subr.mxu0 %v8738_v46  ;;  %5140 = vmatprep.subr.mxu1 %v8704_v12 }
 0x301   :  { %1407 = vmatpush1.msra.mxu0 %v8739_v47  ;;  %1440 = vmatprep.mubr.f32.mxu0 %v8704_v12 }
 0x302   :  { %5141 = vmatpush3.msra.mxu1 %v8740_v48  ;;  %5142 = vmatprep.mubr.msk.f32.mxu1 %vm6245_vm0, %v8704_v12 }
 0x303   :  { %1548 = vmatprep.subr.mxu0 %v8741_v49  ;;  %5145 = vmatprep.subr.mxu1 %v8704_v12  ;;  %v7028_v49 = vld [vmem:[#allocation10 + $0xf0] sm:$0xff] }
 0x3a2   :  { %v1270_v50 = vpop.f32.mrf.mxu0  ;;  %v1341_v51 = vpop.f32.mrf.mxu1 }
 0x3a3   :  { %v1271_v53 = vadd.f32 %v1270_v50, %v8742_v52  ;;  %v1342_v28 = vadd.f32 %v1341_v51, %v6821_v13  ;;  %v7036_v50 = vld [vmem:[#allocation10 + $0xd8] sm:$0xff]  ;;  %v7044_v51 = vld [vmem:[#allocation10 + $0xc0] sm:$0xff] }
 0x3a4   :  { %v1272_v54 = vpop.f32.mrf.mxu0  ;;  %v5109_v55 = vpop.f32.mrf.mxu1 }
 0x3a5   :  { %v1345_v58 = vadd.f32 %v1271_v53, %v8743_v56  ;;  %v1273_v4 = vadd.f32 %v1272_v54, %v6815_v19  ;;  %v7052_v53 = vld [vmem:[#allocation10 + $0xa8] sm:$0xff]  ;;  %v7060_v54 = vld [vmem:[#allocation10 + $0x90] sm:$0xff]  ;;  %v7068_v55 = vld [vmem:[#allocation10 + $0x78] sm:$0xff] }
 0x3a6   :  { %v7076_v56 = vld [vmem:[#allocation10 + $0x60] sm:$0xff] }
 0x3a7   :  { %v4485_v17 = vmul.f32 -1.442695, %v1345_v58  ;;  %v1352_v62 = vadd.f32 %v1273_v4, %v8744_v20  ;;  %v7084_v58 = vld [vmem:[#allocation10 + $0x48] sm:$0xff] }
 0x3a9   :  { %5760 = vpow2.f32 %v4485_v17  ;;  %v4486_v2 = vmul.f32 -1.442695, %v1352_v62 }
 0x3ab   :  { %5762 = vpow2.f32 %v4486_v2 }
 0x3b6   :  { %v5761_v5 = vpop.eup %5760 }
 0x3b7   :  { %v1349_v10 = vadd.f32 1.0, %v5761_v5 }
 0x3b8   :  { %v5763_v42 = vpop.eup %5762 }
 0x3b9   :  { %5764 = vrcp.f32 %v1349_v10  ;;  %v1356_v39 = vadd.f32 1.0, %v5763_v42 }
 0x3bb   :  { %5766 = vrcp.f32 %v1356_v39  ;;  %v8750_v39 = vld [vmem:[#allocation72_spill] sm:$0xff] }
 0x3c6   :  { %v5765_v25 = vpop.eup %5764 }
 0x3c7   :  { %v1359_v32 = vmul.f32 %v5765_v25, %v1342_v28 }
 0x3c8   :  { %v5767_v41 = vpop.eup %5766 }
 0x3c9   :  { %v1360_v26 = vadd.f32 %v1359_v32, %v8745_v24  ;;  %v1362_v34 = vsub.f32 1.0, %v5767_v41  ;;  %v1364_v21 = vmul.f32 %v5767_v41, %v6904_v18  ;;  %v8758_v18 = vld [vmem:[#allocation75_spill] sm:$0xff] }
 0x3cb   :  { %5768 = vtanh.f32 %v1360_v26 }
 0x3d8   :  { %v5769_v57 = vpop.eup %5768 }
 0x3d9   :  { %v1363_v23 = vmul.f32 %v5769_v57, %v1362_v34  ;;  %v7123_v57 = vld [vmem:[#allocation10 + $0x160] sm:$0xff] }
 0x3db   :  { %v6982_v3 = vadd.f32 %v1364_v21, %v1363_v23  ;;  %v7129_v23 = vld [vmem:[#allocation10 + $0x148] sm:$0xff]  ;;  %v7135_v21 = vld [vmem:[#allocation10 + $0x130] sm:$0xff] }
 0x3dd   :  { %8746 = vst [vmem:[#allocation31_spill] sm:$0xff] %v6982_v3  ;;  %1441 = vmatmul.mubr.f32.vlgmr.msra.gmra.mxu0 %v6982_v3  ;;  %5143 = vmatmul.mubr.f32.vlgmr.msra.gmra.mxu1 %v6982_v3 }
 0x3de   :  { %1549 = vmatpush1.msra.mxu0 %v6986_v0  ;;  %5146 = vmatpush3.msra.mxu1 %v6989_v37 }
 0x3df   :  { %1550 = vmatprep.subr.mxu0 %v6992_v63  ;;  %5147 = vmatprep.subr.mxu1 %v8704_v12 }
 0x3e0   :  { %1551 = vmatpush1.msra.mxu0 %v6996_v8  ;;  %5148 = vmatpush3.msra.mxu1 %v6504_v59  ;;  %v7016_v59 = vld [vmem:[#allocation10 + $0x110] sm:$0xff] }
 0x3e1   :  { %1552 = vmatprep.subr.mxu0 %v7000_v7  ;;  %5149 = vmatprep.subr.mxu1 %v8704_v12 }
 0x3e2   :  { %1553 = vmatpush1.msra.mxu0 %v7004_v35  ;;  %5150 = vmatpush3.msra.mxu1 %v6522_v1  ;;  %v7024_v1 = vld [vmem:[#allocation10 + $0xf8] sm:$0xff] }
 0x3e3   :  { %1554 = vmatprep.subr.mxu0 %v7008_v9  ;;  %5151 = vmatprep.subr.mxu1 %v8704_v12 }
 0x3e4   :  { %1555 = vmatpush1.msra.mxu0 %v7012_v60  ;;  %5152 = vmatpush3.msra.mxu1 %v6540_v6  ;;  %v7032_v6 = vld [vmem:[#allocation10 + $0xe0] sm:$0xff] }
 0x3e5   :  { %1556 = vmatprep.subr.mxu0 %v7016_v59  ;;  %5153 = vmatprep.subr.mxu1 %v8704_v12 }
 0x3e6   :  { %1557 = vmatpush1.msra.mxu0 %v7020_v61  ;;  %5154 = vmatpush3.msra.mxu1 %v6558_v11  ;;  %v7040_v11 = vld [vmem:[#allocation10 + $0xc8] sm:$0xff] }
 0x3e7   :  { %1558 = vmatprep.subr.mxu0 %v7024_v1  ;;  %5155 = vmatprep.subr.mxu1 %v8704_v12 }
 0x3e8   :  { %1559 = vmatpush1.msra.mxu0 %v7028_v49  ;;  %5156 = vmatpush3.msra.mxu1 %v6576_v16  ;;  %v7048_v16 = vld [vmem:[#allocation10 + $0xb0] sm:$0xff] }
 0x3e9   :  { %1560 = vmatprep.subr.mxu0 %v7032_v6  ;;  %5157 = vmatprep.subr.mxu1 %v8704_v12 }
 0x3ea   :  { %1561 = vmatpush1.msra.mxu0 %v7036_v50  ;;  %5158 = vmatpush3.msra.mxu1 %v8705_v31  ;;  %v7056_v31 = vld [vmem:[#allocation10 + $0x98] sm:$0xff] }
 0x3eb   :  { %1562 = vmatprep.subr.mxu0 %v7040_v11  ;;  %5159 = vmatprep.subr.mxu1 %v8704_v12 }
 0x3ec   :  { %1563 = vmatpush1.msra.mxu0 %v7044_v51  ;;  %5160 = vmatpush3.msra.mxu1 %v8708_v38  ;;  %v7064_v38 = vld [vmem:[#allocation10 + $0x80] sm:$0xff] }
 0x3ed   :  { %1564 = vmatprep.subr.mxu0 %v7048_v16  ;;  %5161 = vmatprep.subr.mxu1 %v8704_v12 }
 0x3ee   :  { %1565 = vmatpush1.msra.mxu0 %v7052_v53  ;;  %5162 = vmatpush3.msra.mxu1 %v8711_v30  ;;  %v7072_v30 = vld [vmem:[#allocation10 + $0x68] sm:$0xff] }
 0x3ef   :  { %1566 = vmatprep.subr.mxu0 %v7056_v31  ;;  %5163 = vmatprep.subr.mxu1 %v8704_v12 }
 0x3f0   :  { %1567 = vmatpush1.msra.mxu0 %v7060_v54  ;;  %5164 = vmatpush3.msra.mxu1 %v8714_v40  ;;  %v7080_v40 = vld [vmem:[#allocation10 + $0x50] sm:$0xff] }
 0x3f1   :  { %1568 = vmatprep.subr.mxu0 %v7064_v38  ;;  %5165 = vmatprep.subr.mxu1 %v8704_v12 }
 0x3f2   :  { %1569 = vmatpush1.msra.mxu0 %v7068_v55  ;;  %5166 = vmatpush3.msra.mxu1 %v8717_v33 }
 0x3f3   :  { %1570 = vmatprep.subr.mxu0 %v7072_v30  ;;  %5167 = vmatprep.subr.mxu1 %v8704_v12 }
 0x3f4   :  { %1571 = vmatpush1.msra.mxu0 %v7076_v56  ;;  %5168 = vmatpush3.msra.mxu1 %v8720_v27 }
 0x3f5   :  { %1572 = vmatprep.subr.mxu0 %v7080_v40  ;;  %5169 = vmatprep.subr.mxu1 %v8704_v12 }
 0x3f6   :  { %1573 = vmatpush1.msra.mxu0 %v7084_v58  ;;  %5170 = vmatpush3.msra.mxu1 %v8723_v15 }
 0x3f7   :  { %1574 = vmatprep.subr.mxu0 %v8724_v36  ;;  %5171 = vmatprep.subr.mxu1 %v8704_v12 }
 0x3f8   :  { %1575 = vmatpush1.msra.mxu0 %v8725_v29  ;;  %5172 = vmatpush3.msra.mxu1 %v8726_v22  ;;  %v7103_v29 = vld [vmem:[#allocation10 + $0x170] sm:$0xff] }
 0x3f9   :  { %1576 = vmatprep.subr.mxu0 %v8735_v43  ;;  %5173 = vmatprep.subr.mxu1 %v8704_v12  ;;  %8747 = vst [vmem:[#allocation32_spill] sm:$0xff] %v7103_v29  ;;  %v8748_v43 = vld [vmem:[#allocation76_spill] sm:$0xff] }
 0x3fa   :  { %1577 = vmatpush1.msra.mxu0 %v8736_v44  ;;  %5174 = vmatpush3.msra.mxu1 %v8737_v45 }
 0x3fb   :  { %1578 = vmatprep.subr.mxu0 %v8738_v46  ;;  %5175 = vmatprep.subr.mxu1 %v8704_v12 }
 0x3fc   :  { %1579 = vmatpush1.msra.mxu0 %v8739_v47  ;;  %1612 = vmatprep.mubr.f32.mxu0 %v8704_v12  ;;  %v8749_v47 = vld [vmem:[#allocation77_spill] sm:$0xff] }
 0x3fd   :  { %5176 = vmatpush3.msra.mxu1 %v8740_v48  ;;  %5177 = vmatprep.mubr.msk.f32.mxu1 %vm6245_vm0, %v8704_v12 }
 0x3fe   :  { %1720 = vmatprep.subr.mxu0 %v7103_v29  ;;  %5180 = vmatprep.subr.mxu1 %v8704_v12 }
 0x49d   :  { %v1442_v36 = vpop.f32.mrf.mxu0  ;;  %v1513_v22 = vpop.f32.mrf.mxu1 }
 0x49e   :  { %v1443_v33 = vadd.f32 %v1442_v36, %v8742_v52  ;;  %v1514_v5 = vadd.f32 %v1513_v22, %v6821_v13  ;;  %v7141_v36 = vld [vmem:[#allocation10 + $0x118] sm:$0xff]  ;;  %v7147_v22 = vld [vmem:[#allocation10 + $0x100] sm:$0xff] }
 0x49f   :  { %v1444_v27 = vpop.f32.mrf.mxu0  ;;  %v5144_v15 = vpop.f32.mrf.mxu1 }
 0x4a0   :  { %v1517_v44 = vadd.f32 %v1443_v33, %v8748_v43  ;;  %v1445_v46 = vadd.f32 %v1444_v27, %v6815_v19  ;;  %v7153_v33 = vld [vmem:[#allocation10 + $0xe8] sm:$0xff]  ;;  %v7159_v27 = vld [vmem:[#allocation10 + $0xd0] sm:$0xff]  ;;  %v7165_v15 = vld [vmem:[#allocation10 + $0xb8] sm:$0xff] }
 0x4a1   :  { %v7171_v43 = vld [vmem:[#allocation10 + $0xa0] sm:$0xff] }
 0x4a2   :  { %v4487_v45 = vmul.f32 -1.442695, %v1517_v44  ;;  %v1524_v48 = vadd.f32 %v1445_v46, %v8749_v47  ;;  %v7177_v44 = vld [vmem:[#allocation10 + $0x88] sm:$0xff]  ;;  %v7189_v46 = vld [vmem:[#allocation10 + $0x58] sm:$0xff] }
 0x4a3   :  { %v7192_v47 = vld [vmem:[#allocation10 + $0x38] sm:$0xff] }
 0x4a4   :  { %5770 = vpow2.f32 %v4487_v45  ;;  %v4488_v17 = vmul.f32 -1.442695, %v1524_v48  ;;  %v7183_v45 = vld [vmem:[#allocation10 + $0x70] sm:$0xff] }
 0x4a5   :  { %v7196_v48 = vld [vmem:[#allocation10 + $0x30] sm:$0xff] }
 0x4a6   :  { %5772 = vpow2.f32 %v4488_v17  ;;  %v7199_v17 = vld [vmem:[#allocation10 + $0x40] sm:$0xff] }
 0x4b1   :  { %v5771_v4 = vpop.eup %5770 }
 0x4b2   :  { %v1521_v20 = vadd.f32 1.0, %v5771_v4  ;;  %v7202_v4 = vld [vmem:[#allocation10 + $0x20] sm:$0xff] }
 0x4b3   :  { %v5773_v62 = vpop.eup %5772 }
 0x4b4   :  { %5774 = vrcp.f32 %v1521_v20  ;;  %v1528_v2 = vadd.f32 1.0, %v5773_v62  ;;  %v7206_v20 = vld [vmem:[#allocation10 + $0x18] sm:$0xff]  ;;  %v7209_v62 = vld [vmem:[#allocation10 + $0x28] sm:$0xff] }
 0x4b5   :  { %8752 = vst [vmem:[#allocation33_spill] sm:$0xff] %v7206_v20  ;;  %8753 = vst [vmem:[#allocation34_spill] sm:$0xff] %v7209_v62 }
 0x4b6   :  { %5776 = vrcp.f32 %v1528_v2  ;;  %v7212_v2 = vld [vmem:[#allocation10 + $0x8] sm:$0xff] }
 0x4b7   :  { %8754 = vst [vmem:[#allocation51_spill] sm:$0xff] %v7212_v2 }
 0x4c1   :  { %v5775_v10 = vpop.eup %5774 }
 0x4c2   :  { %v1531_v42 = vmul.f32 %v5775_v10, %v1514_v5  ;;  %v7216_v5 = vld [vmem:[#allocation10] sm:$0xff]  ;;  %v7220_v10 = vld [vmem:[#allocation10 + $0x10] sm:$0xff] }
 0x4c3   :  { %v5777_v25 = vpop.eup %5776  ;;  %8755 = vst [vmem:[#allocation35_spill] sm:$0xff] %v7216_v5  ;;  %8756 = vst [vmem:[#allocation36_spill] sm:$0xff] %v7220_v10 }
 0x4c4   :  { %v1532_v28 = vadd.f32 %v1531_v42, %v8750_v39  ;;  %v1534_v32 = vsub.f32 1.0, %v5777_v25  ;;  %v1536_v41 = vmul.f32 %v5777_v25, %v6982_v3 }
 0x4c6   :  { %5778 = vtanh.f32 %v1532_v28 }
 0x4d3   :  { %v5779_v24 = vpop.eup %5778 }
 0x4d4   :  { %v1535_v26 = vmul.f32 %v5779_v24, %v1534_v32  ;;  %v8757_v24 = vld [vmem:[#allocation74_spill] sm:$0xff] }
 0x4d6   :  { %v7114_v34 = vadd.f32 %v1536_v41, %v1535_v26 }
 0x4d8   :  { %8751 = vst [vmem:[#allocation50_spill] sm:$0xff] %v7114_v34  ;;  %1613 = vmatmul.mubr.f32.vlgmr.msra.gmra.mxu0 %v7114_v34  ;;  %5178 = vmatmul.mubr.f32.vlgmr.msra.gmra.mxu1 %v7114_v34 }
 0x4d9   :  { %1721 = vmatpush1.msra.mxu0 %v6986_v0  ;;  %5181 = vmatpush3.msra.mxu1 %v6989_v37 }
 0x4da   :  { %1722 = vmatprep.subr.mxu0 %v6992_v63  ;;  %5182 = vmatprep.subr.mxu1 %v8704_v12 }
 0x4db   :  { %1723 = vmatpush1.msra.mxu0 %v6996_v8  ;;  %5183 = vmatpush3.msra.mxu1 %v7123_v57 }
 0x4dc   :  { %1724 = vmatprep.subr.mxu0 %v7000_v7  ;;  %5184 = vmatprep.subr.mxu1 %v8704_v12 }
 0x4dd   :  { %1725 = vmatpush1.msra.mxu0 %v7004_v35  ;;  %5185 = vmatpush3.msra.mxu1 %v7129_v23 }
 0x4de   :  { %1726 = vmatprep.subr.mxu0 %v7008_v9  ;;  %5186 = vmatprep.subr.mxu1 %v8704_v12 }
 0x4df   :  { %1727 = vmatpush1.msra.mxu0 %v7012_v60  ;;  %5187 = vmatpush3.msra.mxu1 %v7135_v21 }
 0x4e0   :  { %1728 = vmatprep.subr.mxu0 %v7016_v59  ;;  %5188 = vmatprep.subr.mxu1 %v8704_v12 }
 0x4e1   :  { %1729 = vmatpush1.msra.mxu0 %v7020_v61  ;;  %5189 = vmatpush3.msra.mxu1 %v7141_v36 }
 0x4e2   :  { %1730 = vmatprep.subr.mxu0 %v7024_v1  ;;  %5190 = vmatprep.subr.mxu1 %v8704_v12 }
 0x4e3   :  { %1731 = vmatpush1.msra.mxu0 %v7028_v49  ;;  %5191 = vmatpush3.msra.mxu1 %v7147_v22 }
 0x4e4   :  { %1732 = vmatprep.subr.mxu0 %v7032_v6  ;;  %5192 = vmatprep.subr.mxu1 %v8704_v12 }
 0x4e5   :  { %1733 = vmatpush1.msra.mxu0 %v7036_v50  ;;  %5193 = vmatpush3.msra.mxu1 %v7153_v33 }
 0x4e6   :  { %1734 = vmatprep.subr.mxu0 %v7040_v11  ;;  %5194 = vmatprep.subr.mxu1 %v8704_v12 }
 0x4e7   :  { %1735 = vmatpush1.msra.mxu0 %v7044_v51  ;;  %5195 = vmatpush3.msra.mxu1 %v7159_v27 }
 0x4e8   :  { %1736 = vmatprep.subr.mxu0 %v7048_v16  ;;  %5196 = vmatprep.subr.mxu1 %v8704_v12 }
 0x4e9   :  { %1737 = vmatpush1.msra.mxu0 %v7052_v53  ;;  %5197 = vmatpush3.msra.mxu1 %v7165_v15 }
 0x4ea   :  { %1738 = vmatprep.subr.mxu0 %v7056_v31  ;;  %5198 = vmatprep.subr.mxu1 %v8704_v12 }
 0x4eb   :  { %1739 = vmatpush1.msra.mxu0 %v7060_v54  ;;  %5199 = vmatpush3.msra.mxu1 %v7171_v43 }
 0x4ec   :  { %1740 = vmatprep.subr.mxu0 %v7064_v38  ;;  %5200 = vmatprep.subr.mxu1 %v8704_v12 }
 0x4ed   :  { %1741 = vmatpush1.msra.mxu0 %v7068_v55  ;;  %5201 = vmatpush3.msra.mxu1 %v7177_v44 }
 0x4ee   :  { %1742 = vmatprep.subr.mxu0 %v7072_v30  ;;  %5202 = vmatprep.subr.mxu1 %v8704_v12 }
 0x4ef   :  { %1743 = vmatpush1.msra.mxu0 %v7076_v56  ;;  %5203 = vmatpush3.msra.mxu1 %v7183_v45 }
 0x4f0   :  { %1744 = vmatprep.subr.mxu0 %v7080_v40  ;;  %5204 = vmatprep.subr.mxu1 %v8704_v12 }
 0x4f1   :  { %1745 = vmatpush1.msra.mxu0 %v7084_v58  ;;  %5205 = vmatpush3.msra.mxu1 %v7189_v46 }
 0x4f2   :  { %1746 = vmatprep.subr.mxu0 %v7192_v47  ;;  %5206 = vmatprep.subr.mxu1 %v8704_v12 }
 0x4f3   :  { %1747 = vmatpush1.msra.mxu0 %v7196_v48  ;;  %5207 = vmatpush3.msra.mxu1 %v7199_v17 }
 0x4f4   :  { %1748 = vmatprep.subr.mxu0 %v7202_v4  ;;  %5208 = vmatprep.subr.mxu1 %v8704_v12 }
 0x4f5   :  { %1749 = vmatpush1.msra.mxu0 %v7206_v20  ;;  %5209 = vmatpush3.msra.mxu1 %v7209_v62 }
 0x4f6   :  { %1750 = vmatprep.subr.mxu0 %v7212_v2  ;;  %5210 = vmatprep.subr.mxu1 %v8704_v12 }
 0x4f7   :  { %1751 = vmatpush1.msra.mxu0 %v7216_v5  ;;  %1784 = vmatprep.mubr.f32.mxu0 %v8704_v12 }
 0x4f8   :  { %5211 = vmatpush3.msra.mxu1 %v7220_v10  ;;  %5212 = vmatprep.mubr.msk.f32.mxu1 %vm6245_vm0, %v8704_v12 }
 0x4f9   :  { %1892 = vmatprep.subr.mxu0 %v7103_v29  ;;  %5215 = vmatprep.subr.mxu1 %v8704_v12 }
 0x598   :  { %v1614_v42 = vpop.f32.mrf.mxu0  ;;  %v1685_v39 = vpop.f32.mrf.mxu1 }
 0x599   :  { %v1615_v28 = vadd.f32 %v1614_v42, %v8742_v52  ;;  %v1686_v20 = vadd.f32 %v1685_v39, %v6821_v13  ;;  %v8766_v39 = vld [vmem:[#allocation80_spill] sm:$0xff] }
 0x59a   :  { %v1616_v25 = vpop.f32.mrf.mxu0  ;;  %v5179_v32 = vpop.f32.mrf.mxu1 }
 0x59b   :  { %v1689_v26 = vadd.f32 %v1615_v28, %v8757_v24  ;;  %v1617_v3 = vadd.f32 %v1616_v25, %v6815_v19  ;;  %v8759_v32 = vld [vmem:[#allocation67_spill] sm:$0xff] }
 0x59d   :  { %v4489_v41 = vmul.f32 -1.442695, %v1689_v26  ;;  %v1696_v14 = vadd.f32 %v1617_v3, %v8758_v18  ;;  %v8761_v3 = vld [vmem:[#allocation34_spill] sm:$0xff] }
 0x59f   :  { %5780 = vpow2.f32 %v4489_v41  ;;  %v4490_v10 = vmul.f32 -1.442695, %v1696_v14 }
 0x5a1   :  { %5782 = vpow2.f32 %v4490_v10 }
 0x5ac   :  { %v5781_v5 = vpop.eup %5780 }
 0x5ad   :  { %v1693_v29 = vadd.f32 1.0, %v5781_v5 }
 0x5ae   :  { %v5783_v2 = vpop.eup %5782 }
 0x5af   :  { %5784 = vrcp.f32 %v1693_v29  ;;  %v1700_v62 = vadd.f32 1.0, %v5783_v2  ;;  %v8762_v29 = vld [vmem:[#allocation51_spill] sm:$0xff]  ;;  %v8765_v2 = vld [vmem:[#allocation32_spill] sm:$0xff] }
 0x5b1   :  { %5786 = vrcp.f32 %v1700_v62  ;;  %v8764_v62 = vld [vmem:[#allocation36_spill] sm:$0xff] }
 0x5bc   :  { %v5785_v42 = vpop.eup %5784 }
 0x5bd   :  { %v1703_v52 = vmul.f32 %v5785_v42, %v1686_v20  ;;  %v8763_v20 = vld [vmem:[#allocation35_spill] sm:$0xff] }
 0x5be   :  { %v5787_v24 = vpop.eup %5786 }
 0x5bf   :  { %v1704_v28 = vadd.f32 %v1703_v52, %v8759_v32  ;;  %v1706_v25 = vsub.f32 1.0, %v5787_v24  ;;  %v1708_v14 = vmul.f32 %v5787_v24, %v7114_v34  ;;  %v8760_v52 = vld [vmem:[#allocation33_spill] sm:$0xff]  ;;  %v8767_v24 = vld [vmem:[#allocation71_spill] sm:$0xff] }
 0x5c1   :  { %5788 = vtanh.f32 %v1704_v28 }
 0x5ce   :  { %v5789_v26 = vpop.eup %5788 }
 0x5cf   :  { %v1707_v41 = vmul.f32 %v5789_v26, %v1706_v25 }
 0x5d1   :  { %v7234_v18 = vadd.f32 %v1708_v14, %v1707_v41  ;;  %v8768_v14 = vld [vmem:[#allocation73_spill] sm:$0xff] }
 0x5d3   :  { %1785 = vmatmul.mubr.f32.vlgmr.msra.gmra.mxu0 %v7234_v18  ;;  %5213 = vmatmul.mubr.f32.vlgmr.msra.gmra.mxu1 %v7234_v18 }
 0x5d4   :  { %1893 = vmatpush1.msra.mxu0 %v6986_v0  ;;  %5216 = vmatpush3.msra.mxu1 %v6989_v37 }
 0x5d5   :  { %1894 = vmatprep.subr.mxu0 %v6992_v63  ;;  %5217 = vmatprep.subr.mxu1 %v8704_v12 }
 0x5d6   :  { %1895 = vmatpush1.msra.mxu0 %v6996_v8  ;;  %5218 = vmatpush3.msra.mxu1 %v7123_v57 }
 0x5d7   :  { %1896 = vmatprep.subr.mxu0 %v7000_v7  ;;  %5219 = vmatprep.subr.mxu1 %v8704_v12 }
 0x5d8   :  { %1897 = vmatpush1.msra.mxu0 %v7004_v35  ;;  %5220 = vmatpush3.msra.mxu1 %v7129_v23 }
 0x5d9   :  { %1898 = vmatprep.subr.mxu0 %v7008_v9  ;;  %5221 = vmatprep.subr.mxu1 %v8704_v12 }
 0x5da   :  { %1899 = vmatpush1.msra.mxu0 %v7012_v60  ;;  %5222 = vmatpush3.msra.mxu1 %v7135_v21 }
 0x5db   :  { %1900 = vmatprep.subr.mxu0 %v7016_v59  ;;  %5223 = vmatprep.subr.mxu1 %v8704_v12 }
 0x5dc   :  { %1901 = vmatpush1.msra.mxu0 %v7020_v61  ;;  %5224 = vmatpush3.msra.mxu1 %v7141_v36 }
 0x5dd   :  { %1902 = vmatprep.subr.mxu0 %v7024_v1  ;;  %5225 = vmatprep.subr.mxu1 %v8704_v12 }
 0x5de   :  { %1903 = vmatpush1.msra.mxu0 %v7028_v49  ;;  %5226 = vmatpush3.msra.mxu1 %v7147_v22 }
 0x5df   :  { %1904 = vmatprep.subr.mxu0 %v7032_v6  ;;  %5227 = vmatprep.subr.mxu1 %v8704_v12 }
 0x5e0   :  { %1905 = vmatpush1.msra.mxu0 %v7036_v50  ;;  %5228 = vmatpush3.msra.mxu1 %v7153_v33 }
 0x5e1   :  { %1906 = vmatprep.subr.mxu0 %v7040_v11  ;;  %5229 = vmatprep.subr.mxu1 %v8704_v12 }
 0x5e2   :  { %1907 = vmatpush1.msra.mxu0 %v7044_v51  ;;  %5230 = vmatpush3.msra.mxu1 %v7159_v27 }
 0x5e3   :  { %1908 = vmatprep.subr.mxu0 %v7048_v16  ;;  %5231 = vmatprep.subr.mxu1 %v8704_v12 }
 0x5e4   :  { %1909 = vmatpush1.msra.mxu0 %v7052_v53  ;;  %5232 = vmatpush3.msra.mxu1 %v7165_v15 }
 0x5e5   :  { %1910 = vmatprep.subr.mxu0 %v7056_v31  ;;  %5233 = vmatprep.subr.mxu1 %v8704_v12 }
 0x5e6   :  { %1911 = vmatpush1.msra.mxu0 %v7060_v54  ;;  %5234 = vmatpush3.msra.mxu1 %v7171_v43 }
 0x5e7   :  { %1912 = vmatprep.subr.mxu0 %v7064_v38  ;;  %5235 = vmatprep.subr.mxu1 %v8704_v12 }
 0x5e8   :  { %1913 = vmatpush1.msra.mxu0 %v7068_v55  ;;  %5236 = vmatpush3.msra.mxu1 %v7177_v44 }
 0x5e9   :  { %1914 = vmatprep.subr.mxu0 %v7072_v30  ;;  %5237 = vmatprep.subr.mxu1 %v8704_v12 }
 0x5ea   :  { %1915 = vmatpush1.msra.mxu0 %v7076_v56  ;;  %5238 = vmatpush3.msra.mxu1 %v7183_v45 }
 0x5eb   :  { %1916 = vmatprep.subr.mxu0 %v7080_v40  ;;  %5239 = vmatprep.subr.mxu1 %v8704_v12 }
 0x5ec   :  { %1917 = vmatpush1.msra.mxu0 %v7084_v58  ;;  %5240 = vmatpush3.msra.mxu1 %v7189_v46 }
 0x5ed   :  { %1918 = vmatprep.subr.mxu0 %v7192_v47  ;;  %5241 = vmatprep.subr.mxu1 %v8704_v12 }
 0x5ee   :  { %1919 = vmatpush1.msra.mxu0 %v7196_v48  ;;  %5242 = vmatpush3.msra.mxu1 %v7199_v17 }
 0x5ef   :  { %1920 = vmatprep.subr.mxu0 %v7202_v4  ;;  %5243 = vmatprep.subr.mxu1 %v8704_v12 }
 0x5f0   :  { %1921 = vmatpush1.msra.mxu0 %v8760_v52  ;;  %5244 = vmatpush3.msra.mxu1 %v8761_v3 }
 0x5f1   :  { %1922 = vmatprep.subr.mxu0 %v8762_v29  ;;  %5245 = vmatprep.subr.mxu1 %v8704_v12 }
 0x5f2   :  { %1923 = vmatpush1.msra.mxu0 %v8763_v20  ;;  %1956 = vmatprep.mubr.f32.mxu0 %v8704_v12 }
 0x5f3   :  { %5246 = vmatpush3.msra.mxu1 %v8764_v62  ;;  %5247 = vmatprep.mubr.msk.f32.mxu1 %vm6245_vm0, %v8704_v12 }
 0x5f4   :  { %2064 = vmatprep.subr.mxu0 %v8765_v2  ;;  %5250 = vmatprep.subr.mxu1 %v8704_v12 }
 0x693   :  { %v1786_v5 = vpop.f32.mrf.mxu0  ;;  %v1857_v10 = vpop.f32.mrf.mxu1 }
 0x694   :  { %v1787_v42 = vadd.f32 %v1786_v5, %v8766_v39  ;;  %v1858_v52 = vadd.f32 %v1857_v10, %v6821_v13  ;;  %v2269_v10 = vld [vmem:[#allocation11 + $0x110] sm:$0xff] }
 0x695   :  { %v1788_v32 = vpop.f32.mrf.mxu0  ;;  %v5214_v28 = vpop.f32.mrf.mxu1 }
 0x696   :  { %v1861_v25 = vadd.f32 %v1787_v42, %v8767_v24  ;;  %v1789_v41 = vadd.f32 %v1788_v32, %v6815_v19  ;;  %v8769_v28 = vld [vmem:[#allocation69_spill] sm:$0xff] }
 0x698   :  { %v4491_v26 = vmul.f32 -1.442695, %v1861_v25  ;;  %v1868_v34 = vadd.f32 %v1789_v41, %v8768_v14  ;;  %v2268_v41 = vld [vmem:[#allocation11 + $0x108] sm:$0xff]  ;;  %v2266_v14 = vld [vmem:[#allocation11 + $0xf8] sm:$0xff] }
 0x69a   :  { %5790 = vpow2.f32 %v4491_v26  ;;  %v4492_v62 = vmul.f32 -1.442695, %v1868_v34 }
 0x69c   :  { %5792 = vpow2.f32 %v4492_v62 }
 0x6a7   :  { %v5791_v20 = vpop.eup %5790 }
 0x6a8   :  { %v1865_v2 = vadd.f32 1.0, %v5791_v20  ;;  %v2271_v20 = vld [vmem:[#allocation11 + $0x120] sm:$0xff] }
 0x6a9   :  { %v5793_v29 = vpop.eup %5792 }
 0x6aa   :  { %5794 = vrcp.f32 %v1865_v2  ;;  %v1872_v3 = vadd.f32 1.0, %v5793_v29  ;;  %v2273_v29 = vld [vmem:[#allocation11 + $0x130] sm:$0xff]  ;;  %v2267_v2 = vld [vmem:[#allocation11 + $0x100] sm:$0xff] }
 0x6ac   :  { %5796 = vrcp.f32 %v1872_v3  ;;  %v2272_v3 = vld [vmem:[#allocation11 + $0x128] sm:$0xff] }
 0x6b7   :  { %v5795_v5 = vpop.eup %5794 }
 0x6b8   :  { %v1875_v39 = vmul.f32 %v5795_v5, %v1858_v52  ;;  %v8779_v52 = vld [vmem:[#allocation81_spill] sm:$0xff]  ;;  %v2265_v5 = vld [vmem:[#allocation11 + $0xf0] sm:$0xff] }
 0x6b9   :  { %v5797_v24 = vpop.eup %5796 }
 0x6ba   :  { %v1876_v42 = vadd.f32 %v1875_v39, %v8769_v28  ;;  %v1878_v32 = vsub.f32 1.0, %v5797_v24  ;;  %v1880_v34 = vmul.f32 %v5797_v24, %v7234_v18  ;;  %v2270_v39 = vld [vmem:[#allocation11 + $0x118] sm:$0xff]  ;;  %v2263_v28 = vld [vmem:[#allocation11 + $0xe0] sm:$0xff] }
 0x6bb   :  { %v2262_v24 = vld [vmem:[#allocation11 + $0xd8] sm:$0xff] }
 0x6bc   :  { %5798 = vtanh.f32 %v1876_v42  ;;  %v2264_v42 = vld [vmem:[#allocation11 + $0xe8] sm:$0xff] }
 0x6c9   :  { %v5799_v25 = vpop.eup %5798 }
 0x6ca   :  { %v1879_v26 = vmul.f32 %v5799_v25, %v1878_v32  ;;  %v2260_v32 = vld [vmem:[#allocation11 + $0xc8] sm:$0xff]  ;;  %v2261_v25 = vld [vmem:[#allocation11 + $0xd0] sm:$0xff] }
 0x6cc   :  { %v7312_v62 = vadd.f32 %v1880_v34, %v1879_v26  ;;  %v2259_v26 = vld [vmem:[#allocation11 + $0xc0] sm:$0xff]  ;;  %v2257_v34 = vld [vmem:[#allocation11 + $0xb0] sm:$0xff] }
 0x6ce   :  { %1957 = vmatmul.mubr.f32.vlgmr.msra.gmra.mxu0 %v7312_v62  ;;  %5248 = vmatmul.mubr.f32.vlgmr.msra.gmra.mxu1 %v7312_v62 }
 0x6cf   :  { %2065 = vmatpush1.msra.mxu0 %v6986_v0  ;;  %5251 = vmatpush3.msra.mxu1 %v6989_v37  ;;  %v8770_v0 = vld [vmem:[#allocation33_spill] sm:$0xff]  ;;  %v8771_v37 = vld [vmem:[#allocation34_spill] sm:$0xff] }
 0x6d0   :  { %2066 = vmatprep.subr.mxu0 %v6992_v63  ;;  %5252 = vmatprep.subr.mxu1 %v8704_v12  ;;  %v8772_v63 = vld [vmem:[#allocation51_spill] sm:$0xff] }
 0x6d1   :  { %2067 = vmatpush1.msra.mxu0 %v6996_v8  ;;  %5253 = vmatpush3.msra.mxu1 %v7123_v57  ;;  %v8773_v8 = vld [vmem:[#allocation35_spill] sm:$0xff] }
 0x6d2   :  { %2068 = vmatprep.subr.mxu0 %v7000_v7  ;;  %5254 = vmatprep.subr.mxu1 %v8704_v12  ;;  %v8774_v7 = vld [vmem:[#allocation36_spill] sm:$0xff] }
 0x6d3   :  { %2069 = vmatpush1.msra.mxu0 %v7004_v35  ;;  %5255 = vmatpush3.msra.mxu1 %v7129_v23  ;;  %v2281_v35 = vld [vmem:[#allocation11 + $0x170] sm:$0xff] }
 0x6d4   :  { %2070 = vmatprep.subr.mxu0 %v7008_v9  ;;  %5256 = vmatprep.subr.mxu1 %v8704_v12  ;;  %v2282_v9 = vld [vmem:[#allocation11 + $0x178] sm:$0xff] }
 0x6d5   :  { %2071 = vmatpush1.msra.mxu0 %v7012_v60  ;;  %5257 = vmatpush3.msra.mxu1 %v7135_v21  ;;  %v8778_v23 = vld [vmem:[#allocation63_spill] sm:$0xff] }
 0x6d6   :  { %2072 = vmatprep.subr.mxu0 %v7016_v59  ;;  %5258 = vmatprep.subr.mxu1 %v8704_v12 }
 0x6d7   :  { %2073 = vmatpush1.msra.mxu0 %v7020_v61  ;;  %5259 = vmatpush3.msra.mxu1 %v7141_v36  ;;  %v8775_v61 = vld [vmem:[#allocation80_spill] sm:$0xff] }
 0x6d8   :  { %2074 = vmatprep.subr.mxu0 %v7024_v1  ;;  %5260 = vmatprep.subr.mxu1 %v8704_v12 }
 0x6d9   :  { %2075 = vmatpush1.msra.mxu0 %v7028_v49  ;;  %5261 = vmatpush3.msra.mxu1 %v7147_v22 }
 0x6da   :  { %2076 = vmatprep.subr.mxu0 %v7032_v6  ;;  %5262 = vmatprep.subr.mxu1 %v8704_v12 }
 0x6db   :  { %2077 = vmatpush1.msra.mxu0 %v7036_v50  ;;  %5263 = vmatpush3.msra.mxu1 %v7153_v33  ;;  %v8776_v50 = vld [vmem:[#allocation66_spill] sm:$0xff] }
 0x6dc   :  { %2078 = vmatprep.subr.mxu0 %v7040_v11  ;;  %5264 = vmatprep.subr.mxu1 %v8704_v12 }
 0x6dd   :  { %2079 = vmatpush1.msra.mxu0 %v7044_v51  ;;  %5265 = vmatpush3.msra.mxu1 %v7159_v27 }
 0x6de   :  { %2080 = vmatprep.subr.mxu0 %v7048_v16  ;;  %5266 = vmatprep.subr.mxu1 %v8704_v12 }
 0x6df   :  { %2081 = vmatpush1.msra.mxu0 %v7052_v53  ;;  %5267 = vmatpush3.msra.mxu1 %v7165_v15  ;;  %v8777_v53 = vld [vmem:[#allocation68_spill] sm:$0xff] }
 0x6e0   :  { %2082 = vmatprep.subr.mxu0 %v7056_v31  ;;  %5268 = vmatprep.subr.mxu1 %v8704_v12 }
 0x6e1   :  { %2083 = vmatpush1.msra.mxu0 %v7060_v54  ;;  %5269 = vmatpush3.msra.mxu1 %v7171_v43 }
 0x6e2   :  { %2084 = vmatprep.subr.mxu0 %v7064_v38  ;;  %5270 = vmatprep.subr.mxu1 %v8704_v12 }
 0x6e3   :  { %2085 = vmatpush1.msra.mxu0 %v7068_v55  ;;  %5271 = vmatpush3.msra.mxu1 %v7177_v44  ;;  %v2280_v44 = vld [vmem:[#allocation11 + $0x168] sm:$0xff] }
 0x6e4   :  { %2086 = vmatprep.subr.mxu0 %v7072_v30  ;;  %5272 = vmatprep.subr.mxu1 %v8704_v12 }
 0x6e5   :  { %2087 = vmatpush1.msra.mxu0 %v7076_v56  ;;  %5273 = vmatpush3.msra.mxu1 %v7183_v45  ;;  %v2278_v45 = vld [vmem:[#allocation11 + $0x158] sm:$0xff] }
 0x6e6   :  { %2088 = vmatprep.subr.mxu0 %v7080_v40  ;;  %5274 = vmatprep.subr.mxu1 %v8704_v12 }
 0x6e7   :  { %2089 = vmatpush1.msra.mxu0 %v7084_v58  ;;  %5275 = vmatpush3.msra.mxu1 %v7189_v46  ;;  %v2279_v46 = vld [vmem:[#allocation11 + $0x160] sm:$0xff] }
 0x6e8   :  { %2090 = vmatprep.subr.mxu0 %v7192_v47  ;;  %5276 = vmatprep.subr.mxu1 %v8704_v12  ;;  %v2277_v47 = vld [vmem:[#allocation11 + $0x150] sm:$0xff] }
 0x6e9   :  { %2091 = vmatpush1.msra.mxu0 %v7196_v48  ;;  %5277 = vmatpush3.msra.mxu1 %v7199_v17  ;;  %v2275_v48 = vld [vmem:[#allocation11 + $0x140] sm:$0xff]  ;;  %v2276_v17 = vld [vmem:[#allocation11 + $0x148] sm:$0xff] }
 0x6ea   :  { %2092 = vmatprep.subr.mxu0 %v7202_v4  ;;  %5278 = vmatprep.subr.mxu1 %v8704_v12  ;;  %v2274_v4 = vld [vmem:[#allocation11 + $0x138] sm:$0xff] }
 0x6eb   :  { %2093 = vmatpush1.msra.mxu0 %v8770_v0  ;;  %5279 = vmatpush3.msra.mxu1 %v8771_v37  ;;  %v2258_v0 = vld [vmem:[#allocation11 + $0xb8] sm:$0xff]  ;;  %v2256_v37 = vld [vmem:[#allocation11 + $0xa8] sm:$0xff] }
 0x6ec   :  { %2094 = vmatprep.subr.mxu0 %v8772_v63  ;;  %5280 = vmatprep.subr.mxu1 %v8704_v12  ;;  %v2254_v63 = vld [vmem:[#allocation11 + $0x98] sm:$0xff] }
 0x6ed   :  { %2095 = vmatpush1.msra.mxu0 %v8773_v8  ;;  %5281 = vmatpush3.msra.mxu1 %v8774_v7  ;;  %v2255_v8 = vld [vmem:[#allocation11 + $0xa0] sm:$0xff]  ;;  %v2253_v7 = vld [vmem:[#allocation11 + $0x90] sm:$0xff] }
 0x6ee   :  { %2128 = vmatprep.mubr.f32.mxu0 %v8704_v12  ;;  %5282 = vmatprep.mubr.msk.f32.mxu1 %vm6245_vm0, %v8704_v12 }
 0x6ef   :  { %2300 = vmatprep.subr.mxu0 %v2281_v35  ;;  %5285 = vmatprep.subr.mxu1 %v2282_v9  ;;  %v2251_v35 = vld [vmem:[#allocation11 + $0x80] sm:$0xff] }
 0x78e   :  { %v1958_v60 = vpop.f32.mrf.mxu0  ;;  %v2029_v59 = vpop.f32.mrf.mxu1 }
 0x78f   :  { %v1959_v1 = vadd.f32 %v1958_v60, %v8775_v61  ;;  %v2030_v40 = vadd.f32 %v2029_v59, %v6821_v13  ;;  %v2250_v60 = vld [vmem:[#allocation11 + $0x78] sm:$0xff]  ;;  %v2248_v59 = vld [vmem:[#allocation11 + $0x68] sm:$0xff] }
 0x790   :  { %v1960_v49 = vpop.f32.mrf.mxu0  ;;  %v5249_v6 = vpop.f32.mrf.mxu1 }
 0x791   :  { %v2033_v11 = vadd.f32 %v1959_v1, %v8776_v50  ;;  %v1961_v16 = vadd.f32 %v1960_v49, %v6815_v19  ;;  %v2249_v1 = vld [vmem:[#allocation11 + $0x70] sm:$0xff]  ;;  %v2247_v49 = vld [vmem:[#allocation11 + $0x60] sm:$0xff]  ;;  %v2246_v50 = vld [vmem:[#allocation11 + $0x58] sm:$0xff] }
 0x792   :  { %v2245_v6 = vld [vmem:[#allocation11 + $0x50] sm:$0xff] }
 0x793   :  { %v4493_v51 = vmul.f32 -1.442695, %v2033_v11  ;;  %v2040_v31 = vadd.f32 %v1961_v16, %v8777_v53  ;;  %v2244_v11 = vld [vmem:[#allocation11 + $0x48] sm:$0xff]  ;;  %v2243_v16 = vld [vmem:[#allocation11 + $0x40] sm:$0xff]  ;;  %v2241_v53 = vld [vmem:[#allocation11 + $0x30] sm:$0xff] }
 0x795   :  { %5800 = vpow2.f32 %v4493_v51  ;;  %v4494_v54 = vmul.f32 -1.442695, %v2040_v31  ;;  %v2242_v51 = vld [vmem:[#allocation11 + $0x38] sm:$0xff]  ;;  %v2239_v31 = vld [vmem:[#allocation11 + $0x20] sm:$0xff] }
 0x797   :  { %5802 = vpow2.f32 %v4494_v54  ;;  %v2240_v54 = vld [vmem:[#allocation11 + $0x28] sm:$0xff] }
 0x7a2   :  { %v5801_v38 = vpop.eup %5800 }
 0x7a3   :  { %v2037_v55 = vadd.f32 1.0, %v5801_v38  ;;  %v2238_v38 = vld [vmem:[#allocation11 + $0x18] sm:$0xff] }
 0x7a4   :  { %v5803_v30 = vpop.eup %5802 }
 0x7a5   :  { %5804 = vrcp.f32 %v2037_v55  ;;  %v2044_v56 = vadd.f32 1.0, %v5803_v30  ;;  %v2236_v55 = vld [vmem:[#allocation11 + $0x8] sm:$0xff]  ;;  %v2237_v30 = vld [vmem:[#allocation11 + $0x10] sm:$0xff] }
 0x7a7   :  { %5806 = vrcp.f32 %v2044_v56  ;;  %v2235_v56 = vld [vmem:[#allocation11] sm:$0xff] }
 0x7b2   :  { %v5805_v58 = vpop.eup %5804 }
 0x7b3   :  { %v2047_v57 = vmul.f32 %v5805_v58, %v2030_v40  ;;  %v8780_v40 = vld [vmem:[#allocation49_spill] sm:$0xff]  ;;  %v8781_v58 = vld [vmem:[#allocation31_spill] sm:$0xff] }
 0x7b4   :  { %v5807_v36 = vpop.eup %5806 }
 0x7b5   :  { %v2048_v21 = vadd.f32 %v2047_v57, %v8778_v23  ;;  %v2050_v22 = vsub.f32 1.0, %v5807_v36  ;;  %v2052_v15 = vmul.f32 %v5807_v36, %v7312_v62  ;;  %v8782_v57 = vld [vmem:[#allocation50_spill] sm:$0xff] }
 0x7b6   :  { %v2588_v23 = vld [vmem:[#allocation13 + $0x170] sm:$0xff]  ;;  %v2587_v36 = vld [vmem:[#allocation13 + $0x168] sm:$0xff] }
 0x7b7   :  { %5808 = vtanh.f32 %v2048_v21  ;;  %v2589_v21 = vld [vmem:[#allocation13 + $0x178] sm:$0xff] }
 0x7c4   :  { %v5809_v33 = vpop.eup %5808 }
 0x7c5   :  { %v2051_v27 = vmul.f32 %v5809_v33, %v2050_v22  ;;  %v2585_v22 = vld [vmem:[#allocation13 + $0x158] sm:$0xff]  ;;  %v2586_v33 = vld [vmem:[#allocation13 + $0x160] sm:$0xff] }
 0x7c7   :  { %v7388_v43 = vadd.f32 %v2052_v15, %v2051_v27  ;;  %v2584_v27 = vld [vmem:[#allocation13 + $0x150] sm:$0xff]  ;;  %v2582_v15 = vld [vmem:[#allocation13 + $0x140] sm:$0xff] }
 0x7c9   :  { %2129 = vmatmul.mubr.f32.vlgmr.msra.gmra.mxu0 %v7388_v43  ;;  %5283 = vmatmul.mubr.f32.vlgmr.msra.gmra.mxu1 %v7388_v43 }
 0x7ca   :  { %2301 = vmatpush1.msra.mxu0 %v2280_v44  ;;  %5286 = vmatpush3.msra.mxu1 %v2282_v9  ;;  %v2252_v9 = vld [vmem:[#allocation11 + $0x88] sm:$0xff] }
 0x7cb   :  { %2302 = vmatprep.subr.mxu0 %v2278_v45  ;;  %5287 = vmatprep.subr.mxu1 %v2279_v46  ;;  %v2583_v44 = vld [vmem:[#allocation13 + $0x148] sm:$0xff]  ;;  %v2581_v45 = vld [vmem:[#allocation13 + $0x138] sm:$0xff] }
 0x7cc   :  { %5317 = vmatprep.mubr.f32.mxu1 %v8779_v52  ;;  %2303 = vmatpush1.msra.mxu0 %v2277_v47  ;;  %v2580_v47 = vld [vmem:[#allocation13 + $0x130] sm:$0xff] }
 0x7cd   :  { %5288 = vmatpush3.msra.mxu1 %v2279_v46  ;;  %2304 = vmatprep.subr.mxu0 %v2275_v48  ;;  %v2579_v46 = vld [vmem:[#allocation13 + $0x128] sm:$0xff]  ;;  %v2578_v48 = vld [vmem:[#allocation13 + $0x120] sm:$0xff] }
 0x7ce   :  { %5289 = vmatprep.subr.mxu1 %v2276_v17  ;;  %2305 = vmatpush1.msra.mxu0 %v2274_v4  ;;  %v2577_v4 = vld [vmem:[#allocation13 + $0x118] sm:$0xff] }
 0x7cf   :  { %5290 = vmatpush3.msra.mxu1 %v2276_v17  ;;  %2306 = vmatprep.subr.mxu0 %v2272_v3  ;;  %v2576_v17 = vld [vmem:[#allocation13 + $0x110] sm:$0xff]  ;;  %v2575_v3 = vld [vmem:[#allocation13 + $0x108] sm:$0xff] }
 0x7d0   :  { %5291 = vmatprep.subr.mxu1 %v2273_v29  ;;  %2307 = vmatpush1.msra.mxu0 %v2271_v20  ;;  %v2574_v20 = vld [vmem:[#allocation13 + $0x100] sm:$0xff] }
 0x7d1   :  { %5292 = vmatpush3.msra.mxu1 %v2273_v29  ;;  %2308 = vmatprep.subr.mxu0 %v2269_v10  ;;  %v2573_v29 = vld [vmem:[#allocation13 + $0xf8] sm:$0xff]  ;;  %v2572_v10 = vld [vmem:[#allocation13 + $0xf0] sm:$0xff] }
 0x7d2   :  { %5293 = vmatprep.subr.mxu1 %v2270_v39  ;;  %2309 = vmatpush1.msra.mxu0 %v2268_v41  ;;  %v2571_v41 = vld [vmem:[#allocation13 + $0xe8] sm:$0xff] }
 0x7d3   :  { %5294 = vmatpush3.msra.mxu1 %v2270_v39  ;;  %2310 = vmatprep.subr.mxu0 %v2266_v14  ;;  %v2570_v39 = vld [vmem:[#allocation13 + $0xe0] sm:$0xff]  ;;  %v2569_v14 = vld [vmem:[#allocation13 + $0xd8] sm:$0xff] }
 0x7d4   :  { %5295 = vmatprep.subr.mxu1 %v2267_v2  ;;  %2311 = vmatpush1.msra.mxu0 %v2265_v5  ;;  %v2568_v5 = vld [vmem:[#allocation13 + $0xd0] sm:$0xff] }
 0x7d5   :  { %5296 = vmatpush3.msra.mxu1 %v2267_v2  ;;  %2312 = vmatprep.subr.mxu0 %v2263_v28  ;;  %v2567_v2 = vld [vmem:[#allocation13 + $0xc8] sm:$0xff]  ;;  %v2566_v28 = vld [vmem:[#allocation13 + $0xc0] sm:$0xff] }
 0x7d6   :  { %5297 = vmatprep.subr.mxu1 %v2264_v42  ;;  %2313 = vmatpush1.msra.mxu0 %v2262_v24  ;;  %v2565_v24 = vld [vmem:[#allocation13 + $0xb8] sm:$0xff] }
 0x7d7   :  { %5298 = vmatpush3.msra.mxu1 %v2264_v42  ;;  %2314 = vmatprep.subr.mxu0 %v2260_v32  ;;  %v2564_v42 = vld [vmem:[#allocation13 + $0xb0] sm:$0xff]  ;;  %v2563_v32 = vld [vmem:[#allocation13 + $0xa8] sm:$0xff] }
 0x7d8   :  { %5299 = vmatprep.subr.mxu1 %v2261_v25  ;;  %2315 = vmatpush1.msra.mxu0 %v2259_v26  ;;  %v2562_v26 = vld [vmem:[#allocation13 + $0xa0] sm:$0xff] }
 0x7d9   :  { %5300 = vmatpush3.msra.mxu1 %v2261_v25  ;;  %2316 = vmatprep.subr.mxu0 %v2257_v34  ;;  %v2561_v25 = vld [vmem:[#allocation13 + $0x98] sm:$0xff]  ;;  %v2560_v34 = vld [vmem:[#allocation13 + $0x90] sm:$0xff] }
 0x7da   :  { %5301 = vmatprep.subr.mxu1 %v2258_v0  ;;  %2317 = vmatpush1.msra.mxu0 %v2256_v37  ;;  %v2559_v37 = vld [vmem:[#allocation13 + $0x88] sm:$0xff] }
 0x7db   :  { %5302 = vmatpush3.msra.mxu1 %v2258_v0  ;;  %2318 = vmatprep.subr.mxu0 %v2254_v63  ;;  %v2558_v0 = vld [vmem:[#allocation13 + $0x80] sm:$0xff]  ;;  %v2557_v63 = vld [vmem:[#allocation13 + $0x78] sm:$0xff] }
 0x7dc   :  { %5303 = vmatprep.subr.mxu1 %v2255_v8  ;;  %2319 = vmatpush1.msra.mxu0 %v2253_v7  ;;  %v2556_v7 = vld [vmem:[#allocation13 + $0x70] sm:$0xff] }
 0x7dd   :  { %5304 = vmatpush3.msra.mxu1 %v2255_v8  ;;  %2320 = vmatprep.subr.mxu0 %v2251_v35  ;;  %v2555_v8 = vld [vmem:[#allocation13 + $0x68] sm:$0xff]  ;;  %v2554_v35 = vld [vmem:[#allocation13 + $0x60] sm:$0xff] }
 0x7de   :  { %5305 = vmatprep.subr.mxu1 %v2252_v9  ;;  %2321 = vmatpush1.msra.mxu0 %v2250_v60  ;;  %v2553_v60 = vld [vmem:[#allocation13 + $0x58] sm:$0xff] }
 0x7df   :  { %5306 = vmatpush3.msra.mxu1 %v2252_v9  ;;  %2322 = vmatprep.subr.mxu0 %v2248_v59  ;;  %v2552_v9 = vld [vmem:[#allocation13 + $0x50] sm:$0xff]  ;;  %v2551_v59 = vld [vmem:[#allocation13 + $0x48] sm:$0xff] }
 0x7e0   :  { %5307 = vmatprep.subr.mxu1 %v2249_v1  ;;  %2323 = vmatpush1.msra.mxu0 %v2247_v49  ;;  %v2550_v49 = vld [vmem:[#allocation13 + $0x40] sm:$0xff] }
 0x7e1   :  { %5308 = vmatpush3.msra.mxu1 %v2249_v1  ;;  %2324 = vmatprep.subr.mxu0 %v2245_v6  ;;  %v2549_v1 = vld [vmem:[#allocation13 + $0x38] sm:$0xff]  ;;  %v2548_v6 = vld [vmem:[#allocation13 + $0x30] sm:$0xff] }
 0x7e2   :  { %5309 = vmatprep.subr.mxu1 %v2246_v50  ;;  %2325 = vmatpush1.msra.mxu0 %v2244_v11  ;;  %v2547_v11 = vld [vmem:[#allocation13 + $0x28] sm:$0xff] }
 0x7e3   :  { %5310 = vmatpush3.msra.mxu1 %v2246_v50  ;;  %2326 = vmatprep.subr.mxu0 %v2242_v51  ;;  %v2546_v50 = vld [vmem:[#allocation13 + $0x20] sm:$0xff]  ;;  %v2545_v51 = vld [vmem:[#allocation13 + $0x18] sm:$0xff] }
 0x7e4   :  { %5311 = vmatprep.subr.mxu1 %v2243_v16  ;;  %2327 = vmatpush1.msra.mxu0 %v2241_v53  ;;  %v2544_v53 = vld [vmem:[#allocation13 + $0x10] sm:$0xff] }
 0x7e5   :  { %5312 = vmatpush3.msra.mxu1 %v2243_v16  ;;  %2328 = vmatprep.subr.mxu0 %v2239_v31  ;;  %v2543_v16 = vld [vmem:[#allocation13 + $0x8] sm:$0xff]  ;;  %v2542_v31 = vld [vmem:[#allocation13] sm:$0xff] }
 0x7e6   :  { %5313 = vmatprep.subr.mxu1 %v2240_v54  ;;  %2329 = vmatpush1.msra.mxu0 %v2238_v38 }
 0x7e7   :  { %5314 = vmatpush3.msra.mxu1 %v2240_v54  ;;  %2330 = vmatprep.subr.mxu0 %v2236_v55  ;;  %v7414_v54 = vld [vmem:[#allocation14 + $0x170] sm:$0xff] }
 0x7e8   :  { %5315 = vmatprep.subr.mxu1 %v2237_v30  ;;  %2331 = vmatpush1.msra.mxu0 %v2235_v56  ;;  %8783 = vst [vmem:[#allocation52_spill] sm:$0xff] %v7414_v54 }
 0x7e9   :  { %2364 = vmatprep.mubr.f32.mxu0 %v8704_v12  ;;  %5316 = vmatpush3.msra.mxu1 %v2237_v30 }
 0x7ea   :  { %2365 = vmatmul.mubr.f32.vlgmr.msra.gmra.mxu0 %v8779_v52  ;;  %5318 = vmatmul.mubr.f32.vlgmr.msra.gmra.mxu1 %v8780_v40 }
 0x7eb   :  { %5320 = vmatprep.mubr.f32.mxu1 %v8781_v58  ;;  %2370 = vmatprep.mubr.f32.mxu0 %v8704_v12 }
 0x7ec   :  { %2590 = vmatprep.subr.mxu0 %v2588_v23  ;;  %5329 = vmatprep.subr.mxu1 %v2589_v21 }
 0x7ed   :  { %2591 = vmatpush1.msra.mxu0 %v2587_v36  ;;  %5330 = vmatpush3.msra.mxu1 %v2589_v21  ;;  %v8784_v21 = vld [vmem:[#allocation62_spill] sm:$0xff] }
 0x7ee   :  { %2371 = vmatmul.mubr.f32.gmra.mxu0 %v8780_v40  ;;  %5321 = vmatmul.mubr.f32.gmra.mxu1 %v8782_v57 }
 0x7ef   :  { %5323 = vmatprep.mubr.f32.mxu1 %v7234_v18  ;;  %2376 = vmatprep.mubr.f32.mxu0 %v8704_v12 }
 0x7f0   :  { %2592 = vmatprep.subr.mxu0 %v2585_v22  ;;  %5331 = vmatprep.subr.mxu1 %v2586_v33 }
 0x7f1   :  { %2593 = vmatpush1.msra.mxu0 %v2584_v27  ;;  %5332 = vmatpush3.msra.mxu1 %v2586_v33  ;;  %v8785_v27 = vld [vmem:[#allocation64_spill] sm:$0xff] }
 0x7f2   :  { %2377 = vmatmul.mubr.f32.gmra.mxu0 %v8781_v58  ;;  %5324 = vmatmul.mubr.f32.gmra.mxu1 %v7312_v62 }
 0x7f3   :  { %5326 = vmatprep.mubr.f32.mxu1 %v7388_v43  ;;  %2382 = vmatprep.mubr.f32.mxu0 %v8704_v12 }
 0x7f4   :  { %2594 = vmatprep.subr.mxu0 %v2582_v15  ;;  %5333 = vmatprep.subr.mxu1 %v2583_v44 }
 0x7f5   :  { %2595 = vmatpush1.msra.mxu0 %v2581_v45  ;;  %5334 = vmatpush3.msra.mxu1 %v2583_v44 }
 0x7f6   :  { %2383 = vmatmul.mubr.f32.gmra.mxu0 %v8782_v57  ;;  %2596 = vmatprep.subr.mxu0 %v2579_v46 }
 0x7f7   :  { %2388 = vmatprep.mubr.f32.mxu0 %v8704_v12  ;;  %5335 = vmatprep.subr.mxu1 %v2580_v47 }
 0x7f8   :  { %2597 = vmatpush1.msra.mxu0 %v2578_v48  ;;  %5336 = vmatpush3.msra.mxu1 %v2580_v47 }
 0x7f9   :  { %2598 = vmatprep.subr.mxu0 %v2576_v17  ;;  %5337 = vmatprep.subr.mxu1 %v2577_v4 }
 0x7fa   :  { %2389 = vmatmul.mubr.f32.gmra.mxu0 %v7234_v18  ;;  %5338 = vmatpush3.msra.mxu1 %v2577_v4 }
 0x7fb   :  { %2394 = vmatprep.mubr.f32.mxu0 %v8704_v12  ;;  %2599 = vmatpush1.msra.mxu0 %v2575_v3  ;;  %v8786_v3 = vld [vmem:[#allocation65_spill] sm:$0xff] }
 0x7fc   :  { %2600 = vmatprep.subr.mxu0 %v2573_v29  ;;  %5339 = vmatprep.subr.mxu1 %v2574_v20 }
 0x7fd   :  { %2601 = vmatpush1.msra.mxu0 %v2572_v10  ;;  %5340 = vmatpush3.msra.mxu1 %v2574_v20 }
 0x7fe   :  { %2395 = vmatmul.mubr.f32.gmra.mxu0 %v7312_v62  ;;  %2602 = vmatprep.subr.mxu0 %v2570_v39 }
 0x7ff   :  { %2400 = vmatprep.mubr.f32.mxu0 %v8704_v12  ;;  %5341 = vmatprep.subr.mxu1 %v2571_v41 }
 0x800   :  { %2603 = vmatpush1.msra.mxu0 %v2569_v14  ;;  %5342 = vmatpush3.msra.mxu1 %v2571_v41 }
 0x801   :  { %2604 = vmatprep.subr.mxu0 %v2567_v2  ;;  %5343 = vmatprep.subr.mxu1 %v2568_v5  ;;  %v7433_v2 = vld [vmem:[#allocation14 + $0x158] sm:$0xff] }
 0x802   :  { %2401 = vmatmul.mubr.f32.gmra.mxu0 %v7388_v43  ;;  %5344 = vmatpush3.msra.mxu1 %v2568_v5  ;;  %v7437_v5 = vld [vmem:[#allocation14 + $0x150] sm:$0xff] }
 0x803   :  { %2406 = vmatprep.mubr.f32.mxu0 %v8704_v12  ;;  %2605 = vmatpush1.msra.mxu0 %v2566_v28  ;;  %v7439_v28 = vld [vmem:[#allocation14 + $0x178] sm:$0xff] }
 0x804   :  { %2606 = vmatprep.subr.mxu0 %v2564_v42  ;;  %5345 = vmatprep.subr.mxu1 %v2565_v24  ;;  %v7445_v42 = vld [vmem:[#allocation14 + $0x140] sm:$0xff] }
 0x805   :  { %2607 = vmatpush1.msra.mxu0 %v2563_v32  ;;  %5346 = vmatpush3.msra.mxu1 %v2565_v24  ;;  %v7448_v24 = vld [vmem:[#allocation14 + $0x138] sm:$0xff]  ;;  %v7457_v32 = vld [vmem:[#allocation14 + $0x120] sm:$0xff] }
 0x806   :  { %2608 = vmatprep.subr.mxu0 %v2561_v25  ;;  %5347 = vmatprep.subr.mxu1 %v2562_v26  ;;  %v7461_v25 = vld [vmem:[#allocation14 + $0x110] sm:$0xff] }
 0x807   :  { %2609 = vmatpush1.msra.mxu0 %v2560_v34  ;;  %5348 = vmatpush3.msra.mxu1 %v2562_v26  ;;  %v7464_v26 = vld [vmem:[#allocation14 + $0x108] sm:$0xff]  ;;  %v7473_v34 = vld [vmem:[#allocation14 + $0xf0] sm:$0xff] }
 0x808   :  { %2610 = vmatprep.subr.mxu0 %v2558_v0  ;;  %5349 = vmatprep.subr.mxu1 %v2559_v37  ;;  %v7477_v0 = vld [vmem:[#allocation14 + $0xe0] sm:$0xff] }
 0x809   :  { %2611 = vmatpush1.msra.mxu0 %v2557_v63  ;;  %5350 = vmatpush3.msra.mxu1 %v2559_v37  ;;  %v7481_v37 = vld [vmem:[#allocation14 + $0xd8] sm:$0xff]  ;;  %v7487_v63 = vld [vmem:[#allocation14 + $0x160] sm:$0xff] }
 0x80a   :  { %2612 = vmatprep.subr.mxu0 %v2555_v8  ;;  %5351 = vmatprep.subr.mxu1 %v2556_v7  ;;  %v7491_v8 = vld [vmem:[#allocation14 + $0xc0] sm:$0xff] }
 0x80b   :  { %2613 = vmatpush1.msra.mxu0 %v2554_v35  ;;  %5352 = vmatpush3.msra.mxu1 %v2556_v7  ;;  %8787 = vst [vmem:[#allocation37_spill] sm:$0xff] %v7491_v8  ;;  %v7495_v7 = vld [vmem:[#allocation14 + $0xb0] sm:$0xff]  ;;  %v7498_v35 = vld [vmem:[#allocation14 + $0xa8] sm:$0xff] }
 0x80c   :  { %2614 = vmatprep.subr.mxu0 %v2552_v9  ;;  %5353 = vmatprep.subr.mxu1 %v2553_v60  ;;  %8788 = vst [vmem:[#allocation38_spill] sm:$0xff] %v7495_v7  ;;  %8789 = vst [vmem:[#allocation53_spill] sm:$0xff] %v7498_v35  ;;  %v7502_v9 = vld [vmem:[#allocation14 + $0x98] sm:$0xff] }
 0x80d   :  { %2615 = vmatpush1.msra.mxu0 %v2551_v59  ;;  %5354 = vmatpush3.msra.mxu1 %v2553_v60  ;;  %8790 = vst [vmem:[#allocation39_spill] sm:$0xff] %v7502_v9  ;;  %v7509_v60 = vld [vmem:[#allocation14 + $0x90] sm:$0xff]  ;;  %v7513_v59 = vld [vmem:[#allocation14 + $0x80] sm:$0xff] }
 0x80e   :  { %2616 = vmatprep.subr.mxu0 %v2549_v1  ;;  %5355 = vmatprep.subr.mxu1 %v2550_v49  ;;  %8791 = vst [vmem:[#allocation40_spill] sm:$0xff] %v7509_v60  ;;  %8792 = vst [vmem:[#allocation54_spill] sm:$0xff] %v7513_v59  ;;  %v7516_v1 = vld [vmem:[#allocation14 + $0x78] sm:$0xff] }
 0x80f   :  { %2617 = vmatpush1.msra.mxu0 %v2548_v6  ;;  %5356 = vmatpush3.msra.mxu1 %v2550_v49  ;;  %8793 = vst [vmem:[#allocation41_spill] sm:$0xff] %v7516_v1  ;;  %v7520_v49 = vld [vmem:[#allocation14 + $0x68] sm:$0xff]  ;;  %v7527_v6 = vld [vmem:[#allocation14 + $0x60] sm:$0xff] }
 0x810   :  { %2618 = vmatprep.subr.mxu0 %v2546_v50  ;;  %5357 = vmatprep.subr.mxu1 %v2547_v11  ;;  %8794 = vst [vmem:[#allocation42_spill] sm:$0xff] %v7520_v49  ;;  %8795 = vst [vmem:[#allocation55_spill] sm:$0xff] %v7527_v6  ;;  %v7531_v50 = vld [vmem:[#allocation14 + $0x50] sm:$0xff] }
 0x811   :  { %2619 = vmatpush1.msra.mxu0 %v2545_v51  ;;  %5358 = vmatpush3.msra.mxu1 %v2547_v11  ;;  %8796 = vst [vmem:[#allocation43_spill] sm:$0xff] %v7531_v50  ;;  %v7534_v11 = vld [vmem:[#allocation14 + $0x48] sm:$0xff]  ;;  %v7538_v51 = vld [vmem:[#allocation14 + $0x38] sm:$0xff] }
 0x812   :  { %2620 = vmatprep.subr.mxu0 %v2543_v16  ;;  %5359 = vmatprep.subr.mxu1 %v2544_v53  ;;  %8797 = vst [vmem:[#allocation44_spill] sm:$0xff] %v7534_v11  ;;  %8798 = vst [vmem:[#allocation56_spill] sm:$0xff] %v7538_v51  ;;  %v7545_v16 = vld [vmem:[#allocation14 + $0x30] sm:$0xff] }
 0x813   :  { %2621 = vmatpush1.msra.mxu0 %v2542_v31  ;;  %5360 = vmatpush3.msra.mxu1 %v2544_v53  ;;  %8799 = vst [vmem:[#allocation45_spill] sm:$0xff] %v7545_v16  ;;  %v7549_v53 = vld [vmem:[#allocation14 + $0x20] sm:$0xff]  ;;  %v7552_v31 = vld [vmem:[#allocation14 + $0x18] sm:$0xff] }
 0x814   :  { %2906 = vmatprep.subr.mxu0 %v7414_v54  ;;  %5373 = vmatprep.subr.mxu1 %v8704_v12  ;;  %8800 = vst [vmem:[#allocation46_spill] sm:$0xff] %v7549_v53  ;;  %8801 = vst [vmem:[#allocation57_spill] sm:$0xff] %v7552_v31 }
 0x889   :  { %v2130_v38 = vpop.f32.mrf.mxu0  ;;  %v2201_v55 = vpop.f32.mrf.mxu1 }
 0x88a   :  { %v2131_v30 = vadd.f32 %v2130_v38, %v8775_v61  ;;  %v2202_v17 = vadd.f32 %v2201_v55, %v6821_v13  ;;  %v7431_v13 = vld [vmem:[#allocation14 + $0x168] sm:$0xff]  ;;  %v7563_v55 = vld [vmem:[#allocation14] sm:$0xff] }
 0x88b   :  { %v2132_v56 = vpop.f32.mrf.mxu0  ;;  %v5284_v23 = vpop.f32.mrf.mxu1  ;;  %v7556_v38 = vld [vmem:[#allocation14 + $0x8] sm:$0xff]  ;;  %8803 = vst [vmem:[#allocation48_spill] sm:$0xff] %v7563_v55 }
 0x88c   :  { %v2205_v36 = vadd.f32 %v2131_v30, %v8784_v21  ;;  %v2133_v33 = vadd.f32 %v2132_v56, %v6815_v19  ;;  %8802 = vst [vmem:[#allocation47_spill] sm:$0xff] %v7556_v38  ;;  %v7567_v30 = vld [vmem:[#allocation14 + $0xe8] sm:$0xff]  ;;  %v7573_v56 = vld [vmem:[#allocation14 + $0xd0] sm:$0xff]  ;;  %v7578_v23 = vld [vmem:[#allocation14 + $0xb8] sm:$0xff] }
 0x88d   :  { %8804 = vst [vmem:[#allocation58_spill] sm:$0xff] %v7573_v56  ;;  %8805 = vst [vmem:[#allocation30_spill] sm:$0xff] %v7578_v23  ;;  %v7585_v21 = vld [vmem:[#allocation14 + $0xa0] sm:$0xff] }
 0x88e   :  { %v4495_v22 = vmul.f32 -1.442695, %v2205_v36  ;;  %v2212_v15 = vadd.f32 %v2133_v33, %v8785_v27  ;;  %8806 = vst [vmem:[#allocation78_spill] sm:$0xff] %v7585_v21  ;;  %v7591_v36 = vld [vmem:[#allocation14 + $0x88] sm:$0xff]  ;;  %v7603_v33 = vld [vmem:[#allocation14 + $0x58] sm:$0xff]  ;;  %v7609_v27 = vld [vmem:[#allocation14 + $0x40] sm:$0xff] }
 0x88f   :  { %8807 = vst [vmem:[#allocation79_spill] sm:$0xff] %v7591_v36  ;;  %8809 = vst [vmem:[#allocation76_spill] sm:$0xff] %v7603_v33 }
 0x890   :  { %5810 = vpow2.f32 %v4495_v22  ;;  %v4496_v44 = vmul.f32 -1.442695, %v2212_v15  ;;  %v7597_v22 = vld [vmem:[#allocation14 + $0x70] sm:$0xff]  ;;  %8810 = vst [vmem:[#allocation77_spill] sm:$0xff] %v7609_v27  ;;  %v7615_v15 = vld [vmem:[#allocation14 + $0x28] sm:$0xff] }
 0x891   :  { %8808 = vst [vmem:[#allocation70_spill] sm:$0xff] %v7597_v22  ;;  %8811 = vst [vmem:[#allocation72_spill] sm:$0xff] %v7615_v15 }
 0x892   :  { %5812 = vpow2.f32 %v4496_v44  ;;  %v7621_v44 = vld [vmem:[#allocation14 + $0x10] sm:$0xff] }
 0x893   :  { %8812 = vst [vmem:[#allocation74_spill] sm:$0xff] %v7621_v44 }
 0x89d   :  { %v5811_v45 = vpop.eup %5810 }
 0x89e   :  { %v2209_v46 = vadd.f32 1.0, %v5811_v45 }
 0x89f   :  { %v5813_v47 = vpop.eup %5812 }
 0x8a0   :  { %5814 = vrcp.f32 %v2209_v46  ;;  %v2216_v48 = vadd.f32 1.0, %v5813_v47 }
 0x8a2   :  { %5816 = vrcp.f32 %v2216_v48 }
 0x8aa   :  { %v7683_v45 = vpop.f32.mrf.mxu0 }
 0x8ac   :  { %v7685_v46 = vpop.f32.mrf.mxu0 }
 0x8ad   :  { %v5815_v61 = vpop.eup %5814 }
 0x8ae   :  { %v2219_v4 = vmul.f32 %v5815_v61, %v2202_v17  ;;  %v7687_v47 = vpop.f32.mrf.mxu0 }
 0x8af   :  { %v5817_v20 = vpop.eup %5816 }
 0x8b0   :  { %v2220_v29 = vadd.f32 %v2219_v4, %v8786_v3  ;;  %v2222_v19 = vsub.f32 1.0, %v5817_v20  ;;  %v2224_v41 = vmul.f32 %v5817_v20, %v7388_v43  ;;  %v7689_v48 = vpop.f32.mrf.mxu0 }
 0x8b2   :  { %5818 = vtanh.f32 %v2220_v29  ;;  %v7691_v17 = vpop.f32.mrf.mxu0  ;;  %v5319_v29 = vpop.f32.mrf.mxu1 }
 0x8b4   :  { %v7693_v61 = vpop.f32.mrf.mxu0 }
 0x8b6   :  { %v7695_v4 = vpop.f32.mrf.mxu0 }
 0x8b8   :  { %v7697_v3 = vpop.f32.mrf.mxu0 }
 0x8ba   :  { %v2390_v20 = vpop.f32.mrf.mxu0 }
 0x8bf   :  { %v5819_v10 = vpop.eup %5818 }
 0x8c0   :  { %v2223_v39 = vmul.f32 %v5819_v10, %v2222_v19  ;;  %v7699_v19 = vpop.f32.mrf.mxu1  ;;  %v2392_v10 = vpop.f32.mrf.mxu0 }
 0x8c2   :  { %v7425_v14 = vadd.f32 %v2224_v41, %v2223_v39  ;;  %v5322_v39 = vpop.f32.mrf.mxu1  ;;  %v2396_v41 = vpop.f32.mrf.mxu0 }
 0x8c4   :  { %2407 = vmatmul.mubr.f32.gmra.mxu0 %v7425_v14  ;;  %5327 = vmatmul.mubr.f32.gmra.mxu1 %v7425_v14 }
 0x8c5   :  { %5361 = vmatprep.mubr.f32.mxu1 %v8779_v52  ;;  %2654 = vmatprep.mubr.f32.mxu0 %v8704_v12 }
 0x8c8   :  { %2655 = vmatmul.mubr.f32.vlgmr.msra.gmra.mxu0 %v8779_v52  ;;  %5362 = vmatmul.mubr.f32.vlgmr.msra.gmra.mxu1 %v8780_v40  ;;  %v7453_v52 = vld [vmem:[#allocation14 + $0x128] sm:$0xff] }
 0x8c9   :  { %5364 = vmatprep.mubr.f32.mxu1 %v8781_v58  ;;  %2907 = vmatpush1.msra.mxu0 %v7431_v13 }
 0x8ca   :  { %2908 = vmatprep.subr.mxu0 %v7433_v2  ;;  %2660 = vmatprep.mubr.f32.mxu0 %v8704_v12 }
 0x8cb   :  { %2909 = vmatpush1.msra.mxu0 %v7437_v5  ;;  %5374 = vmatpush3.msra.mxu1 %v7439_v28 }
 0x8cc   :  { %2661 = vmatmul.mubr.f32.gmra.mxu0 %v8780_v40  ;;  %5365 = vmatmul.mubr.f32.gmra.mxu1 %v8782_v57  ;;  %v7469_v40 = vld [vmem:[#allocation14 + $0xf8] sm:$0xff] }
 0x8cd   :  { %2910 = vmatprep.subr.mxu0 %v7445_v42  ;;  %5367 = vmatprep.mubr.f32.mxu1 %v7234_v18 }
 0x8ce   :  { %2911 = vmatpush1.msra.mxu0 %v7448_v24  ;;  %2666 = vmatprep.mubr.f32.mxu0 %v8704_v12 }
 0x8cf   :  { %2912 = vmatprep.subr.mxu0 %v7453_v52  ;;  %5375 = vmatprep.subr.mxu1 %v8704_v12 }
 0x8d0   :  { %2913 = vmatpush1.msra.mxu0 %v7457_v32  ;;  %5368 = vmatmul.mubr.f32.gmra.mxu1 %v7312_v62 }
 0x8d1   :  { %2667 = vmatmul.mubr.f32.gmra.mxu0 %v8781_v58  ;;  %2914 = vmatprep.subr.mxu0 %v7461_v25  ;;  %v7485_v58 = vld [vmem:[#allocation14 + $0xc8] sm:$0xff] }
 0x8d2   :  { %5370 = vmatprep.mubr.f32.mxu1 %v7388_v43  ;;  %2915 = vmatpush1.msra.mxu0 %v7464_v26 }
 0x8d3   :  { %2916 = vmatprep.subr.mxu0 %v7469_v40  ;;  %2672 = vmatprep.mubr.f32.mxu0 %v8704_v12 }
 0x8d4   :  { %2917 = vmatpush1.msra.mxu0 %v7473_v34  ;;  %5371 = vmatmul.mubr.f32.gmra.mxu1 %v7425_v14 }
 0x8d5   :  { %2673 = vmatmul.mubr.f32.gmra.mxu0 %v8782_v57  ;;  %2918 = vmatprep.subr.mxu0 %v7477_v0  ;;  %v7505_v57 = vld [vmem:[#allocation14 + $0x148] sm:$0xff] }
 0x8d6   :  { %2919 = vmatpush1.msra.mxu0 %v7481_v37  ;;  %2678 = vmatprep.mubr.f32.mxu0 %v8704_v12 }
 0x8d7   :  { %2920 = vmatprep.subr.mxu0 %v7485_v58  ;;  %5376 = vmatpush3.msra.mxu1 %v7487_v63 }
 0x8d8   :  { %2921 = vmatpush1.msra.mxu0 %v7491_v8  ;;  %5377 = vmatprep.subr.mxu1 %v8704_v12 }
 0x8d9   :  { %2679 = vmatmul.mubr.f32.gmra.mxu0 %v7234_v18  ;;  %2922 = vmatprep.subr.mxu0 %v7495_v7  ;;  %v7523_v18 = vld [vmem:[#allocation14 + $0x130] sm:$0xff] }
 0x8da   :  { %2923 = vmatpush1.msra.mxu0 %v7498_v35  ;;  %2684 = vmatprep.mubr.f32.mxu0 %v8704_v12 }
 0x8db   :  { %2924 = vmatprep.subr.mxu0 %v7502_v9  ;;  %5378 = vmatpush3.msra.mxu1 %v7505_v57 }
 0x8dc   :  { %2925 = vmatpush1.msra.mxu0 %v7509_v60  ;;  %5379 = vmatprep.subr.mxu1 %v8704_v12 }
 0x8dd   :  { %2685 = vmatmul.mubr.f32.gmra.mxu0 %v7312_v62  ;;  %2926 = vmatprep.subr.mxu0 %v7513_v59  ;;  %v7541_v62 = vld [vmem:[#allocation14 + $0x118] sm:$0xff] }
 0x8de   :  { %2927 = vmatpush1.msra.mxu0 %v7516_v1  ;;  %2690 = vmatprep.mubr.f32.mxu0 %v8704_v12 }
 0x8df   :  { %2928 = vmatprep.subr.mxu0 %v7520_v49  ;;  %5380 = vmatpush3.msra.mxu1 %v7523_v18 }
 0x8e0   :  { %2929 = vmatpush1.msra.mxu0 %v7527_v6  ;;  %5381 = vmatprep.subr.mxu1 %v8704_v12 }
 0x8e1   :  { %2691 = vmatmul.mubr.f32.gmra.mxu0 %v7388_v43  ;;  %2930 = vmatprep.subr.mxu0 %v7531_v50  ;;  %v7559_v43 = vld [vmem:[#allocation14 + $0x100] sm:$0xff] }
 0x8e2   :  { %2931 = vmatpush1.msra.mxu0 %v7534_v11  ;;  %2696 = vmatprep.mubr.f32.mxu0 %v8704_v12 }
 0x8e3   :  { %2932 = vmatprep.subr.mxu0 %v7538_v51  ;;  %5382 = vmatpush3.msra.mxu1 %v7541_v62 }
 0x8e4   :  { %2933 = vmatpush1.msra.mxu0 %v7545_v16  ;;  %5383 = vmatprep.subr.mxu1 %v8704_v12 }
 0x8e5   :  { %2697 = vmatmul.mubr.f32.gmra.mxu0 %v7425_v14  ;;  %2934 = vmatprep.subr.mxu0 %v7549_v53  ;;  %v2489_v14 = vpop.f32.mrf.mxu1 }
 0x8e6   :  { %2935 = vmatpush1.msra.mxu0 %v7552_v31  ;;  %2970 = vmatprep.mubr.f32.mxu0 %v8704_v12 }
 0x8e7   :  { %2936 = vmatprep.subr.mxu0 %v7556_v38  ;;  %5384 = vmatpush3.msra.mxu1 %v7559_v43 }
 0x8e8   :  { %2937 = vmatpush1.msra.mxu0 %v7563_v55  ;;  %5385 = vmatprep.subr.mxu1 %v8704_v12 }
 0x8e9   :  { %2971 = vmatmul.mubr.f32.vlgmr.msra.gmra.mxu0 %v8704_v12  ;;  %5386 = vmatpush3.msra.mxu1 %v7567_v30 }
 0x8ea   :  { %5387 = vmatprep.subr.mxu1 %v8704_v12  ;;  %5405 = vmatprep.mubr.msk.f32.mxu1 %vm6245_vm0, %v8704_v12 }
 0x8eb   :  { %5388 = vmatpush3.msra.mxu1 %v7573_v56  ;;  %3078 = vmatprep.subr.mxu0 %v7414_v54 }
 0x8ec   :  { %5389 = vmatprep.subr.mxu1 %v8704_v12  ;;  %3079 = vmatpush1.msra.mxu0 %v7431_v13 }
 0x8ed   :  { %5390 = vmatpush3.msra.mxu1 %v7578_v23  ;;  %3080 = vmatprep.subr.mxu0 %v7433_v2 }
 0x8ee   :  { %5391 = vmatprep.subr.mxu1 %v8704_v12  ;;  %3081 = vmatpush1.msra.mxu0 %v7437_v5 }
 0x8ef   :  { %5392 = vmatpush3.msra.mxu1 %v7585_v21  ;;  %3082 = vmatprep.subr.mxu0 %v7445_v42 }
 0x8f0   :  { %5393 = vmatprep.subr.mxu1 %v8704_v12  ;;  %3083 = vmatpush1.msra.mxu0 %v7448_v24 }
 0x8f1   :  { %5394 = vmatpush3.msra.mxu1 %v7591_v36  ;;  %3084 = vmatprep.subr.mxu0 %v7453_v52 }
 0x8f2   :  { %5395 = vmatprep.subr.mxu1 %v8704_v12  ;;  %3085 = vmatpush1.msra.mxu0 %v7457_v32 }
 0x8f3   :  { %5396 = vmatpush3.msra.mxu1 %v7597_v22  ;;  %3086 = vmatprep.subr.mxu0 %v7461_v25 }
 0x8f4   :  { %5397 = vmatprep.subr.mxu1 %v8704_v12  ;;  %3087 = vmatpush1.msra.mxu0 %v7464_v26 }
 0x8f5   :  { %5398 = vmatpush3.msra.mxu1 %v7603_v33  ;;  %3088 = vmatprep.subr.mxu0 %v7469_v40 }
 0x8f6   :  { %5399 = vmatprep.subr.mxu1 %v8704_v12  ;;  %3089 = vmatpush1.msra.mxu0 %v7473_v34 }
 0x8f7   :  { %5400 = vmatpush3.msra.mxu1 %v7609_v27  ;;  %3090 = vmatprep.subr.mxu0 %v7477_v0 }
 0x8f8   :  { %5401 = vmatprep.subr.mxu1 %v8704_v12  ;;  %3091 = vmatpush1.msra.mxu0 %v7481_v37 }
 0x8f9   :  { %5402 = vmatpush3.msra.mxu1 %v7615_v15  ;;  %3092 = vmatprep.subr.mxu0 %v7485_v58 }
 0x8fa   :  { %5403 = vmatprep.subr.mxu1 %v8704_v12  ;;  %3093 = vmatpush1.msra.mxu0 %v7491_v8 }
 0x8fb   :  { %5404 = vmatpush3.msra.mxu1 %v7621_v44  ;;  %3094 = vmatprep.subr.mxu0 %v7495_v7 }
 0x8fc   :  { %5406 = vmatmul.mubr.f32.vlgmr.msra.gmra.mxu1 %v8704_v12  ;;  %5408 = vmatprep.subr.mxu1 %v8704_v12 }
 0x8fd   :  { %5409 = vmatpush3.msra.mxu1 %v7439_v28  ;;  %3095 = vmatpush1.msra.mxu0 %v7498_v35 }
 0x8fe   :  { %5410 = vmatprep.subr.mxu1 %v8704_v12  ;;  %3096 = vmatprep.subr.mxu0 %v7502_v9 }
 0x8ff   :  { %5411 = vmatpush3.msra.mxu1 %v7487_v63  ;;  %3097 = vmatpush1.msra.mxu0 %v7509_v60 }
 0x900   :  { %5412 = vmatprep.subr.mxu1 %v8704_v12  ;;  %3098 = vmatprep.subr.mxu0 %v7513_v59 }
 0x901   :  { %5413 = vmatpush3.msra.mxu1 %v7505_v57  ;;  %3099 = vmatpush1.msra.mxu0 %v7516_v1 }
 0x902   :  { %5414 = vmatprep.subr.mxu1 %v8704_v12  ;;  %3100 = vmatprep.subr.mxu0 %v7520_v49 }
 0x903   :  { %5415 = vmatpush3.msra.mxu1 %v7523_v18  ;;  %3101 = vmatpush1.msra.mxu0 %v7527_v6  ;;  %v8818_v6 = vld [vmem:[#allocation61_spill] sm:$0xff] }
 0x904   :  { %5416 = vmatprep.subr.mxu1 %v8704_v12  ;;  %3102 = vmatprep.subr.mxu0 %v7531_v50 }
 0x905   :  { %5417 = vmatpush3.msra.mxu1 %v7541_v62  ;;  %3103 = vmatpush1.msra.mxu0 %v7534_v11 }
 0x906   :  { %5418 = vmatprep.subr.mxu1 %v8704_v12  ;;  %3104 = vmatprep.subr.mxu0 %v7538_v51 }
 0x907   :  { %5419 = vmatpush3.msra.mxu1 %v7559_v43  ;;  %3105 = vmatpush1.msra.mxu0 %v7545_v16  ;;  %v8815_v16 = vld [vmem:[#allocation60_spill] sm:$0xff] }
 0x908   :  { %5420 = vmatprep.subr.mxu1 %v8704_v12  ;;  %3106 = vmatprep.subr.mxu0 %v7549_v53 }
 0x909   :  { %5421 = vmatpush3.msra.mxu1 %v7567_v30  ;;  %3107 = vmatpush1.msra.mxu0 %v7552_v31 }
 0x90a   :  { %5422 = vmatprep.subr.mxu1 %v8704_v12  ;;  %3108 = vmatprep.subr.mxu0 %v7556_v38  ;;  %v2283_v38 = vld [vmem:[%s8482_s9] sm:$0x7] }
 0x90b   :  { %5423 = vmatpush3.msra.mxu1 %v7573_v56  ;;  %3109 = vmatpush1.msra.mxu0 %v7563_v55  ;;  %v7709_v51 = vrot.slane %v2283_v38, %v8815_v16  ;;  %v7715_v49 = vrot.slane %v2283_v38, %v8818_v6 }
 0x90c   :  { %5424 = vmatprep.subr.mxu1 %v8704_v12  ;;  %3142 = vmatprep.mubr.f32.mxu0 %v8704_v12 }
 0x90d   :  { %5425 = vmatpush3.msra.mxu1 %v7578_v23  ;;  %5440 = vmatprep.mubr.msk.f32.mxu1 %vm6245_vm0, %v8704_v12  ;;  %8819 = vst [vmem:[#allocation71_spill] sm:$0xff] %v7715_v49 }
 0x90e   :  { %5426 = vmatprep.subr.mxu1 %v8704_v12  ;;  %3250 = vmatprep.subr.mxu0 %v7414_v54  ;;  %v2398_v54 = vpop.f32.mrf.mxu0 }
 0x90f   :  { %5427 = vmatpush3.msra.mxu1 %v7585_v21 }
 0x910   :  { %5428 = vmatprep.subr.mxu1 %v8704_v12  ;;  %v2402_v55 = vpop.f32.mrf.mxu0 }
 0x911   :  { %5429 = vmatpush3.msra.mxu1 %v7591_v36  ;;  %v2403_v7 = vadd.f32 %v2402_v55, %v7709_v51  ;;  %v2397_v55 = vadd.f32 %v2396_v41, %v7709_v51 }
 0x912   :  { %5430 = vmatprep.subr.mxu1 %v8704_v12  ;;  %v7706_v31 = vpop.f32.mrf.mxu0 }
 0x913   :  { %5431 = vmatpush3.msra.mxu1 %v7597_v22  ;;  %8814 = vst [vmem:[#allocation67_spill] sm:$0xff] %v7706_v31 }
 0x914   :  { %5432 = vmatprep.subr.mxu1 %v8704_v12 }
 0x915   :  { %5433 = vmatpush3.msra.mxu1 %v7603_v33  ;;  %v8816_v33 = vld [vmem:[#allocation59_spill] sm:$0xff] }
 0x916   :  { %5434 = vmatprep.subr.mxu1 %v8704_v12  ;;  %v7712_v11 = vrot.slane %v2283_v38, %v8816_v33 }
 0x917   :  { %5435 = vmatpush3.msra.mxu1 %v7609_v27 }
 0x918   :  { %5436 = vmatprep.subr.mxu1 %v8704_v12  ;;  %8817 = vst [vmem:[#allocation32_spill] sm:$0xff] %v7712_v11  ;;  %v2485_v41 = vadd.f32 %v5319_v29, %v7712_v11 }
 0x919   :  { %5437 = vmatpush3.msra.mxu1 %v7615_v15 }
 0x91a   :  { %5438 = vmatprep.subr.mxu1 %v8704_v12 }
 0x91b   :  { %5439 = vmatpush3.msra.mxu1 %v7621_v44  ;;  %v5325_v44 = vpop.f32.mrf.mxu1 }
 0x91c   :  { %5443 = vmatprep.subr.mxu1 %v8704_v12  ;;  %v2505_v8 = vadd.f32 %v5325_v44, %v7712_v11 }
 0x91d   :  { %v7704_v15 = vpop.f32.mrf.mxu1 }
 0x91e   :  { %8813 = vst [vmem:[#allocation75_spill] sm:$0xff] %v7704_v15 }
 0x984   :  { %v2408_v53 = vpop.f32.mrf.mxu0  ;;  %v5328_v27 = vpop.f32.mrf.mxu1 }
 0x985   :  { %v2409_v36 = vadd.f32 %v2408_v53, %v7709_v51  ;;  %v2515_v31 = vadd.f32 %v5328_v27, %v7712_v11 }
 0x986   :  { %v2410_v50 = vpop.f32.mrf.mxu0  ;;  %v2509_v22 = vpop.f32.mrf.mxu1 }
 0x987   :  { %v2510_v1 = vadd.f32 %v2509_v22, %v7712_v11  ;;  %v2411_v21 = vadd.f32 %v2410_v50, %v7715_v49 }
 0x988   :  { %v2656_v15 = vpop.f32.mrf.mxu0  ;;  %v5363_v59 = vpop.f32.mrf.mxu1 }
 0x989   :  { %v7721_v60 = vadd.f32 %v2656_v15, %v2409_v36  ;;  %v7723_v9 = vadd.f32 %v5363_v59, %v2510_v1  ;;  %v2490_v59 = vadd.f32 %v2489_v14, %v7712_v11  ;;  %v2399_v15 = vadd.f32 %v2398_v54, %v7715_v49 }
 0x98a   :  { %v2658_v23 = vpop.f32.mrf.mxu0  ;;  %v2769_v35 = vpop.f32.mrf.mxu1  ;;  %v2391_v14 = vadd.f32 %v2390_v20, %v7709_v51 }
 0x98b   :  { %8820 = vst [vmem:[#allocation73_spill] sm:$0xff] %v7721_v60  ;;  %8821 = vst [vmem:[#allocation69_spill] sm:$0xff] %v7723_v9  ;;  %v7726_v38 = vadd.f32 %v2658_v23, %v2411_v21  ;;  %v7728_v56 = vadd.f32 %v2769_v35, %v2515_v31  ;;  %v2495_v35 = vadd.f32 %v5322_v39, %v7712_v11 }
 0x98c   :  { %v2662_v53 = vpop.f32.mrf.mxu0  ;;  %v7730_v22 = vpop.f32.mrf.mxu1  ;;  %v2393_v39 = vadd.f32 %v2392_v10, %v7715_v49  ;;  %v2379_v10 = vadd.f32 %v7691_v17, %v7709_v51 }
 0x98d   :  { %8822 = vst [vmem:[#allocation33_spill] sm:$0xff] %v7726_v38  ;;  %8823 = vst [vmem:[#allocation34_spill] sm:$0xff] %v7728_v56  ;;  %v7733_v27 = vadd.f32 %v2662_v53, %v2403_v7 }
 0x98e   :  { %8824 = vst [vmem:[#allocation51_spill] sm:$0xff] %v7730_v22  ;;  %v7735_v50 = vpop.f32.mrf.mxu0  ;;  %v2779_v36 = vpop.f32.mrf.mxu1  ;;  %v8865_v22 = vld [vmem:[#allocation74_spill] sm:$0xff] }
 0x98f   :  { %8825 = vst [vmem:[#allocation35_spill] sm:$0xff] %v7733_v27  ;;  %8826 = vst [vmem:[#allocation36_spill] sm:$0xff] %v7735_v50  ;;  %v7738_v1 = vadd.f32 %v2779_v36, %v2505_v8  ;;  %v8861_v27 = vld [vmem:[#allocation57_spill] sm:$0xff] }
 0x990   :  { %v5369_v23 = vpop.f32.mrf.mxu1 }
 0x991   :  { %8827 = vst [vmem:[#allocation80_spill] sm:$0xff] %v7738_v1  ;;  %v2668_v31 = vpop.f32.mrf.mxu0  ;;  %v7742_v21 = vadd.f32 %v5369_v23, %v2490_v59  ;;  %v8862_v1 = vld [vmem:[#allocation72_spill] sm:$0xff] }
 0x992   :  { %v7745_v44 = vadd.f32 %v2668_v31, %v2397_v55  ;;  %v2789_v7 = vpop.f32.mrf.mxu1 }
 0x993   :  { %8828 = vst [vmem:[#allocation66_spill] sm:$0xff] %v7742_v21  ;;  %v2670_v53 = vpop.f32.mrf.mxu0  ;;  %v7747_v56 = vadd.f32 %v2789_v7, %v2495_v35  ;;  %v2385_v35 = vadd.f32 %v7695_v4, %v7709_v51 }
 0x994   :  { %8829 = vst [vmem:[#allocation68_spill] sm:$0xff] %v7745_v44  ;;  %v7750_v8 = vadd.f32 %v2670_v53, %v2399_v15  ;;  %v5372_v36 = vpop.f32.mrf.mxu1  ;;  %v2387_v15 = vadd.f32 %v7697_v3, %v7715_v49  ;;  %v8864_v44 = vld [vmem:[#allocation48_spill] sm:$0xff] }
 0x995   :  { %8830 = vst [vmem:[#allocation63_spill] sm:$0xff] %v7747_v56  ;;  %v2674_v38 = vpop.f32.mrf.mxu0 }
 0x996   :  { %8831 = vst [vmem:[#allocation81_spill] sm:$0xff] %v7750_v8  ;;  %v7754_v59 = vadd.f32 %v2674_v38, %v2391_v14  ;;  %v2799_v23 = vpop.f32.mrf.mxu1  ;;  %v2381_v14 = vadd.f32 %v7693_v61, %v7715_v49  ;;  %v8863_v8 = vld [vmem:[#allocation47_spill] sm:$0xff] }
 0x997   :  { %v2676_v54 = vpop.f32.mrf.mxu0  ;;  %v7756_v55 = vadd.f32 %v2799_v23, %v2485_v41 }
 0x998   :  { %8832 = vst [vmem:[#allocation49_spill] sm:$0xff] %v7754_v59  ;;  %v7760_v31 = vadd.f32 %v2676_v54, %v2393_v39  ;;  %v2373_v39 = vadd.f32 %v7687_v47, %v7709_v51  ;;  %v2375_v54 = vadd.f32 %v7689_v48, %v7715_v49  ;;  %v2367_v47 = vadd.f32 %v7683_v45, %v7709_v51 }
 0x999   :  { %v2680_v20 = vpop.f32.mrf.mxu0 }
 0x99a   :  { %8833 = vst [vmem:[#allocation31_spill] sm:$0xff] %v7760_v31  ;;  %v7764_v7 = vadd.f32 %v2680_v20, %v2385_v35  ;;  %v2880_v20 = vld [vmem:[#allocation16] sm:$0x7] }
 0x99b   :  { %v2682_v29 = vpop.f32.mrf.mxu0  ;;  %v7785_v61 = vrot.slane %v2880_v20, %v8815_v16  ;;  %v7791_v48 = vrot.slane %v2880_v20, %v8818_v6  ;;  %v7797_v6 = vrot.slane %v2880_v20, %v8816_v33  ;;  %v8842_v20 = vld [vmem:[#allocation38_spill] sm:$0xff] }
 0x99c   :  { %8834 = vst [vmem:[#allocation50_spill] sm:$0xff] %v7764_v7  ;;  %v7768_v38 = vadd.f32 %v2682_v29, %v2387_v15 }
 0x99d   :  { %v2686_v53 = vpop.f32.mrf.mxu0  ;;  %8838 = vst [vmem:[#allocation60_spill] sm:$0xff] %v7785_v61 }
 0x99e   :  { %8835 = vst [vmem:[#allocation62_spill] sm:$0xff] %v7768_v38  ;;  %v7772_v41 = vadd.f32 %v2686_v53, %v2379_v10 }
 0x99f   :  { %v2688_v4 = vpop.f32.mrf.mxu0 }
 0x9a0   :  { %8836 = vst [vmem:[#allocation64_spill] sm:$0xff] %v7772_v41  ;;  %v7776_v23 = vadd.f32 %v2688_v4, %v2381_v14 }
 0x9a1   :  { %v2692_v3 = vpop.f32.mrf.mxu0 }
 0x9a2   :  { %8837 = vst [vmem:[#allocation65_spill] sm:$0xff] %v7776_v23  ;;  %v7780_v35 = vadd.f32 %v2692_v3, %v2373_v39 }
 0x9a3   :  { %v2694_v17 = vpop.f32.mrf.mxu0 }
 0x9a4   :  { %v7782_v15 = vadd.f32 %v2694_v17, %v2375_v54  ;;  %v2369_v54 = vadd.f32 %v7685_v46, %v7715_v49  ;;  %v8860_v49 = vld [vmem:[#allocation46_spill] sm:$0xff] }
 0x9a5   :  { %v2698_v29 = vpop.f32.mrf.mxu0 }
 0x9a6   :  { %v2887_v14 = vadd.f32 %v2698_v29, %v2367_v47 }
 0x9a7   :  { %v2700_v10 = vpop.f32.mrf.mxu0 }
 0x9a8   :  { %v2888_v60 = vadd.f32 %v2700_v10, %v2369_v54 }
 0x9a9   :  { %v2972_v53 = vpop.f32.mrf.mxu0 }
 0x9aa   :  { %v2973_v4 = vadd.f32 %v2972_v53, %v7785_v61 }
 0x9ab   :  { %v2974_v39 = vpop.f32.mrf.mxu0 }
 0x9ac   :  { %v3047_v3 = vadd.f32 %v2973_v4, %v2887_v14  ;;  %v2975_v16 = vadd.f32 %v2974_v39, %v7791_v48  ;;  %v2480_v4 = vadd.f32 %v7699_v19, %v7712_v11  ;;  %v8840_v19 = vld [vmem:[#allocation37_spill] sm:$0xff]  ;;  %v8866_v11 = vld [vmem:[#allocation52_spill] sm:$0xff] }
 0x9ae   :  { %v4497_v17 = vmul.f32 -1.442695, %v3047_v3  ;;  %v3054_v9 = vadd.f32 %v2975_v16, %v2888_v60  ;;  %v2889_v39 = vadd.f32 %v5372_v36, %v2480_v4  ;;  %v8841_v36 = vld [vmem:[#allocation58_spill] sm:$0xff]  ;;  %v8850_v4 = vld [vmem:[#allocation79_spill] sm:$0xff] }
 0x9b0   :  { %5820 = vpow2.f32 %v4497_v17  ;;  %v4498_v50 = vmul.f32 -1.442695, %v3054_v9 }
 0x9b2   :  { %5822 = vpow2.f32 %v4498_v50 }
 0x9bc   :  { %v3043_v51 = vpop.f32.mrf.mxu1 }
 0x9bd   :  { %v5821_v45 = vpop.eup %5820  ;;  %v3044_v46 = vadd.f32 %v3043_v51, %v7797_v6  ;;  %v8843_v51 = vld [vmem:[#allocation53_spill] sm:$0xff] }
 0x9be   :  { %v3051_v29 = vadd.f32 1.0, %v5821_v45  ;;  %v5407_v47 = vpop.f32.mrf.mxu1  ;;  %v8844_v45 = vld [vmem:[#allocation30_spill] sm:$0xff] }
 0x9bf   :  { %v5823_v53 = vpop.eup %5822  ;;  %v8846_v47 = vld [vmem:[#allocation40_spill] sm:$0xff] }
 0x9c0   :  { %5824 = vrcp.f32 %v3051_v29  ;;  %v3058_v14 = vadd.f32 1.0, %v5823_v53  ;;  %v8845_v29 = vld [vmem:[#allocation39_spill] sm:$0xff]  ;;  %v8847_v53 = vld [vmem:[#allocation78_spill] sm:$0xff] }
 0x9c2   :  { %5826 = vrcp.f32 %v3058_v14  ;;  %v8848_v14 = vld [vmem:[#allocation54_spill] sm:$0xff] }
 0x9cd   :  { %v5825_v10 = vpop.eup %5824 }
 0x9ce   :  { %v3061_v9 = vmul.f32 %v5825_v10, %v3044_v46  ;;  %v8849_v46 = vld [vmem:[#allocation41_spill] sm:$0xff]  ;;  %v8851_v10 = vld [vmem:[#allocation42_spill] sm:$0xff] }
 0x9cf   :  { %v5827_v50 = vpop.eup %5826 }
 0x9d0   :  { %v3062_v60 = vadd.f32 %v3061_v9, %v2889_v39  ;;  %v3064_v3 = vsub.f32 1.0, %v5827_v50  ;;  %v3066_v16 = vmul.f32 0.0, %v5827_v50  ;;  %v8852_v39 = vld [vmem:[#allocation55_spill] sm:$0xff]  ;;  %v8853_v9 = vld [vmem:[#allocation70_spill] sm:$0xff]  ;;  %v8855_v50 = vld [vmem:[#allocation44_spill] sm:$0xff] }
 0x9d2   :  { %5828 = vtanh.f32 %v3062_v60  ;;  %v8854_v60 = vld [vmem:[#allocation43_spill] sm:$0xff] }
 0x9df   :  { %v5829_v54 = vpop.eup %5828 }
 0x9e0   :  { %v3065_v17 = vmul.f32 %v5829_v54, %v3064_v3  ;;  %v8856_v3 = vld [vmem:[#allocation76_spill] sm:$0xff] }
 0x9e1   :  { %v8857_v54 = vld [vmem:[#allocation56_spill] sm:$0xff] }
 0x9e2   :  { %v7802_v33 = vadd.f32 %v3066_v16, %v3065_v17  ;;  %v8858_v17 = vld [vmem:[#allocation45_spill] sm:$0xff] }
 0x9e3   :  { %v8859_v16 = vld [vmem:[#allocation77_spill] sm:$0xff] }
 0x9e4   :  { %8839 = vst [vmem:[#allocation59_spill] sm:$0xff] %v7802_v33  ;;  %3143 = vmatmul.mubr.f32.vlgmr.msra.gmra.mxu0 %v7802_v33  ;;  %5441 = vmatmul.mubr.f32.vlgmr.msra.gmra.mxu1 %v7802_v33 }
 0x9e5   :  { %3251 = vmatpush1.msra.mxu0 %v7431_v13  ;;  %5444 = vmatpush3.msra.mxu1 %v7439_v28 }
 0x9e6   :  { %3252 = vmatprep.subr.mxu0 %v7433_v2  ;;  %5445 = vmatprep.subr.mxu1 %v8704_v12 }
 0x9e7   :  { %3253 = vmatpush1.msra.mxu0 %v7437_v5  ;;  %5446 = vmatpush3.msra.mxu1 %v7487_v63 }
 0x9e8   :  { %3254 = vmatprep.subr.mxu0 %v7445_v42  ;;  %5447 = vmatprep.subr.mxu1 %v8704_v12 }
 0x9e9   :  { %3255 = vmatpush1.msra.mxu0 %v7448_v24  ;;  %5448 = vmatpush3.msra.mxu1 %v7505_v57 }
 0x9ea   :  { %3256 = vmatprep.subr.mxu0 %v7453_v52  ;;  %5449 = vmatprep.subr.mxu1 %v8704_v12 }
 0x9eb   :  { %3257 = vmatpush1.msra.mxu0 %v7457_v32  ;;  %5450 = vmatpush3.msra.mxu1 %v7523_v18 }
 0x9ec   :  { %3258 = vmatprep.subr.mxu0 %v7461_v25  ;;  %5451 = vmatprep.subr.mxu1 %v8704_v12 }
 0x9ed   :  { %3259 = vmatpush1.msra.mxu0 %v7464_v26  ;;  %5452 = vmatpush3.msra.mxu1 %v7541_v62 }
 0x9ee   :  { %3260 = vmatprep.subr.mxu0 %v7469_v40  ;;  %5453 = vmatprep.subr.mxu1 %v8704_v12 }
 0x9ef   :  { %3261 = vmatpush1.msra.mxu0 %v7473_v34  ;;  %5454 = vmatpush3.msra.mxu1 %v7559_v43 }
 0x9f0   :  { %3262 = vmatprep.subr.mxu0 %v7477_v0  ;;  %5455 = vmatprep.subr.mxu1 %v8704_v12 }
 0x9f1   :  { %3263 = vmatpush1.msra.mxu0 %v7481_v37  ;;  %5456 = vmatpush3.msra.mxu1 %v7567_v30 }
 0x9f2   :  { %3264 = vmatprep.subr.mxu0 %v7485_v58  ;;  %5457 = vmatprep.subr.mxu1 %v8704_v12 }
 0x9f3   :  { %3265 = vmatpush1.msra.mxu0 %v8840_v19  ;;  %5458 = vmatpush3.msra.mxu1 %v8841_v36 }
 0x9f4   :  { %3266 = vmatprep.subr.mxu0 %v8842_v20  ;;  %5459 = vmatprep.subr.mxu1 %v8704_v12 }
 0x9f5   :  { %3267 = vmatpush1.msra.mxu0 %v8843_v51  ;;  %5460 = vmatpush3.msra.mxu1 %v8844_v45 }
 0x9f6   :  { %3268 = vmatprep.subr.mxu0 %v8845_v29  ;;  %5461 = vmatprep.subr.mxu1 %v8704_v12 }
 0x9f7   :  { %3269 = vmatpush1.msra.mxu0 %v8846_v47  ;;  %5462 = vmatpush3.msra.mxu1 %v8847_v53 }
 0x9f8   :  { %3270 = vmatprep.subr.mxu0 %v8848_v14  ;;  %5463 = vmatprep.subr.mxu1 %v8704_v12 }
 0x9f9   :  { %3271 = vmatpush1.msra.mxu0 %v8849_v46  ;;  %5464 = vmatpush3.msra.mxu1 %v8850_v4 }
 0x9fa   :  { %3272 = vmatprep.subr.mxu0 %v8851_v10  ;;  %5465 = vmatprep.subr.mxu1 %v8704_v12 }
 0x9fb   :  { %3273 = vmatpush1.msra.mxu0 %v8852_v39  ;;  %5466 = vmatpush3.msra.mxu1 %v8853_v9 }
 0x9fc   :  { %3274 = vmatprep.subr.mxu0 %v8854_v60  ;;  %5467 = vmatprep.subr.mxu1 %v8704_v12 }
 0x9fd   :  { %3275 = vmatpush1.msra.mxu0 %v8855_v50  ;;  %5468 = vmatpush3.msra.mxu1 %v8856_v3 }
 0x9fe   :  { %3276 = vmatprep.subr.mxu0 %v8857_v54  ;;  %5469 = vmatprep.subr.mxu1 %v8704_v12 }
 0x9ff   :  { %3277 = vmatpush1.msra.mxu0 %v8858_v17  ;;  %5470 = vmatpush3.msra.mxu1 %v8859_v16 }
 0xa00   :  { %3278 = vmatprep.subr.mxu0 %v8860_v49  ;;  %5471 = vmatprep.subr.mxu1 %v8704_v12 }
 0xa01   :  { %3279 = vmatpush1.msra.mxu0 %v8861_v27  ;;  %5472 = vmatpush3.msra.mxu1 %v8862_v1 }
 0xa02   :  { %3280 = vmatprep.subr.mxu0 %v8863_v8  ;;  %5473 = vmatprep.subr.mxu1 %v8704_v12 }
 0xa03   :  { %3281 = vmatpush1.msra.mxu0 %v8864_v44  ;;  %3314 = vmatprep.mubr.f32.mxu0 %v8704_v12 }
 0xa04   :  { %5474 = vmatpush3.msra.mxu1 %v8865_v22  ;;  %5475 = vmatprep.mubr.msk.f32.mxu1 %vm6245_vm0, %v8704_v12 }
 0xa05   :  { %3422 = vmatprep.subr.mxu0 %v8866_v11  ;;  %5478 = vmatprep.subr.mxu1 %v8704_v12 }
 0xaa4   :  { %v3144_v31 = vpop.f32.mrf.mxu0  ;;  %v3215_v59 = vpop.f32.mrf.mxu1 }
 0xaa5   :  { %v3145_v56 = vadd.f32 %v3144_v31, %v7785_v61  ;;  %v3216_v49 = vadd.f32 %v3215_v59, %v7797_v6 }
 0xaa6   :  { %v3146_v38 = vpop.f32.mrf.mxu0  ;;  %v5442_v7 = vpop.f32.mrf.mxu1 }
 0xaa7   :  { %v3219_v21 = vadd.f32 %v3145_v56, %v7780_v35  ;;  %v3147_v41 = vadd.f32 %v3146_v38, %v7791_v48 }
 0xaa9   :  { %v4499_v23 = vmul.f32 -1.442695, %v3219_v21  ;;  %v3226_v22 = vadd.f32 %v3147_v41, %v7782_v15 }
 0xaab   :  { %5830 = vpow2.f32 %v4499_v23  ;;  %v4500_v44 = vmul.f32 -1.442695, %v3226_v22 }
 0xaad   :  { %5832 = vpow2.f32 %v4500_v44 }
 0xab8   :  { %v5831_v8 = vpop.eup %5830 }
 0xab9   :  { %v3223_v11 = vadd.f32 1.0, %v5831_v8 }
 0xaba   :  { %v5833_v1 = vpop.eup %5832 }
 0xabb   :  { %5834 = vrcp.f32 %v3223_v11  ;;  %v3230_v27 = vadd.f32 1.0, %v5833_v1  ;;  %v8877_v1 = vld [vmem:[#allocation65_spill] sm:$0xff] }
 0xabd   :  { %5836 = vrcp.f32 %v3230_v27 }
 0xac8   :  { %v5835_v31 = vpop.eup %5834 }
 0xac9   :  { %v3233_v61 = vmul.f32 %v5835_v31, %v3216_v49  ;;  %v8878_v31 = vld [vmem:[#allocation66_spill] sm:$0xff] }
 0xaca   :  { %v5837_v21 = vpop.eup %5836 }
 0xacb   :  { %v3234_v56 = vadd.f32 %v3233_v61, %v7756_v55  ;;  %v3236_v7 = vsub.f32 1.0, %v5837_v21  ;;  %v3238_v22 = vmul.f32 %v5837_v21, %v7802_v33 }
 0xacd   :  { %5838 = vtanh.f32 %v3234_v56 }
 0xada   :  { %v5839_v38 = vpop.eup %5838 }
 0xadb   :  { %v3237_v23 = vmul.f32 %v5839_v38, %v3236_v7 }
 0xadd   :  { %v7880_v44 = vadd.f32 %v3238_v22, %v3237_v23 }
 0xadf   :  { %8867 = vst [vmem:[#allocation61_spill] sm:$0xff] %v7880_v44  ;;  %3315 = vmatmul.mubr.f32.vlgmr.msra.gmra.mxu0 %v7880_v44  ;;  %5476 = vmatmul.mubr.f32.vlgmr.msra.gmra.mxu1 %v7880_v44 }
 0xae0   :  { %3423 = vmatpush1.msra.mxu0 %v7431_v13  ;;  %5479 = vmatpush3.msra.mxu1 %v7439_v28  ;;  %v8868_v13 = vld [vmem:[#allocation46_spill] sm:$0xff]  ;;  %v8871_v28 = vld [vmem:[#allocation47_spill] sm:$0xff] }
 0xae1   :  { %3424 = vmatprep.subr.mxu0 %v7433_v2  ;;  %5480 = vmatprep.subr.mxu1 %v8704_v12  ;;  %v8869_v2 = vld [vmem:[#allocation57_spill] sm:$0xff] }
 0xae2   :  { %3425 = vmatpush1.msra.mxu0 %v7437_v5  ;;  %5481 = vmatpush3.msra.mxu1 %v7487_v63  ;;  %v8870_v5 = vld [vmem:[#allocation72_spill] sm:$0xff] }
 0xae3   :  { %3426 = vmatprep.subr.mxu0 %v7445_v42  ;;  %5482 = vmatprep.subr.mxu1 %v8704_v12  ;;  %v8872_v42 = vld [vmem:[#allocation48_spill] sm:$0xff] }
 0xae4   :  { %3427 = vmatpush1.msra.mxu0 %v7448_v24  ;;  %5483 = vmatpush3.msra.mxu1 %v7505_v57  ;;  %v8873_v24 = vld [vmem:[#allocation74_spill] sm:$0xff] }
 0xae5   :  { %3428 = vmatprep.subr.mxu0 %v7453_v52  ;;  %5484 = vmatprep.subr.mxu1 %v8704_v12  ;;  %v7949_v52 = vld [vmem:[#allocation14 + $0x170] sm:$0xff] }
 0xae6   :  { %3429 = vmatpush1.msra.mxu0 %v7457_v32  ;;  %5485 = vmatpush3.msra.mxu1 %v7523_v18  ;;  %8874 = vst [vmem:[#allocation37_spill] sm:$0xff] %v7949_v52 }
 0xae7   :  { %3430 = vmatprep.subr.mxu0 %v7461_v25  ;;  %5486 = vmatprep.subr.mxu1 %v8704_v12 }
 0xae8   :  { %3431 = vmatpush1.msra.mxu0 %v7464_v26  ;;  %5487 = vmatpush3.msra.mxu1 %v7541_v62  ;;  %v8875_v26 = vld [vmem:[#allocation60_spill] sm:$0xff] }
 0xae9   :  { %3432 = vmatprep.subr.mxu0 %v7469_v40  ;;  %5488 = vmatprep.subr.mxu1 %v8704_v12 }
 0xaea   :  { %3433 = vmatpush1.msra.mxu0 %v7473_v34  ;;  %5489 = vmatpush3.msra.mxu1 %v7559_v43 }
 0xaeb   :  { %3434 = vmatprep.subr.mxu0 %v7477_v0  ;;  %5490 = vmatprep.subr.mxu1 %v8704_v12 }
 0xaec   :  { %3435 = vmatpush1.msra.mxu0 %v7481_v37  ;;  %5491 = vmatpush3.msra.mxu1 %v7567_v30  ;;  %v8876_v37 = vld [vmem:[#allocation64_spill] sm:$0xff] }
 0xaed   :  { %3436 = vmatprep.subr.mxu0 %v7485_v58  ;;  %5492 = vmatprep.subr.mxu1 %v8704_v12 }
 0xaee   :  { %3437 = vmatpush1.msra.mxu0 %v8840_v19  ;;  %5493 = vmatpush3.msra.mxu1 %v8841_v36 }
 0xaef   :  { %3438 = vmatprep.subr.mxu0 %v8842_v20  ;;  %5494 = vmatprep.subr.mxu1 %v8704_v12 }
 0xaf0   :  { %3439 = vmatpush1.msra.mxu0 %v8843_v51  ;;  %5495 = vmatpush3.msra.mxu1 %v8844_v45 }
 0xaf1   :  { %3440 = vmatprep.subr.mxu0 %v8845_v29  ;;  %5496 = vmatprep.subr.mxu1 %v8704_v12 }
 0xaf2   :  { %3441 = vmatpush1.msra.mxu0 %v8846_v47  ;;  %5497 = vmatpush3.msra.mxu1 %v8847_v53 }
 0xaf3   :  { %3442 = vmatprep.subr.mxu0 %v8848_v14  ;;  %5498 = vmatprep.subr.mxu1 %v8704_v12 }
 0xaf4   :  { %3443 = vmatpush1.msra.mxu0 %v8849_v46  ;;  %5499 = vmatpush3.msra.mxu1 %v8850_v4 }
 0xaf5   :  { %3444 = vmatprep.subr.mxu0 %v8851_v10  ;;  %5500 = vmatprep.subr.mxu1 %v8704_v12 }
 0xaf6   :  { %3445 = vmatpush1.msra.mxu0 %v8852_v39  ;;  %5501 = vmatpush3.msra.mxu1 %v8853_v9 }
 0xaf7   :  { %3446 = vmatprep.subr.mxu0 %v8854_v60  ;;  %5502 = vmatprep.subr.mxu1 %v8704_v12 }
 0xaf8   :  { %3447 = vmatpush1.msra.mxu0 %v8855_v50  ;;  %5503 = vmatpush3.msra.mxu1 %v8856_v3 }
 0xaf9   :  { %3448 = vmatprep.subr.mxu0 %v8857_v54  ;;  %5504 = vmatprep.subr.mxu1 %v8704_v12 }
 0xafa   :  { %3449 = vmatpush1.msra.mxu0 %v8858_v17  ;;  %5505 = vmatpush3.msra.mxu1 %v8859_v16 }
 0xafb   :  { %3450 = vmatprep.subr.mxu0 %v8868_v13  ;;  %5506 = vmatprep.subr.mxu1 %v8704_v12 }
 0xafc   :  { %3451 = vmatpush1.msra.mxu0 %v8869_v2  ;;  %5507 = vmatpush3.msra.mxu1 %v8870_v5 }
 0xafd   :  { %3452 = vmatprep.subr.mxu0 %v8871_v28  ;;  %5508 = vmatprep.subr.mxu1 %v8704_v12 }
 0xafe   :  { %3453 = vmatpush1.msra.mxu0 %v8872_v42  ;;  %3486 = vmatprep.mubr.f32.mxu0 %v8704_v12 }
 0xaff   :  { %5509 = vmatpush3.msra.mxu1 %v8873_v24  ;;  %5510 = vmatprep.mubr.msk.f32.mxu1 %vm6245_vm0, %v8704_v12 }
 0xb00   :  { %3594 = vmatprep.subr.mxu0 %v7949_v52  ;;  %5513 = vmatprep.subr.mxu1 %v8704_v12 }
 0xb9f   :  { %v3316_v32 = vpop.f32.mrf.mxu0  ;;  %v3387_v25 = vpop.f32.mrf.mxu1 }
 0xba0   :  { %v3317_v40 = vadd.f32 %v3316_v32, %v8875_v26  ;;  %v3388_v61 = vadd.f32 %v3387_v25, %v7797_v6  ;;  %v7967_v25 = vld [vmem:[#allocation14 + $0x178] sm:$0xff] }
 0xba1   :  { %v3318_v34 = vpop.f32.mrf.mxu0  ;;  %v5477_v0 = vpop.f32.mrf.mxu1 }
 0xba2   :  { %v3391_v58 = vadd.f32 %v3317_v40, %v8876_v37  ;;  %v3319_v27 = vadd.f32 %v3318_v34, %v7791_v48  ;;  %v7964_v40 = vld [vmem:[#allocation14 + $0x168] sm:$0xff]  ;;  %v7970_v34 = vld [vmem:[#allocation14 + $0x158] sm:$0xff]  ;;  %v7974_v0 = vld [vmem:[#allocation14 + $0x150] sm:$0xff] }
 0xba3   :  { %v7978_v37 = vld [vmem:[#allocation14 + $0x140] sm:$0xff] }
 0xba4   :  { %v4501_v49 = vmul.f32 -1.442695, %v3391_v58  ;;  %v3398_v8 = vadd.f32 %v3319_v27, %v8877_v1  ;;  %v7982_v58 = vld [vmem:[#allocation14 + $0x138] sm:$0xff]  ;;  %v7990_v27 = vld [vmem:[#allocation14 + $0x120] sm:$0xff]  ;;  %v7998_v1 = vld [vmem:[#allocation14 + $0x108] sm:$0xff] }
 0xba6   :  { %5840 = vpow2.f32 %v4501_v49  ;;  %v4502_v59 = vmul.f32 -1.442695, %v3398_v8  ;;  %v7986_v49 = vld [vmem:[#allocation14 + $0x128] sm:$0xff]  ;;  %v8006_v8 = vld [vmem:[#allocation14 + $0xf0] sm:$0xff] }
 0xba8   :  { %5842 = vpow2.f32 %v4502_v59  ;;  %v8014_v59 = vld [vmem:[#allocation14 + $0xd8] sm:$0xff] }
 0xbb3   :  { %v5841_v55 = vpop.eup %5840 }
 0xbb4   :  { %v3395_v41 = vadd.f32 1.0, %v5841_v55  ;;  %v8022_v55 = vld [vmem:[#allocation14 + $0xc0] sm:$0xff] }
 0xbb5   :  { %v5843_v35 = vpop.eup %5842 }
 0xbb6   :  { %5844 = vrcp.f32 %v3395_v41  ;;  %v3402_v15 = vadd.f32 1.0, %v5843_v35  ;;  %v8079_v41 = vld [vmem:[#allocation14 + $0x160] sm:$0xff]  ;;  %v8085_v35 = vld [vmem:[#allocation14 + $0x148] sm:$0xff] }
 0xbb8   :  { %5846 = vrcp.f32 %v3402_v15  ;;  %v8091_v15 = vld [vmem:[#allocation14 + $0x130] sm:$0xff] }
 0xbc3   :  { %v5845_v19 = vpop.eup %5844 }
 0xbc4   :  { %v3405_v11 = vmul.f32 %v5845_v19, %v3388_v61  ;;  %v8097_v61 = vld [vmem:[#allocation14 + $0x118] sm:$0xff]  ;;  %v8103_v19 = vld [vmem:[#allocation14 + $0x100] sm:$0xff] }
 0xbc5   :  { %v5847_v21 = vpop.eup %5846 }
 0xbc6   :  { %v3406_v56 = vadd.f32 %v3405_v11, %v8878_v31  ;;  %v3408_v7 = vsub.f32 1.0, %v5847_v21  ;;  %v3410_v22 = vmul.f32 %v5847_v21, %v7880_v44  ;;  %v8109_v11 = vld [vmem:[#allocation14 + $0xe8] sm:$0xff]  ;;  %v8115_v31 = vld [vmem:[#allocation14 + $0xd0] sm:$0xff] }
 0xbc7   :  { %v8122_v21 = vld [vmem:[#allocation14 + $0xa8] sm:$0xff]  ;;  %v8891_v44 = vld [vmem:[#allocation31_spill] sm:$0xff] }
 0xbc8   :  { %5848 = vtanh.f32 %v3406_v56  ;;  %v8118_v56 = vld [vmem:[#allocation14 + $0xb0] sm:$0xff] }
 0xbd5   :  { %v5849_v38 = vpop.eup %5848 }
 0xbd6   :  { %v3409_v23 = vmul.f32 %v5849_v38, %v3408_v7  ;;  %v8125_v7 = vld [vmem:[#allocation14 + $0xb8] sm:$0xff] }
 0xbd7   :  { %v8128_v38 = vld [vmem:[#allocation14 + $0x98] sm:$0xff] }
 0xbd8   :  { %v7960_v32 = vadd.f32 %v3410_v22, %v3409_v23  ;;  %v8132_v23 = vld [vmem:[#allocation14 + $0x90] sm:$0xff]  ;;  %v8135_v22 = vld [vmem:[#allocation14 + $0xa0] sm:$0xff] }
 0xbda   :  { %8879 = vst [vmem:[#allocation58_spill] sm:$0xff] %v7960_v32  ;;  %3487 = vmatmul.mubr.f32.vlgmr.msra.gmra.mxu0 %v7960_v32  ;;  %5511 = vmatmul.mubr.f32.vlgmr.msra.gmra.mxu1 %v7960_v32 }
 0xbdb   :  { %3595 = vmatpush1.msra.mxu0 %v7964_v40  ;;  %5514 = vmatpush3.msra.mxu1 %v7967_v25 }
 0xbdc   :  { %3596 = vmatprep.subr.mxu0 %v7970_v34  ;;  %5515 = vmatprep.subr.mxu1 %v8704_v12 }
 0xbdd   :  { %3597 = vmatpush1.msra.mxu0 %v7974_v0  ;;  %5516 = vmatpush3.msra.mxu1 %v7487_v63  ;;  %v7994_v63 = vld [vmem:[#allocation14 + $0x110] sm:$0xff] }
 0xbde   :  { %3598 = vmatprep.subr.mxu0 %v7978_v37  ;;  %5517 = vmatprep.subr.mxu1 %v8704_v12 }
 0xbdf   :  { %3599 = vmatpush1.msra.mxu0 %v7982_v58  ;;  %5518 = vmatpush3.msra.mxu1 %v7505_v57  ;;  %v8002_v57 = vld [vmem:[#allocation14 + $0xf8] sm:$0xff] }
 0xbe0   :  { %3600 = vmatprep.subr.mxu0 %v7986_v49  ;;  %5519 = vmatprep.subr.mxu1 %v8704_v12 }
 0xbe1   :  { %3601 = vmatpush1.msra.mxu0 %v7990_v27  ;;  %5520 = vmatpush3.msra.mxu1 %v7523_v18  ;;  %v8010_v18 = vld [vmem:[#allocation14 + $0xe0] sm:$0xff] }
 0xbe2   :  { %3602 = vmatprep.subr.mxu0 %v7994_v63  ;;  %5521 = vmatprep.subr.mxu1 %v8704_v12 }
 0xbe3   :  { %3603 = vmatpush1.msra.mxu0 %v7998_v1  ;;  %5522 = vmatpush3.msra.mxu1 %v7541_v62  ;;  %v8018_v62 = vld [vmem:[#allocation14 + $0xc8] sm:$0xff] }
 0xbe4   :  { %3604 = vmatprep.subr.mxu0 %v8002_v57  ;;  %5523 = vmatprep.subr.mxu1 %v8704_v12 }
 0xbe5   :  { %3605 = vmatpush1.msra.mxu0 %v8006_v8  ;;  %5524 = vmatpush3.msra.mxu1 %v7559_v43 }
 0xbe6   :  { %3606 = vmatprep.subr.mxu0 %v8010_v18  ;;  %5525 = vmatprep.subr.mxu1 %v8704_v12 }
 0xbe7   :  { %3607 = vmatpush1.msra.mxu0 %v8014_v59  ;;  %5526 = vmatpush3.msra.mxu1 %v7567_v30 }
 0xbe8   :  { %3608 = vmatprep.subr.mxu0 %v8018_v62  ;;  %5527 = vmatprep.subr.mxu1 %v8704_v12 }
 0xbe9   :  { %3609 = vmatpush1.msra.mxu0 %v8022_v55  ;;  %5528 = vmatpush3.msra.mxu1 %v8841_v36 }
 0xbea   :  { %3610 = vmatprep.subr.mxu0 %v8842_v20  ;;  %5529 = vmatprep.subr.mxu1 %v8704_v12 }
 0xbeb   :  { %3611 = vmatpush1.msra.mxu0 %v8843_v51  ;;  %5530 = vmatpush3.msra.mxu1 %v8844_v45  ;;  %v8880_v45 = vld [vmem:[#allocation50_spill] sm:$0xff] }
 0xbec   :  { %3612 = vmatprep.subr.mxu0 %v8845_v29  ;;  %5531 = vmatprep.subr.mxu1 %v8704_v12 }
 0xbed   :  { %3613 = vmatpush1.msra.mxu0 %v8846_v47  ;;  %5532 = vmatpush3.msra.mxu1 %v8847_v53 }
 0xbee   :  { %3614 = vmatprep.subr.mxu0 %v8848_v14  ;;  %5533 = vmatprep.subr.mxu1 %v8704_v12  ;;  %v8881_v14 = vld [vmem:[#allocation62_spill] sm:$0xff] }
 0xbef   :  { %3615 = vmatpush1.msra.mxu0 %v8849_v46  ;;  %5534 = vmatpush3.msra.mxu1 %v8850_v4 }
 0xbf0   :  { %3616 = vmatprep.subr.mxu0 %v8851_v10  ;;  %5535 = vmatprep.subr.mxu1 %v8704_v12 }
 0xbf1   :  { %3617 = vmatpush1.msra.mxu0 %v8852_v39  ;;  %5536 = vmatpush3.msra.mxu1 %v8853_v9 }
 0xbf2   :  { %3618 = vmatprep.subr.mxu0 %v8854_v60  ;;  %5537 = vmatprep.subr.mxu1 %v8704_v12 }
 0xbf3   :  { %3619 = vmatpush1.msra.mxu0 %v8855_v50  ;;  %5538 = vmatpush3.msra.mxu1 %v8856_v3 }
 0xbf4   :  { %3620 = vmatprep.subr.mxu0 %v8857_v54  ;;  %5539 = vmatprep.subr.mxu1 %v8704_v12 }
 0xbf5   :  { %3621 = vmatpush1.msra.mxu0 %v8858_v17  ;;  %5540 = vmatpush3.msra.mxu1 %v8859_v16  ;;  %v8882_v17 = vld [vmem:[#allocation63_spill] sm:$0xff] }
 0xbf6   :  { %3622 = vmatprep.subr.mxu0 %v8868_v13  ;;  %5541 = vmatprep.subr.mxu1 %v8704_v12 }
 0xbf7   :  { %3623 = vmatpush1.msra.mxu0 %v8869_v2  ;;  %5542 = vmatpush3.msra.mxu1 %v8870_v5 }
 0xbf8   :  { %3624 = vmatprep.subr.mxu0 %v8871_v28  ;;  %5543 = vmatprep.subr.mxu1 %v8704_v12 }
 0xbf9   :  { %3625 = vmatpush1.msra.mxu0 %v8872_v42  ;;  %3658 = vmatprep.mubr.f32.mxu0 %v8704_v12 }
 0xbfa   :  { %5544 = vmatpush3.msra.mxu1 %v8873_v24  ;;  %5545 = vmatprep.mubr.msk.f32.mxu1 %vm6245_vm0, %v8704_v12 }
 0xbfb   :  { %3766 = vmatprep.subr.mxu0 %v7949_v52  ;;  %5548 = vmatprep.subr.mxu1 %v8704_v12 }
 0xc9a   :  { %v3488_v43 = vpop.f32.mrf.mxu0  ;;  %v3559_v30 = vpop.f32.mrf.mxu1 }
 0xc9b   :  { %v3489_v36 = vadd.f32 %v3488_v43, %v8875_v26  ;;  %v3560_v50 = vadd.f32 %v3559_v30, %v7797_v6  ;;  %v8138_v43 = vld [vmem:[#allocation14 + $0x80] sm:$0xff]  ;;  %v8142_v30 = vld [vmem:[#allocation14 + $0x78] sm:$0xff] }
 0xc9c   :  { %v3490_v20 = vpop.f32.mrf.mxu0  ;;  %v5512_v51 = vpop.f32.mrf.mxu1 }
 0xc9d   :  { %v3563_v29 = vadd.f32 %v3489_v36, %v8880_v45  ;;  %v3491_v53 = vadd.f32 %v3490_v20, %v7791_v48  ;;  %v8145_v36 = vld [vmem:[#allocation14 + $0x88] sm:$0xff]  ;;  %v8152_v51 = vld [vmem:[#allocation14 + $0x60] sm:$0xff]  ;;  %v8155_v45 = vld [vmem:[#allocation14 + $0x70] sm:$0xff] }
 0xc9e   :  { %v8148_v20 = vld [vmem:[#allocation14 + $0x68] sm:$0xff] }
 0xc9f   :  { %v4503_v47 = vmul.f32 -1.442695, %v3563_v29  ;;  %v3570_v46 = vadd.f32 %v3491_v53, %v8881_v14  ;;  %v8158_v29 = vld [vmem:[#allocation14 + $0x50] sm:$0xff]  ;;  %v8165_v53 = vld [vmem:[#allocation14 + $0x58] sm:$0xff] }
 0xca0   :  { %v8168_v14 = vld [vmem:[#allocation14 + $0x38] sm:$0xff] }
 0xca1   :  { %5850 = vpow2.f32 %v4503_v47  ;;  %v4504_v4 = vmul.f32 -1.442695, %v3570_v46  ;;  %v8162_v47 = vld [vmem:[#allocation14 + $0x48] sm:$0xff]  ;;  %v8172_v46 = vld [vmem:[#allocation14 + $0x30] sm:$0xff] }
 0xca3   :  { %5852 = vpow2.f32 %v4504_v4  ;;  %v8175_v4 = vld [vmem:[#allocation14 + $0x40] sm:$0xff] }
 0xcae   :  { %v5851_v10 = vpop.eup %5850 }
 0xcaf   :  { %v3567_v39 = vadd.f32 1.0, %v5851_v10  ;;  %v8178_v10 = vld [vmem:[#allocation14 + $0x20] sm:$0xff] }
 0xcb0   :  { %v5853_v9 = vpop.eup %5852  ;;  %8884 = vst [vmem:[#allocation53_spill] sm:$0xff] %v8178_v10 }
 0xcb1   :  { %5854 = vrcp.f32 %v3567_v39  ;;  %v3574_v60 = vadd.f32 1.0, %v5853_v9  ;;  %v8182_v39 = vld [vmem:[#allocation14 + $0x18] sm:$0xff]  ;;  %v8185_v9 = vld [vmem:[#allocation14 + $0x28] sm:$0xff] }
 0xcb2   :  { %8885 = vst [vmem:[#allocation30_spill] sm:$0xff] %v8182_v39  ;;  %8886 = vst [vmem:[#allocation39_spill] sm:$0xff] %v8185_v9 }
 0xcb3   :  { %5856 = vrcp.f32 %v3574_v60  ;;  %v8188_v60 = vld [vmem:[#allocation14 + $0x8] sm:$0xff] }
 0xcb4   :  { %8887 = vst [vmem:[#allocation40_spill] sm:$0xff] %v8188_v60 }
 0xcbe   :  { %v5855_v3 = vpop.eup %5854 }
 0xcbf   :  { %v3577_v54 = vmul.f32 %v5855_v3, %v3560_v50  ;;  %v8192_v50 = vld [vmem:[#allocation14] sm:$0xff]  ;;  %v8196_v3 = vld [vmem:[#allocation14 + $0x10] sm:$0xff] }
 0xcc0   :  { %v5857_v13 = vpop.eup %5856  ;;  %8888 = vst [vmem:[#allocation78_spill] sm:$0xff] %v8192_v50  ;;  %8889 = vst [vmem:[#allocation54_spill] sm:$0xff] %v8196_v3 }
 0xcc1   :  { %v3578_v16 = vadd.f32 %v3577_v54, %v8882_v17  ;;  %v3580_v2 = vsub.f32 1.0, %v5857_v13  ;;  %v3582_v42 = vmul.f32 %v5857_v13, %v7960_v32 }
 0xcc3   :  { %5858 = vtanh.f32 %v3578_v16 }
 0xcd0   :  { %v5859_v5 = vpop.eup %5858 }
 0xcd1   :  { %v3581_v28 = vmul.f32 %v5859_v5, %v3580_v2  ;;  %v8890_v5 = vld [vmem:[#allocation49_spill] sm:$0xff] }
 0xcd3   :  { %v8070_v24 = vadd.f32 %v3582_v42, %v3581_v28 }
 0xcd5   :  { %8883 = vst [vmem:[#allocation38_spill] sm:$0xff] %v8070_v24  ;;  %3659 = vmatmul.mubr.f32.vlgmr.msra.gmra.mxu0 %v8070_v24  ;;  %5546 = vmatmul.mubr.f32.vlgmr.msra.gmra.mxu1 %v8070_v24 }
 0xcd6   :  { %3767 = vmatpush1.msra.mxu0 %v7964_v40  ;;  %5549 = vmatpush3.msra.mxu1 %v7967_v25 }
 0xcd7   :  { %3768 = vmatprep.subr.mxu0 %v7970_v34  ;;  %5550 = vmatprep.subr.mxu1 %v8704_v12 }
 0xcd8   :  { %3769 = vmatpush1.msra.mxu0 %v7974_v0  ;;  %5551 = vmatpush3.msra.mxu1 %v8079_v41 }
 0xcd9   :  { %3770 = vmatprep.subr.mxu0 %v7978_v37  ;;  %5552 = vmatprep.subr.mxu1 %v8704_v12 }
 0xcda   :  { %3771 = vmatpush1.msra.mxu0 %v7982_v58  ;;  %5553 = vmatpush3.msra.mxu1 %v8085_v35 }
 0xcdb   :  { %3772 = vmatprep.subr.mxu0 %v7986_v49  ;;  %5554 = vmatprep.subr.mxu1 %v8704_v12 }
 0xcdc   :  { %3773 = vmatpush1.msra.mxu0 %v7990_v27  ;;  %5555 = vmatpush3.msra.mxu1 %v8091_v15 }
 0xcdd   :  { %3774 = vmatprep.subr.mxu0 %v7994_v63  ;;  %5556 = vmatprep.subr.mxu1 %v8704_v12 }
 0xcde   :  { %3775 = vmatpush1.msra.mxu0 %v7998_v1  ;;  %5557 = vmatpush3.msra.mxu1 %v8097_v61 }
 0xcdf   :  { %3776 = vmatprep.subr.mxu0 %v8002_v57  ;;  %5558 = vmatprep.subr.mxu1 %v8704_v12 }
 0xce0   :  { %3777 = vmatpush1.msra.mxu0 %v8006_v8  ;;  %5559 = vmatpush3.msra.mxu1 %v8103_v19 }
 0xce1   :  { %3778 = vmatprep.subr.mxu0 %v8010_v18  ;;  %5560 = vmatprep.subr.mxu1 %v8704_v12 }
 0xce2   :  { %3779 = vmatpush1.msra.mxu0 %v8014_v59  ;;  %5561 = vmatpush3.msra.mxu1 %v8109_v11 }
 0xce3   :  { %3780 = vmatprep.subr.mxu0 %v8018_v62  ;;  %5562 = vmatprep.subr.mxu1 %v8704_v12 }
 0xce4   :  { %3781 = vmatpush1.msra.mxu0 %v8022_v55  ;;  %5563 = vmatpush3.msra.mxu1 %v8115_v31 }
 0xce5   :  { %3782 = vmatprep.subr.mxu0 %v8118_v56  ;;  %5564 = vmatprep.subr.mxu1 %v8704_v12 }
 0xce6   :  { %3783 = vmatpush1.msra.mxu0 %v8122_v21  ;;  %5565 = vmatpush3.msra.mxu1 %v8125_v7 }
 0xce7   :  { %3784 = vmatprep.subr.mxu0 %v8128_v38  ;;  %5566 = vmatprep.subr.mxu1 %v8704_v12 }
 0xce8   :  { %3785 = vmatpush1.msra.mxu0 %v8132_v23  ;;  %5567 = vmatpush3.msra.mxu1 %v8135_v22 }
 0xce9   :  { %3786 = vmatprep.subr.mxu0 %v8138_v43  ;;  %5568 = vmatprep.subr.mxu1 %v8704_v12 }
 0xcea   :  { %3787 = vmatpush1.msra.mxu0 %v8142_v30  ;;  %5569 = vmatpush3.msra.mxu1 %v8145_v36 }
 0xceb   :  { %3788 = vmatprep.subr.mxu0 %v8148_v20  ;;  %5570 = vmatprep.subr.mxu1 %v8704_v12 }
 0xcec   :  { %3789 = vmatpush1.msra.mxu0 %v8152_v51  ;;  %5571 = vmatpush3.msra.mxu1 %v8155_v45 }
 0xced   :  { %3790 = vmatprep.subr.mxu0 %v8158_v29  ;;  %5572 = vmatprep.subr.mxu1 %v8704_v12 }
 0xcee   :  { %3791 = vmatpush1.msra.mxu0 %v8162_v47  ;;  %5573 = vmatpush3.msra.mxu1 %v8165_v53 }
 0xcef   :  { %3792 = vmatprep.subr.mxu0 %v8168_v14  ;;  %5574 = vmatprep.subr.mxu1 %v8704_v12 }
 0xcf0   :  { %3793 = vmatpush1.msra.mxu0 %v8172_v46  ;;  %5575 = vmatpush3.msra.mxu1 %v8175_v4 }
 0xcf1   :  { %3794 = vmatprep.subr.mxu0 %v8178_v10  ;;  %5576 = vmatprep.subr.mxu1 %v8704_v12  ;;  %v8893_v10 = vld [vmem:[#allocation75_spill] sm:$0xff] }
 0xcf2   :  { %3795 = vmatpush1.msra.mxu0 %v8182_v39  ;;  %5577 = vmatpush3.msra.mxu1 %v8185_v9  ;;  %v8892_v39 = vld [vmem:[#allocation32_spill] sm:$0xff] }
 0xcf3   :  { %3796 = vmatprep.subr.mxu0 %v8188_v60  ;;  %5578 = vmatprep.subr.mxu1 %v8704_v12 }
 0xcf4   :  { %3797 = vmatpush1.msra.mxu0 %v8192_v50  ;;  %3830 = vmatprep.mubr.f32.mxu0 %v8704_v12 }
 0xcf5   :  { %5579 = vmatpush3.msra.mxu1 %v8196_v3  ;;  %5580 = vmatprep.mubr.msk.f32.mxu1 %vm6245_vm0, %v8704_v12 }
 0xcf6   :  { %3938 = vmatprep.subr.mxu0 %v7949_v52  ;;  %5583 = vmatprep.subr.mxu1 %v8704_v12 }
 0xd95   :  { %v3660_v54 = vpop.f32.mrf.mxu0  ;;  %v3731_v17 = vpop.f32.mrf.mxu1 }
 0xd96   :  { %v3661_v16 = vadd.f32 %v3660_v54, %v8875_v26  ;;  %v2500_v54 = vadd.f32 %v8893_v10, %v8892_v39  ;;  %v8896_v10 = vld [vmem:[#allocation30_spill] sm:$0xff]  ;;  %v8897_v39 = vld [vmem:[#allocation39_spill] sm:$0xff] }
 0xd97   :  { %v3662_v13 = vpop.f32.mrf.mxu0  ;;  %v5547_v2 = vpop.f32.mrf.mxu1 }
 0xd98   :  { %v3735_v28 = vadd.f32 %v3661_v16, %v8890_v5  ;;  %v3663_v32 = vadd.f32 %v3662_v13, %v7791_v48  ;;  %v3732_v2 = vadd.f32 %v3731_v17, %v7797_v6  ;;  %v8894_v16 = vld [vmem:[#allocation51_spill] sm:$0xff]  ;;  %v8900_v17 = vld [vmem:[#allocation54_spill] sm:$0xff] }
 0xd99   :  { %v3593_v5 = vadd.f32 %v8894_v16, %v2500_v54  ;;  %v8902_v16 = vld [vmem:[#allocation60_spill] sm:$0xff] }
 0xd9a   :  { %v4505_v42 = vmul.f32 -1.442695, %v3735_v28  ;;  %v3742_v33 = vadd.f32 %v3663_v32, %v8891_v44 }
 0xd9c   :  { %5860 = vpow2.f32 %v4505_v42  ;;  %v4506_v3 = vmul.f32 -1.442695, %v3742_v33  ;;  %v8901_v42 = vld [vmem:[#allocation37_spill] sm:$0xff] }
 0xd9e   :  { %5862 = vpow2.f32 %v4506_v3 }
 0xda9   :  { %v5861_v50 = vpop.eup %5860 }
 0xdaa   :  { %v3739_v52 = vadd.f32 1.0, %v5861_v50 }
 0xdab   :  { %v5863_v60 = vpop.eup %5862 }
 0xdac   :  { %5864 = vrcp.f32 %v3739_v52  ;;  %v3746_v9 = vadd.f32 1.0, %v5863_v60  ;;  %v8899_v60 = vld [vmem:[#allocation78_spill] sm:$0xff] }
 0xdae   :  { %5866 = vrcp.f32 %v3746_v9  ;;  %v8898_v9 = vld [vmem:[#allocation40_spill] sm:$0xff] }
 0xdb9   :  { %v5865_v26 = vpop.eup %5864 }
 0xdba   :  { %v3749_v28 = vmul.f32 %v5865_v26, %v3732_v2  ;;  %v8895_v26 = vld [vmem:[#allocation53_spill] sm:$0xff] }
 0xdbb   :  { %v5867_v44 = vpop.eup %5866 }
 0xdbc   :  { %v3750_v13 = vadd.f32 %v3749_v28, %v3593_v5  ;;  %v3752_v33 = vsub.f32 1.0, %v5867_v44  ;;  %v3754_v52 = vmul.f32 %v5867_v44, %v8070_v24  ;;  %v8903_v44 = vld [vmem:[#allocation68_spill] sm:$0xff] }
 0xdbe   :  { %5868 = vtanh.f32 %v3750_v13 }
 0xdcb   :  { %v5869_v32 = vpop.eup %5868 }
 0xdcc   :  { %v3753_v3 = vmul.f32 %v5869_v32, %v3752_v33 }
 0xdce   :  { %v8212_v50 = vadd.f32 %v3754_v52, %v3753_v3  ;;  %v8904_v52 = vld [vmem:[#allocation81_spill] sm:$0xff] }
 0xdd0   :  { %3831 = vmatmul.mubr.f32.vlgmr.msra.gmra.mxu0 %v8212_v50  ;;  %5581 = vmatmul.mubr.f32.vlgmr.msra.gmra.mxu1 %v8212_v50 }
 0xdd1   :  { %3939 = vmatpush1.msra.mxu0 %v7964_v40  ;;  %5584 = vmatpush3.msra.mxu1 %v7967_v25 }
 0xdd2   :  { %3940 = vmatprep.subr.mxu0 %v7970_v34  ;;  %5585 = vmatprep.subr.mxu1 %v8704_v12 }
 0xdd3   :  { %3941 = vmatpush1.msra.mxu0 %v7974_v0  ;;  %5586 = vmatpush3.msra.mxu1 %v8079_v41 }
 0xdd4   :  { %3942 = vmatprep.subr.mxu0 %v7978_v37  ;;  %5587 = vmatprep.subr.mxu1 %v8704_v12 }
 0xdd5   :  { %3943 = vmatpush1.msra.mxu0 %v7982_v58  ;;  %5588 = vmatpush3.msra.mxu1 %v8085_v35 }
 0xdd6   :  { %3944 = vmatprep.subr.mxu0 %v7986_v49  ;;  %5589 = vmatprep.subr.mxu1 %v8704_v12 }
 0xdd7   :  { %3945 = vmatpush1.msra.mxu0 %v7990_v27  ;;  %5590 = vmatpush3.msra.mxu1 %v8091_v15 }
 0xdd8   :  { %3946 = vmatprep.subr.mxu0 %v7994_v63  ;;  %5591 = vmatprep.subr.mxu1 %v8704_v12 }
 0xdd9   :  { %3947 = vmatpush1.msra.mxu0 %v7998_v1  ;;  %5592 = vmatpush3.msra.mxu1 %v8097_v61 }
 0xdda   :  { %3948 = vmatprep.subr.mxu0 %v8002_v57  ;;  %5593 = vmatprep.subr.mxu1 %v8704_v12 }
 0xddb   :  { %3949 = vmatpush1.msra.mxu0 %v8006_v8  ;;  %5594 = vmatpush3.msra.mxu1 %v8103_v19 }
 0xddc   :  { %3950 = vmatprep.subr.mxu0 %v8010_v18  ;;  %5595 = vmatprep.subr.mxu1 %v8704_v12 }
 0xddd   :  { %3951 = vmatpush1.msra.mxu0 %v8014_v59  ;;  %5596 = vmatpush3.msra.mxu1 %v8109_v11 }
 0xdde   :  { %3952 = vmatprep.subr.mxu0 %v8018_v62  ;;  %5597 = vmatprep.subr.mxu1 %v8704_v12 }
 0xddf   :  { %3953 = vmatpush1.msra.mxu0 %v8022_v55  ;;  %5598 = vmatpush3.msra.mxu1 %v8115_v31 }
 0xde0   :  { %3954 = vmatprep.subr.mxu0 %v8118_v56  ;;  %5599 = vmatprep.subr.mxu1 %v8704_v12 }
 0xde1   :  { %3955 = vmatpush1.msra.mxu0 %v8122_v21  ;;  %5600 = vmatpush3.msra.mxu1 %v8125_v7 }
 0xde2   :  { %3956 = vmatprep.subr.mxu0 %v8128_v38  ;;  %5601 = vmatprep.subr.mxu1 %v8704_v12 }
 0xde3   :  { %3957 = vmatpush1.msra.mxu0 %v8132_v23  ;;  %5602 = vmatpush3.msra.mxu1 %v8135_v22 }
 0xde4   :  { %3958 = vmatprep.subr.mxu0 %v8138_v43  ;;  %5603 = vmatprep.subr.mxu1 %v8704_v12 }
 0xde5   :  { %3959 = vmatpush1.msra.mxu0 %v8142_v30  ;;  %5604 = vmatpush3.msra.mxu1 %v8145_v36 }
 0xde6   :  { %3960 = vmatprep.subr.mxu0 %v8148_v20  ;;  %5605 = vmatprep.subr.mxu1 %v8704_v12 }
 0xde7   :  { %3961 = vmatpush1.msra.mxu0 %v8152_v51  ;;  %5606 = vmatpush3.msra.mxu1 %v8155_v45 }
 0xde8   :  { %3962 = vmatprep.subr.mxu0 %v8158_v29  ;;  %5607 = vmatprep.subr.mxu1 %v8704_v12 }
 0xde9   :  { %3963 = vmatpush1.msra.mxu0 %v8162_v47  ;;  %5608 = vmatpush3.msra.mxu1 %v8165_v53 }
 0xdea   :  { %3964 = vmatprep.subr.mxu0 %v8168_v14  ;;  %5609 = vmatprep.subr.mxu1 %v8704_v12 }
 0xdeb   :  { %3965 = vmatpush1.msra.mxu0 %v8172_v46  ;;  %5610 = vmatpush3.msra.mxu1 %v8175_v4 }
 0xdec   :  { %3966 = vmatprep.subr.mxu0 %v8895_v26  ;;  %5611 = vmatprep.subr.mxu1 %v8704_v12 }
 0xded   :  { %3967 = vmatpush1.msra.mxu0 %v8896_v10  ;;  %5612 = vmatpush3.msra.mxu1 %v8897_v39 }
 0xdee   :  { %3968 = vmatprep.subr.mxu0 %v8898_v9  ;;  %5613 = vmatprep.subr.mxu1 %v8704_v12 }
 0xdef   :  { %3969 = vmatpush1.msra.mxu0 %v8899_v60  ;;  %4002 = vmatprep.mubr.f32.mxu0 %v8704_v12 }
 0xdf0   :  { %5614 = vmatpush3.msra.mxu1 %v8900_v17  ;;  %5615 = vmatprep.mubr.msk.f32.mxu1 %vm6245_vm0, %v8704_v12 }
 0xdf1   :  { %4110 = vmatprep.subr.mxu0 %v8901_v42  ;;  %5618 = vmatprep.subr.mxu1 %v8704_v12 }
 0xe90   :  { %v3832_v54 = vpop.f32.mrf.mxu0  ;;  %v3903_v2 = vpop.f32.mrf.mxu1 }
 0xe91   :  { %v3833_v5 = vadd.f32 %v3832_v54, %v8902_v16  ;;  %v3904_v10 = vadd.f32 %v3903_v2, %v7797_v6  ;;  %v4280_v2 = vld [vmem:[%s8484_s11 + $0x30] sm:$0xff] }
 0xe92   :  { %v3834_v28 = vpop.f32.mrf.mxu0  ;;  %v5582_v13 = vpop.f32.mrf.mxu1 }
 0xe93   :  { %v3907_v33 = vadd.f32 %v3833_v5, %v8903_v44  ;;  %v3835_v3 = vadd.f32 %v3834_v28, %v7791_v48  ;;  %v8905_v13 = vld [vmem:[#allocation80_spill] sm:$0xff] }
 0xe95   :  { %v4507_v32 = vmul.f32 -1.442695, %v3907_v33  ;;  %v3914_v24 = vadd.f32 %v3835_v3, %v8904_v52  ;;  %v4278_v3 = vld [vmem:[%s8484_s11 + $0x20] sm:$0xff]  ;;  %v4277_v52 = vld [vmem:[%s8484_s11 + $0x18] sm:$0xff] }
 0xe97   :  { %5870 = vpow2.f32 %v4507_v32  ;;  %v4508_v17 = vmul.f32 -1.442695, %v3914_v24 }
 0xe99   :  { %5872 = vpow2.f32 %v4508_v17 }
 0xea4   :  { %v5871_v60 = vpop.eup %5870 }
 0xea5   :  { %v3911_v42 = vadd.f32 1.0, %v5871_v60  ;;  %v4281_v60 = vld [vmem:[%s8484_s11 + $0x38] sm:$0xff] }
 0xea6   :  { %v5873_v9 = vpop.eup %5872 }
 0xea7   :  { %5874 = vrcp.f32 %v3911_v42  ;;  %v3918_v39 = vadd.f32 1.0, %v5873_v9  ;;  %v4282_v9 = vld [vmem:[%s8484_s11 + $0x40] sm:$0xff]  ;;  %v4276_v42 = vld [vmem:[%s8484_s11 + $0x10] sm:$0xff] }
 0xea9   :  { %5876 = vrcp.f32 %v3918_v39  ;;  %v4283_v39 = vld [vmem:[%s8484_s11 + $0x48] sm:$0xff] }
 0xeb4   :  { %v5875_v54 = vpop.eup %5874 }
 0xeb5   :  { %v3921_v16 = vmul.f32 %v5875_v54, %v3904_v10  ;;  %v4284_v10 = vld [vmem:[%s8484_s11 + $0x50] sm:$0xff]  ;;  %v4275_v54 = vld [vmem:[%s8484_s11 + $0x8] sm:$0xff] }
 0xeb6   :  { %v5877_v44 = vpop.eup %5876 }
 0xeb7   :  { %v3922_v5 = vadd.f32 %v3921_v16, %v8905_v13  ;;  %v3924_v28 = vsub.f32 1.0, %v5877_v44  ;;  %v3926_v24 = vmul.f32 %v5877_v44, %v8212_v50  ;;  %v4279_v16 = vld [vmem:[%s8484_s11 + $0x28] sm:$0xff]  ;;  %v4274_v13 = vld [vmem:[%s8484_s11] sm:$0xff]  ;;  %v4381_v44 = vld [vmem:[#allocation19 + $0x70] sm:$0xff] }
 0xeb9   :  { %5878 = vtanh.f32 %v3922_v5  ;;  %v4382_v5 = vld [vmem:[#allocation19 + $0x78] sm:$0xff] }
 0xec6   :  { %v5879_v33 = vpop.eup %5878 }
 0xec7   :  { %v3925_v32 = vmul.f32 %v5879_v33, %v3924_v28  ;;  %v4380_v28 = vld [vmem:[#allocation19 + $0x68] sm:$0xff]  ;;  %v4379_v33 = vld [vmem:[#allocation19 + $0x60] sm:$0xff] }
 0xec9   :  { %v8290_v17 = vadd.f32 %v3926_v24, %v3925_v32  ;;  %v4378_v32 = vld [vmem:[#allocation19 + $0x58] sm:$0xff]  ;;  %v4377_v24 = vld [vmem:[#allocation19 + $0x50] sm:$0xff] }
 0xecb   :  { %4003 = vmatmul.mubr.f32.vlgmr.msra.gmra.mxu0 %v8290_v17  ;;  %5616 = vmatmul.mubr.f32.vlgmr.msra.gmra.mxu1 %v8290_v17 }
 0xecc   :  { %4111 = vmatpush1.msra.mxu0 %v7964_v40  ;;  %5619 = vmatpush3.msra.mxu1 %v7967_v25  ;;  %v8906_v40 = vld [vmem:[#allocation30_spill] sm:$0xff]  ;;  %v8907_v25 = vld [vmem:[#allocation39_spill] sm:$0xff] }
 0xecd   :  { %4112 = vmatprep.subr.mxu0 %v7970_v34  ;;  %5620 = vmatprep.subr.mxu1 %v8704_v12  ;;  %v8908_v34 = vld [vmem:[#allocation40_spill] sm:$0xff] }
 0xece   :  { %4113 = vmatpush1.msra.mxu0 %v7974_v0  ;;  %5621 = vmatpush3.msra.mxu1 %v8079_v41  ;;  %v8909_v0 = vld [vmem:[#allocation78_spill] sm:$0xff] }
 0xecf   :  { %4114 = vmatprep.subr.mxu0 %v7978_v37  ;;  %5622 = vmatprep.subr.mxu1 %v8704_v12  ;;  %v8910_v37 = vld [vmem:[#allocation54_spill] sm:$0xff] }
 0xed0   :  { %4115 = vmatpush1.msra.mxu0 %v7982_v58  ;;  %5623 = vmatpush3.msra.mxu1 %v8085_v35 }
 0xed1   :  { %4116 = vmatprep.subr.mxu0 %v7986_v49  ;;  %5624 = vmatprep.subr.mxu1 %v8704_v12 }
 0xed2   :  { %4117 = vmatpush1.msra.mxu0 %v7990_v27  ;;  %5625 = vmatpush3.msra.mxu1 %v8091_v15  ;;  %v8911_v27 = vld [vmem:[#allocation60_spill] sm:$0xff] }
 0xed3   :  { %4118 = vmatprep.subr.mxu0 %v7994_v63  ;;  %5626 = vmatprep.subr.mxu1 %v8704_v12  ;;  %v8915_v15 = vld [vmem:[#allocation36_spill] sm:$0xff] }
 0xed4   :  { %4119 = vmatpush1.msra.mxu0 %v7998_v1  ;;  %5627 = vmatpush3.msra.mxu1 %v8097_v61 }
 0xed5   :  { %4120 = vmatprep.subr.mxu0 %v8002_v57  ;;  %5628 = vmatprep.subr.mxu1 %v8704_v12 }
 0xed6   :  { %4121 = vmatpush1.msra.mxu0 %v8006_v8  ;;  %5629 = vmatpush3.msra.mxu1 %v8103_v19  ;;  %v8912_v8 = vld [vmem:[#allocation35_spill] sm:$0xff] }
 0xed7   :  { %4122 = vmatprep.subr.mxu0 %v8010_v18  ;;  %5630 = vmatprep.subr.mxu1 %v8704_v12 }
 0xed8   :  { %4123 = vmatpush1.msra.mxu0 %v8014_v59  ;;  %5631 = vmatpush3.msra.mxu1 %v8109_v11  ;;  %v8913_v59 = vld [vmem:[#allocation71_spill] sm:$0xff] }
 0xed9   :  { %4124 = vmatprep.subr.mxu0 %v8018_v62  ;;  %5632 = vmatprep.subr.mxu1 %v8704_v12  ;;  %v8914_v62 = vld [vmem:[#allocation67_spill] sm:$0xff] }
 0xeda   :  { %4125 = vmatpush1.msra.mxu0 %v8022_v55  ;;  %5633 = vmatpush3.msra.mxu1 %v8115_v31  ;;  %v2405_v55 = vadd.f32 %v8914_v62, %v8913_v59  ;;  %v8917_v62 = vld [vmem:[#allocation73_spill] sm:$0xff] }
 0xedb   :  { %4126 = vmatprep.subr.mxu0 %v8118_v56  ;;  %5634 = vmatprep.subr.mxu1 %v8704_v12 }
 0xedc   :  { %4127 = vmatpush1.msra.mxu0 %v8122_v21  ;;  %5635 = vmatpush3.msra.mxu1 %v8125_v7  ;;  %v3936_v61 = vadd.f32 %v8915_v15, %v2405_v55  ;;  %v8918_v15 = vld [vmem:[#allocation33_spill] sm:$0xff] }
 0xedd   :  { %4128 = vmatprep.subr.mxu0 %v8128_v38  ;;  %5636 = vmatprep.subr.mxu1 %v8704_v12 }
 0xede   :  { %4129 = vmatpush1.msra.mxu0 %v8132_v23  ;;  %5637 = vmatpush3.msra.mxu1 %v8135_v22 }
 0xedf   :  { %4130 = vmatprep.subr.mxu0 %v8138_v43  ;;  %5638 = vmatprep.subr.mxu1 %v8704_v12  ;;  %v8916_v43 = vld [vmem:[#allocation69_spill] sm:$0xff] }
 0xee0   :  { %4131 = vmatpush1.msra.mxu0 %v8142_v30  ;;  %5639 = vmatpush3.msra.mxu1 %v8145_v36 }
 0xee1   :  { %4132 = vmatprep.subr.mxu0 %v8148_v20  ;;  %5640 = vmatprep.subr.mxu1 %v8704_v12 }
 0xee2   :  { %4133 = vmatpush1.msra.mxu0 %v8152_v51  ;;  %5641 = vmatpush3.msra.mxu1 %v8155_v45 }
 0xee3   :  { %4134 = vmatprep.subr.mxu0 %v8158_v29  ;;  %5642 = vmatprep.subr.mxu1 %v8704_v12 }
 0xee4   :  { %4135 = vmatpush1.msra.mxu0 %v8162_v47  ;;  %5643 = vmatpush3.msra.mxu1 %v8165_v53  ;;  %v4289_v53 = vld [vmem:[%s8484_s11 + $0x78] sm:$0xff] }
 0xee5   :  { %4136 = vmatprep.subr.mxu0 %v8168_v14  ;;  %5644 = vmatprep.subr.mxu1 %v8704_v12  ;;  %v4288_v14 = vld [vmem:[%s8484_s11 + $0x70] sm:$0xff] }
 0xee6   :  { %4137 = vmatpush1.msra.mxu0 %v8172_v46  ;;  %5645 = vmatpush3.msra.mxu1 %v8175_v4  ;;  %v4287_v46 = vld [vmem:[%s8484_s11 + $0x68] sm:$0xff]  ;;  %v4286_v4 = vld [vmem:[%s8484_s11 + $0x60] sm:$0xff] }
 0xee7   :  { %4138 = vmatprep.subr.mxu0 %v8895_v26  ;;  %5646 = vmatprep.subr.mxu1 %v8704_v12  ;;  %v4285_v26 = vld [vmem:[%s8484_s11 + $0x58] sm:$0xff]  ;;  %s6246_s11 = smov [#allocation22]  }
 0xee8   :  { %4139 = vmatpush1.msra.mxu0 %v8906_v40  ;;  %5647 = vmatpush3.msra.mxu1 %v8907_v25  ;;  %v4376_v40 = vld [vmem:[#allocation19 + $0x48] sm:$0xff]  ;;  %v4375_v25 = vld [vmem:[#allocation19 + $0x40] sm:$0xff]  ;;  %s4467_s10 = sshll.u32 %s6246_s11, 4  ;;  %s4468_s10 = int_to_ptr.vmem [resolvable:$true] %s4467_s10 }
 0xee9   :  { %4140 = vmatprep.subr.mxu0 %v8908_v34  ;;  %5648 = vmatprep.subr.mxu1 %v8704_v12  ;;  %v4374_v34 = vld [vmem:[#allocation19 + $0x38] sm:$0xff]  ;;  %s6196_s17 = scalar_lea.vmem %s4468_s10, 32  ;;  %p6201_p9 = scmp.lt.s32.totalorder %s4468_s10, %s4468_s10 }
 0xeea   :  { %4141 = vmatpush1.msra.mxu0 %v8909_v0  ;;  %4174 = vmatprep.mubr.f32.mxu0 %v8704_v12  ;;  %v4373_v0 = vld [vmem:[#allocation19 + $0x30] sm:$0xff]  ;;  %p6197_p8 = scmp.ne.s32.totalorder %s4468_s10, %s6196_s17  ;;  %p6202_p10 = scmp.lt.s32.totalorder %s6196_s17, %s6196_s17 }
 0xeeb   :  { %5649 = vmatpush3.msra.mxu1 %v8910_v37  ;;  %5650 = vmatprep.mubr.msk.f32.mxu1 %vm6245_vm0, %v8704_v12  ;;  %v4372_v37 = vld [vmem:[#allocation19 + $0x28] sm:$0xff] }
 0xeec   :  { %5653 = vmatprep.subr.mxu0 %v8704_v12  ;;  %5688 = vmatprep.subr.mxu1 %v8704_v12  ;;  %p6203_p11 = por %p6202_p10, %p6201_p9 }
 0xeee   :  { %p6204_p12 = pnand %p6203_p11, %p6197_p8 }
 0xf8b   :  { %v4004_v58 = vpop.f32.mrf.mxu0  ;;  %v4075_v49 = vpop.f32.mrf.mxu1 }
 0xf8c   :  { %v4005_v63 = vadd.f32 %v4004_v58, %v8911_v27  ;;  %v4076_v38 = vadd.f32 %v4075_v49, %v7797_v6  ;;  %v4371_v58 = vld [vmem:[#allocation19 + $0x20] sm:$0xff]  ;;  %v4370_v49 = vld [vmem:[#allocation19 + $0x18] sm:$0xff] }
 0xf8d   :  { %v4006_v1 = vpop.f32.mrf.mxu0  ;;  %v5617_v57 = vpop.f32.mrf.mxu1 }
 0xf8e   :  { %v4079_v18 = vadd.f32 %v4005_v63, %v8912_v8  ;;  %v4007_v35 = vadd.f32 %v4006_v1, %v7791_v48  ;;  %v4369_v63 = vld [vmem:[#allocation19 + $0x10] sm:$0xff] }
 0xf90   :  { %v4509_v41 = vmul.f32 -1.442695, %v4079_v18  ;;  %v4086_v19 = vadd.f32 %v4007_v35, %v3936_v61 }
 0xf92   :  { %5880 = vpow2.f32 %v4509_v41  ;;  %v4510_v11 = vmul.f32 -1.442695, %v4086_v19 }
 0xf94   :  { %5882 = vpow2.f32 %v4510_v11 }
 0xf9f   :  { %v5881_v31 = vpop.eup %5880 }
 0xfa0   :  { %v4083_v56 = vadd.f32 1.0, %v5881_v31 }
 0xfa1   :  { %v5883_v21 = vpop.eup %5882 }
 0xfa2   :  { %5884 = vrcp.f32 %v4083_v56  ;;  %v4090_v7 = vadd.f32 1.0, %v5883_v21 }
 0xfa4   :  { %5886 = vrcp.f32 %v4090_v7 }
 0xfaf   :  { %v5885_v23 = vpop.eup %5884 }
 0xfb0   :  { %v4093_v22 = vmul.f32 %v5885_v23, %v4076_v38  ;;  %v8919_v23 = vld [vmem:[#allocation34_spill] sm:$0xff] }
 0xfb1   :  { %v5887_v36 = vpop.eup %5886 }
 0xfb2   :  { %v4094_v30 = vadd.f32 %v4093_v22, %v8916_v43  ;;  %v4096_v20 = vsub.f32 1.0, %v5887_v36  ;;  %v4098_v29 = vmul.f32 %v5887_v36, %v8290_v17  ;;  %v8920_v43 = vld [vmem:[#allocation59_spill] sm:$0xff]  ;;  %v8922_v36 = vld [vmem:[#allocation58_spill] sm:$0xff] }
 0xfb4   :  { %5888 = vtanh.f32 %v4094_v30 }
 0xfc1   :  { %v5889_v51 = vpop.eup %5888 }
 0xfc2   :  { %v4097_v45 = vmul.f32 %v5889_v51, %v4096_v20 }
 0xfc4   :  { %v8370_v47 = vadd.f32 %v4098_v29, %v4097_v45  ;;  %v8923_v45 = vld [vmem:[#allocation38_spill] sm:$0xff] }
 0xfc6   :  { %4175 = vmatmul.mubr.f32.vlgmr.msra.gmra.mxu0 %v8370_v47  ;;  %5651 = vmatmul.mubr.f32.vlgmr.msra.gmra.mxu1 %v8370_v47 }
 0xfc7   :  { %5685 = vmatprep.mubr.msk.f32.mxu0 %vm6245_vm0, %v8704_v12  ;;  %5720 = vmatprep.mubr.msk.f32.mxu1 %vm6245_vm0, %v8704_v12 }
 0xfc8   :  { %5654 = vmatpush3.msra.mxu0 %v4289_v53  ;;  %5689 = vmatpush3.msra.mxu1 %v4382_v5 }
 0xfc9   :  { %5655 = vmatprep.subr.mxu0 %v8704_v12  ;;  %5690 = vmatprep.subr.mxu1 %v8704_v12 }
 0xfca   :  { %5656 = vmatpush3.msra.mxu0 %v4288_v14  ;;  %5691 = vmatpush3.msra.mxu1 %v4381_v44 }
 0xfcb   :  { %5657 = vmatprep.subr.mxu0 %v8704_v12  ;;  %5692 = vmatprep.subr.mxu1 %v8704_v12 }
 0xfcc   :  { %5658 = vmatpush3.msra.mxu0 %v4287_v46  ;;  %5693 = vmatpush3.msra.mxu1 %v4380_v28 }
 0xfcd   :  { %5659 = vmatprep.subr.mxu0 %v8704_v12  ;;  %5694 = vmatprep.subr.mxu1 %v8704_v12 }
 0xfce   :  { %5660 = vmatpush3.msra.mxu0 %v4286_v4  ;;  %5695 = vmatpush3.msra.mxu1 %v4379_v33 }
 0xfcf   :  { %5661 = vmatprep.subr.mxu0 %v8704_v12  ;;  %5696 = vmatprep.subr.mxu1 %v8704_v12 }
 0xfd0   :  { %5662 = vmatpush3.msra.mxu0 %v4285_v26  ;;  %5697 = vmatpush3.msra.mxu1 %v4378_v32 }
 0xfd1   :  { %5663 = vmatprep.subr.mxu0 %v8704_v12  ;;  %5698 = vmatprep.subr.mxu1 %v8704_v12 }
 0xfd2   :  { %5664 = vmatpush3.msra.mxu0 %v4284_v10  ;;  %5699 = vmatpush3.msra.mxu1 %v4377_v24 }
 0xfd3   :  { %5665 = vmatprep.subr.mxu0 %v8704_v12  ;;  %5700 = vmatprep.subr.mxu1 %v8704_v12 }
 0xfd4   :  { %5666 = vmatpush3.msra.mxu0 %v4283_v39  ;;  %5701 = vmatpush3.msra.mxu1 %v4376_v40 }
 0xfd5   :  { %5667 = vmatprep.subr.mxu0 %v8704_v12  ;;  %5702 = vmatprep.subr.mxu1 %v8704_v12 }
 0xfd6   :  { %5668 = vmatpush3.msra.mxu0 %v4282_v9  ;;  %5703 = vmatpush3.msra.mxu1 %v4375_v25 }
 0xfd7   :  { %5669 = vmatprep.subr.mxu0 %v8704_v12  ;;  %5704 = vmatprep.subr.mxu1 %v8704_v12 }
 0xfd8   :  { %5670 = vmatpush3.msra.mxu0 %v4281_v60  ;;  %5705 = vmatpush3.msra.mxu1 %v4374_v34 }
 0xfd9   :  { %5671 = vmatprep.subr.mxu0 %v8704_v12  ;;  %5706 = vmatprep.subr.mxu1 %v8704_v12 }
 0xfda   :  { %5672 = vmatpush3.msra.mxu0 %v4280_v2  ;;  %5707 = vmatpush3.msra.mxu1 %v4373_v0  ;;  %v4368_v2 = vld [vmem:[#allocation19 + $0x8] sm:$0xff] }
 0xfdb   :  { %5673 = vmatprep.subr.mxu0 %v8704_v12  ;;  %5708 = vmatprep.subr.mxu1 %v8704_v12 }
 0xfdc   :  { %5674 = vmatpush3.msra.mxu0 %v4279_v16  ;;  %5709 = vmatpush3.msra.mxu1 %v4372_v37  ;;  %v4367_v16 = vld [vmem:[#allocation19] sm:$0xff] }
 0xfdd   :  { %5675 = vmatprep.subr.mxu0 %v8704_v12  ;;  %5710 = vmatprep.subr.mxu1 %v8704_v12 }
 0xfde   :  { %5676 = vmatpush3.msra.mxu0 %v4278_v3  ;;  %5711 = vmatpush3.msra.mxu1 %v4371_v58 }
 0xfdf   :  { %5677 = vmatprep.subr.mxu0 %v8704_v12  ;;  %5712 = vmatprep.subr.mxu1 %v8704_v12 }
 0xfe0   :  { %5678 = vmatpush3.msra.mxu0 %v4277_v52  ;;  %5713 = vmatpush3.msra.mxu1 %v4370_v49 }
 0xfe1   :  { %5679 = vmatprep.subr.mxu0 %v8704_v12  ;;  %5714 = vmatprep.subr.mxu1 %v8704_v12 }
 0xfe2   :  { %5680 = vmatpush3.msra.mxu0 %v4276_v42  ;;  %5715 = vmatpush3.msra.mxu1 %v4369_v63 }
 0xfe3   :  { %5681 = vmatprep.subr.mxu0 %v8704_v12  ;;  %5716 = vmatprep.subr.mxu1 %v8704_v12 }
 0xfe4   :  { %5682 = vmatpush3.msra.mxu0 %v4275_v54  ;;  %5717 = vmatpush3.msra.mxu1 %v4368_v2 }
 0xfe5   :  { %5683 = vmatprep.subr.mxu0 %v8704_v12  ;;  %5718 = vmatprep.subr.mxu1 %v8704_v12 }
 0xfe6   :  { %5684 = vmatpush3.msra.mxu0 %v4274_v13  ;;  %5719 = vmatpush3.msra.mxu1 %v4367_v16 }
0x1086   :  { %v4176_v1 = vpop.f32.mrf.mxu0  ;;  %v4247_v57 = vpop.f32.mrf.mxu1 }
0x1087   :  { %v4177_v8 = vadd.f32 %v4176_v1, %v8911_v27  ;;  %v4248_v7 = vadd.f32 %v4247_v57, %v7797_v6 }
0x1088   :  { %v4178_v18 = vpop.f32.mrf.mxu0  ;;  %v5652_v59 = vpop.f32.mrf.mxu1 }
0x1089   :  { %v4251_v55 = vadd.f32 %v4177_v8, %v8917_v62  ;;  %v4179_v35 = vadd.f32 %v4178_v18, %v7791_v48  ;;  %v8921_v48 = vld [vmem:[#allocation61_spill] sm:$0xff] }
0x108a   :  { %v3240_v30 = vadd.f32 %v8921_v48, %v8920_v43 }
0x108b   :  { %v4511_v41 = vmul.f32 -1.442695, %v4251_v55  ;;  %v4258_v61 = vadd.f32 %v4179_v35, %v8918_v15 }
0x108c   :  { %v3412_v20 = vadd.f32 %v8922_v36, %v3240_v30 }
0x108d   :  { %5890 = vpow2.f32 %v4511_v41  ;;  %v4512_v19 = vmul.f32 -1.442695, %v4258_v61 }
0x108e   :  { %v3584_v29 = vadd.f32 %v8923_v45, %v3412_v20 }
0x108f   :  { %5892 = vpow2.f32 %v4512_v19 }
0x1090   :  { %v3756_v53 = vadd.f32 %v8212_v50, %v3584_v29  ;;  %v4513_v50 = vld [vmem:[#allocation17] ss:$0 sm:$0xff] }
0x1092   :  { %v3928_v6 = vadd.f32 %v8290_v17, %v3756_v53  ;;  %v4514_v17 = vld [vmem:[#allocation20] ss:$0 sm:$0xff] }
0x1094   :  { %v4100_v10 = vadd.f32 %v8370_v47, %v3928_v6 }
0x109a   :  { %v5891_v11 = vpop.eup %5890 }
0x109b   :  { %v4255_v31 = vadd.f32 1.0, %v5891_v11 }
0x109c   :  { %v5893_v56 = vpop.eup %5892 }
0x109d   :  { %5894 = vrcp.f32 %v4255_v31  ;;  %v4262_v21 = vadd.f32 1.0, %v5893_v56 }
0x109f   :  { %5896 = vrcp.f32 %v4262_v21 }
0x10aa   :  { %v5895_v27 = vpop.eup %5894 }
0x10ab   :  { %v4265_v38 = vmul.f32 %v5895_v27, %v4248_v7 }
0x10ac   :  { %v5897_v51 = vpop.eup %5896 }
0x10ad   :  { %v4266_v22 = vadd.f32 %v4265_v38, %v8919_v23  ;;  %v4268_v14 = vsub.f32 1.0, %v5897_v51  ;;  %v4270_v26 = vmul.f32 %v5897_v51, %v8370_v47 }
0x10af   :  { %5898 = vtanh.f32 %v4266_v22 }
0x10bc   :  { %v5899_v46 = vpop.eup %5898 }
0x10bd   :  { %v4269_v4 = vmul.f32 %v5899_v46, %v4268_v14 }
0x10bf   :  { %v4271_v39 = vadd.f32 %v4270_v26, %v4269_v4 }
0x10c1   :  { %v4272_v9 = vadd.f32 %v4271_v39, %v4100_v10 }
0x10c3   :  { %v4273_v60 = vmul.f32 0.125, %v4272_v9 }
0x10c5   :  { %5686 = vmatmul.mubr.f32.vlgmr.msra.gmra.mxu0 %v4273_v60 }
0x1185   :  { %v4363_v3 = vpop.f32.mrf.mxu0 }
0x1186   :  { %v4364_v52 = vadd.f32 %v4513_v50, %v4363_v3 }
0x1187   :  { %v5687_v42 = vpop.f32.mrf.mxu0 }
0x1188   :  { %5721 = vmatmul.mubr.f32.vlgmr.msra.gmra.mxu1 %v4364_v52 }
0x1248   :  { %v4456_v54 = vpop.f32.mrf.mxu1 }
0x1249   :  { %v4457_v47 = vadd.f32 %v4514_v17, %v4456_v54 }
0x124a   :  { %v5722_v13 = vpop.f32.mrf.mxu1 }
0x124b   :  { %4460 = vst [vmem:[#allocation22] sm:$0x3] %v4457_v47 }
0x124c   :  { %6207 = shalt.err (!%p6204_p12)
}
0x124d   :  { %4470 = dma.vmem_to_hbm [thread:$0]  %s4468_s10, 32, %s8488_s15, [#allocation7]  }
0x124e   :  { %6228 = dma.done.wait [#allocation7], 32  }
0x124f   :  { %6229 = vsyncadd [#allocation7], 4294967264 }
0x1250   :  { %4474 = vsyncpa [#allocation6], 1 }
0x1251   :  { %4475 = vsyncpa [#allocation9], 1 }
0x1252   :  { %4476 = vsyncpa [#allocation12], 1 }
0x1253   :  { %4477 = vsyncpa [#allocation15], 1 }
0x1254   :  { %4478 = vsyncpa [#allocation18], 1 }
0x1255   :  { %4479 = vsyncpa [#allocation21], 1 }
0x1256   :  { %4480 = vsyncpa [#allocation7], 1 }

</bundles_post_ra>
